<compile_context>
chip_gen: v7x
topology: tpu7x:2x2x1
jax: 0.10.0
libtpu: 0.0.40
codegen_flags: <defaults>
</compile_context>

<pallas_src>
import math

import jax
import jax.numpy as jnp
from jax.experimental import pallas as pl
from jax.experimental.pallas import tpu as pltpu

_LANE = 128
_SUBLANE = 8


def _tpu_kind() -> str:
    try:
        return jax.devices()[0].device_kind.lower()
    except Exception:
        return ""


def _is_v7x_class() -> bool:
    # v7x-class parts: two TensorCores per chip, ~3.2 TB/s per-TC HBM.
    return "7" in _tpu_kind()


def _make_mse_kernel(rows_total, tile_rows, steps, needs_mask):
    """Per-shard sum of squared differences.

    grid = (num_shards, steps): axis 0 is 'parallel' (one shard per TensorCore
    on multi-core parts), axis 1 is the 'arbitrary' reduction over row tiles.
    acc_ref is a tile-independent (8, 128) f32 VMEM accumulator; each step
    folds its (tile_rows, 128) squared-diff tile into it with sublane-group
    adds, and the shard-end epilogue is a fixed-size copy.
    """

    def kernel(a_ref, b_ref, o_ref, acc_ref):
        i = pl.program_id(1)

        @pl.when(i == 0)
        def _():
            acc_ref[...] = jnp.zeros_like(acc_ref)

        # astype is a no-op for f32; bf16 stays narrow on the wire (HBM) and is
        # upcast in-register before squaring.
        d = a_ref[...].astype(jnp.float32) - b_ref[...].astype(jnp.float32)
        sq = d * d

        def _accumulate(vals):
            acc_ref[...] += jnp.sum(
                vals.reshape(tile_rows // _SUBLANE, _SUBLANE, _LANE), axis=0
            )

        if needs_mask:
            # Wrapper guarantees only the globally-last block can be ragged;
            # gate the mask so every full tile takes the plain path.
            block_row0 = (pl.program_id(0) * steps + i) * tile_rows
            is_partial = block_row0 + tile_rows > rows_total

            @pl.when(is_partial)
            def _():
                row_ids = (
                    jax.lax.broadcasted_iota(jnp.int32, (tile_rows, _LANE), 0)
                    + block_row0
                )
                _accumulate(jnp.where(row_ids < rows_total, sq, 0.0))

            @pl.when(jnp.logical_not(is_partial))
            def _():
                _accumulate(sq)
        else:
            _accumulate(sq)

        @pl.when(i == steps - 1)
        def _():
            o_ref[...] = acc_ref[...]

    return kernel


def aim_point_loss(aim_point, aim_point_tgt, *, small_bytes_threshold=1 << 20):
    """Pallas equivalent of F.mse_loss(aim_point, aim_point_tgt, reduction='mean')."""
    assert aim_point.shape == aim_point_tgt.shape, (
        aim_point.shape,
        aim_point_tgt.shape,
    )

    n_elem = math.prod(aim_point.shape)
    itemsize_a = jnp.dtype(aim_point.dtype).itemsize
    itemsize_b = jnp.dtype(aim_point_tgt.dtype).itemsize
    itemsize = max(itemsize_a, itemsize_b)

    # --- Fast path: tiny inputs (the actual AimPointLoss use case) ----------
    if n_elem == 0 or n_elem * itemsize < small_bytes_threshold:
        d = aim_point.astype(jnp.float32) - aim_point_tgt.astype(jnp.float32)
        return jnp.mean(d * d)

    # --- Kernel path: lane-dense (rows, 128) view of the flat operands ------
    rows_total, rem = divmod(n_elem, _LANE)
    a_flat = aim_point.reshape(-1)
    b_flat = aim_point_tgt.reshape(-1)
    if rem:
        # n_elem not a multiple of 128: pad each flat operand with <128 zeros
        # so it reshapes to (rows, 128).  Identical zero pad in both operands
        # -> zero diff -> contributes nothing; divisor stays n_elem.
        # (When rem == 0 the reshape below is a pure bitcast: no HBM copy.)
        pad = _LANE - rem
        a_flat = jnp.pad(a_flat, (0, pad))
        b_flat = jnp.pad(b_flat, (0, pad))
        rows_total += 1
    a2 = a_flat.reshape(rows_total, _LANE)
    b2 = b_flat.reshape(rows_total, _LANE)

    # Tile size by BYTES, not rows: ~2 MiB per input block (v5e/v6e), ~4 MiB on
    # v7x.  2 inputs x 2 pipeline buffers stays well under the default scoped
    # VMEM budget on all generations (the accumulator no longer scales with
    # the tile).  Sub-32-bit dtypes keep tile_rows a multiple of their sublane
    # packing (16 for bf16, 32 for 8-bit).
    block_bytes = (4 << 20) if _is_v7x_class() else (2 << 20)
    min_itemsize = min(itemsize_a, itemsize_b)
    pack = _SUBLANE * max(1, 4 // min_itemsize)
    tile_rows = max(pack, (block_bytes // (_LANE * itemsize)) // pack * pack)
    while tile_rows // 2 >= pack and tile_rows > rows_total:
        tile_rows //= 2
    tile_rows = max(pack, tile_rows // pack * pack)

    # 2 row shards only on multi-TensorCore parts (v7x); 1 elsewhere.
    num_shards = 2 if _is_v7x_class() else 1
    steps = -(-rows_total // (num_shards * tile_rows))
    if num_shards > 1 and (num_shards * steps - 1) * tile_rows >= rows_total:
        # Second shard would own only fully out-of-bounds blocks; fold to one.
        num_shards = 1
        steps = -(-rows_total // tile_rows)
    needs_mask = num_shards * steps * tile_rows != rows_total

    kernel = _make_mse_kernel(rows_total, tile_rows, steps, needs_mask)

    partials = pl.pallas_call(
        kernel,
        out_shape=jax.ShapeDtypeStruct((num_shards * _SUBLANE, _LANE), jnp.float32),
        grid_spec=pltpu.PrefetchScalarGridSpec(
            num_scalar_prefetch=0,
            grid=(num_shards, steps),
            in_specs=[
                pl.BlockSpec((tile_rows, _LANE), lambda c, i: (c * steps + i, 0)),
                pl.BlockSpec((tile_rows, _LANE), lambda c, i: (c * steps + i, 0)),
            ],
            out_specs=pl.BlockSpec((_SUBLANE, _LANE), lambda c, i: (c, 0)),
            scratch_shapes=[pltpu.VMEM((_SUBLANE, _LANE), jnp.float32)],
        ),
        compiler_params=pltpu.CompilerParams(
            dimension_semantics=("parallel", "arbitrary"),
        ),
        cost_estimate=pl.CostEstimate(
            flops=3 * n_elem,
            transcendentals=0,
            bytes_accessed=n_elem * (itemsize_a + itemsize_b)
            + num_shards * _SUBLANE * _LANE * 4,
        ),
    )(a2, b2)

    # Combine the tiny per-shard partial sums; divide by the TRUE count.
    return jnp.sum(partials) / jnp.float32(n_elem)


if __name__ == "__main__":
    key = jax.random.PRNGKey(0)
    ks = jax.random.split(key, 8)

    # 1) Real use case: small batch of (x, y) aim points -> jnp fast path.
    ap = jax.random.normal(ks[0], (16, 2), dtype=jnp.float32)
    tg = jax.random.normal(ks[1], (16, 2), dtype=jnp.float32)
    out = jax.block_until_ready(aim_point_loss(ap, tg))
    ref = jnp.mean((ap - tg) ** 2)
    assert jnp.allclose(out, ref, rtol=1e-6, atol=1e-6), (out, ref)

    # 2) Large f32 batch, n_elem % 128 == 0 -> zero-copy bitcast kernel path.
    ap = jax.random.normal(ks[2], (262144, 2), dtype=jnp.float32)
    tg = jax.random.normal(ks[3], (262144, 2), dtype=jnp.float32)
    out = jax.block_until_ready(aim_point_loss(ap, tg))
    ref = jnp.mean((ap - tg) ** 2)
    assert jnp.allclose(out, ref, rtol=1e-5, atol=1e-6), (out, ref)

    # 3) Large f32 batch, n_elem % 128 != 0 -> sub-row pad + in-kernel masking
    #    of the single ragged tail block.
    ap = jax.random.normal(ks[4], (150_001, 2), dtype=jnp.float32)
    tg = jax.random.normal(ks[5], (150_001, 2), dtype=jnp.float32)
    out = jax.block_until_ready(aim_point_loss(ap, tg))
    ref = jnp.mean((ap - tg) ** 2)
    assert jnp.allclose(out, ref, rtol=1e-5, atol=1e-6), (out, ref)

    # 4) bf16 inputs: narrow wire dtype, 16-row sublane packing, f32 accumulate.
    ap = jax.random.normal(ks[6], (262144, 2), dtype=jnp.bfloat16)
    tg = jax.random.normal(ks[7], (262144, 2), dtype=jnp.bfloat16)
    out = jax.block_until_ready(aim_point_loss(ap, tg))
    ref = jnp.mean((ap.astype(jnp.float32) - tg.astype(jnp.float32)) ** 2)
    assert jnp.allclose(out, ref, rtol=1e-5, atol=1e-6), (out, ref)

    print("KERNEL_OK")
</pallas_src>

<mosaic_0001>
module attributes {stable_mosaic.version = 11 : i64} {
  func.func @kernel(%arg0: i32, %arg1: i32, %arg2: memref<4096x128xf32, #tpu.memory_space<vmem>>, %arg3: memref<4096x128xf32, #tpu.memory_space<vmem>>, %arg4: memref<8x128xf32, #tpu.memory_space<vmem>>, %arg5: memref<8x128xf32, #tpu.memory_space<vmem>>) attributes {dimension_semantics = [#tpu.dimension_semantics<parallel>, #tpu.dimension_semantics<arbitrary>], iteration_bounds = array<i64: 1, 1>, scalar_prefetch = 0 : i64, scratch_operands = 1 : i64, tpu.core_type = #tpu.core_type<tc>, window_params = [{transform_indices = @transform_0, window_bounds = array<i64: 4096, 128>}, {transform_indices = @transform_1, window_bounds = array<i64: 4096, 128>}, {transform_indices = @transform_2, window_bounds = array<i64: 8, 128>}]} {
    %c0_i32 = arith.constant 0 : i32
    %0 = arith.cmpi eq, %arg1, %c0_i32 : i32
    %1 = arith.extui %0 : i1 to i32
    %c0_i32_0 = arith.constant 0 : i32
    %2 = arith.cmpi ne, %1, %c0_i32_0 : i32
    scf.if %2 {
      %cst_10 = arith.constant 0.000000e+00 : f32
      %15 = vector.broadcast %cst_10 : f32 to vector<8x128xf32>
      %c0_11 = arith.constant 0 : index
      %c0_12 = arith.constant 0 : index
      %16 = vector.load %arg5[%c0_11, %c0_12] : memref<8x128xf32, #tpu.memory_space<vmem>>, vector<8x128xf32>
      tpu.vector_store %arg5[%c0_11, %c0_12], %15 {strides = array<i32>} : memref<8x128xf32, #tpu.memory_space<vmem>>, vector<8x128xf32>,
    } else {
    }
    %c0 = arith.constant 0 : index
    %c0_1 = arith.constant 0 : index
    %3 = vector.load %arg2[%c0, %c0_1] : memref<4096x128xf32, #tpu.memory_space<vmem>>, vector<4096x128xf32>
    %c0_2 = arith.constant 0 : index
    %c0_3 = arith.constant 0 : index
    %4 = vector.load %arg3[%c0_2, %c0_3] : memref<4096x128xf32, #tpu.memory_space<vmem>>, vector<4096x128xf32>
    %5 = arith.subf %3, %4 : vector<4096x128xf32>
    %6 = arith.mulf %5, %5 : vector<4096x128xf32>
    %c0_4 = arith.constant 0 : index
    %c0_5 = arith.constant 0 : index
    %7 = vector.load %arg5[%c0_4, %c0_5] : memref<8x128xf32, #tpu.memory_space<vmem>>, vector<8x128xf32>
    %8 = vector.shape_cast %6 : vector<4096x128xf32> to vector<512x8x128xf32>
    %cst = arith.constant dense<0.000000e+00> : vector<8x128xf32>
    %9 = vector.multi_reduction <add>, %8, %cst [0] : vector<512x8x128xf32> to vector<8x128xf32>
    %10 = arith.addf %7, %9 : vector<8x128xf32>
    %c0_6 = arith.constant 0 : index
    %c0_7 = arith.constant 0 : index
    %11 = vector.load %arg5[%c0_6, %c0_7] : memref<8x128xf32, #tpu.memory_space<vmem>>, vector<8x128xf32>
    tpu.vector_store %arg5[%c0_6, %c0_7], %10 {strides = array<i32>} : memref<8x128xf32, #tpu.memory_space<vmem>>, vector<8x128xf32>,
    %c0_i32_8 = arith.constant 0 : i32
    %12 = arith.cmpi eq, %arg1, %c0_i32_8 : i32
    %13 = arith.extui %12 : i1 to i32
    %c0_i32_9 = arith.constant 0 : i32
    %14 = arith.cmpi ne, %13, %c0_i32_9 : i32
    scf.if %14 {
      %c0_10 = arith.constant 0 : index
      %c0_11 = arith.constant 0 : index
      %15 = vector.load %arg5[%c0_10, %c0_11] : memref<8x128xf32, #tpu.memory_space<vmem>>, vector<8x128xf32>
      %c0_12 = arith.constant 0 : index
      %c0_13 = arith.constant 0 : index
      %16 = vector.load %arg4[%c0_12, %c0_13] : memref<8x128xf32, #tpu.memory_space<vmem>>, vector<8x128xf32>
      tpu.vector_store %arg4[%c0_12, %c0_13], %15 {strides = array<i32>} : memref<8x128xf32, #tpu.memory_space<vmem>>, vector<8x128xf32>,
    } else {
    }
    return
  }
  func.func @transform_0(%arg0: i32, %arg1: i32) -> (i32, i32) {
    %c1_i32 = arith.constant 1 : i32
    %0 = arith.muli %arg0, %c1_i32 : i32
    %1 = arith.addi %0, %arg1 : i32
    %c0_i32 = arith.constant 0 : i32
    %c0_i32_0 = arith.constant 0 : i32
    return %1, %c0_i32 : i32, i32
  }
  func.func @transform_1(%arg0: i32, %arg1: i32) -> (i32, i32) {
    %c1_i32 = arith.constant 1 : i32
    %0 = arith.muli %arg0, %c1_i32 : i32
    %1 = arith.addi %0, %arg1 : i32
    %c0_i32 = arith.constant 0 : i32
    %c0_i32_0 = arith.constant 0 : i32
    return %1, %c0_i32 : i32, i32
  }
  func.func @transform_2(%arg0: i32, %arg1: i32) -> (i32, i32) {
    %c0_i32 = arith.constant 0 : i32
    %c0_i32_0 = arith.constant 0 : i32
    return %arg0, %c0_i32 : i32, i32
  }
}

</mosaic_0001>

<bundles_post_ra>
// kernel: tpu_custom_call.1
= control target key start
LH: loop header
LB: loop body
LE: loop exit
PB: predicated region body
PF: predicated region fallthrough
CT: control target
= control target key end

     0   :  { %7 = vsyncpa [#allocation4], 0  ;;  %s2773_s0 = inlined_call_operand.hbm [shape: f32[4096,128], index: 0, kind: input, shape index: {}]   ;;  %s2774_s1 = inlined_call_operand.hbm [shape: f32[4096,128], index: 1, kind: input, shape index: {}]   ;;  %s2775_s2 = inlined_call_operand.hbm [shape: f32[8,128], index: 2, kind: output, shape index: {}]  }
   0x1   :  { %8 = vsyncpa [#allocation7], 0 }
   0x2   :  { %9 = vsyncpa [#allocation5], 0  ;;  %s2717_s9 = smov [#allocation3]   ;;  %s2645_s13 = scalar_lea.hbm %s2773_s0, 65536 }
   0x3   :  { %s19_s10 = sshll.u32 %s2717_s9, 4  ;;  %p2646_p0 = scmp.ne.s32.totalorder %s2773_s0, %s2645_s13  ;;  %s20_s10 = int_to_ptr.vmem [resolvable:$true] %s19_s10 }
   0x4   :  { %p2649_p1 = scmp.lt.u32.totalorder %s2645_s13, %s2773_s0 }
   0x6   :  { %p2651_p2 = pnand %p2649_p1, %p2646_p0 }
   0x8   :  { %2654 = shalt.err (!%p2651_p2)
}
   0x9   :  { %s2655_s18 = scalar_lea.vmem %s20_s10, 65536  ;;  %p2660_p4 = scmp.lt.s32.totalorder %s20_s10, %s20_s10 }
   0xa   :  { %p2656_p3 = scmp.ne.s32.totalorder %s20_s10, %s2655_s18  ;;  %p2661_p5 = scmp.lt.s32.totalorder %s2655_s18, %s2655_s18 }
   0xc   :  { %p2662_p6 = por %p2661_p5, %p2660_p4 }
   0xe   :  { %p2663_p7 = pnand %p2662_p6, %p2656_p3 }
  0x10   :  { %2666 = shalt.err (!%p2663_p7)
}
  0x11   :  { %s2718_s19 = smov 128   ;;  %s2719_s20 = smov 8  }
  0x12   :  { %25 = dma.hbm_to_vmem [thread:$0]  %s2773_s0, 65536, %s20_s10, [#allocation4], %s2718_s19, %s2718_s19, %s2719_s20  }
  0x13   :  { %s2720_s23 = smov [#allocation6]   ;;  %s2667_s27 = scalar_lea.hbm %s2774_s1, 65536 }
  0x14   :  { %s35_s24 = sshll.u32 %s2720_s23, 4  ;;  %p2668_p8 = scmp.ne.s32.totalorder %s2774_s1, %s2667_s27  ;;  %s36_s24 = int_to_ptr.vmem [resolvable:$true] %s35_s24 }
  0x15   :  { %p2671_p9 = scmp.lt.u32.totalorder %s2667_s27, %s2774_s1 }
  0x17   :  { %p2673_p10 = pnand %p2671_p9, %p2668_p8 }
  0x19   :  { %2676 = shalt.err (!%p2673_p10)
}
  0x1a   :  { %s2677_s4 = scalar_lea.vmem %s36_s24, 65536  ;;  %p2682_p12 = scmp.lt.s32.totalorder %s36_s24, %s36_s24 }
  0x1b   :  { %p2678_p11 = scmp.ne.s32.totalorder %s36_s24, %s2677_s4  ;;  %p2683_p13 = scmp.lt.s32.totalorder %s2677_s4, %s2677_s4 }
  0x1d   :  { %p2684_p0 = por %p2683_p13, %p2682_p12 }
  0x1f   :  { %p2685_p1 = pnand %p2684_p0, %p2678_p11 }
  0x21   :  { %2688 = shalt.err (!%p2685_p1)
}
  0x22   :  { %41 = dma.hbm_to_vmem [thread:$0]  %s2774_s1, 65536, %s36_s24, [#allocation7], %s2718_s19, %s2718_s19, %s2719_s20  }
  0x23   :  { %2711 = dma.done.wait [#allocation4], 65536  }
  0x24   :  { %2712 = vsyncadd [#allocation4], 4294901760 }
  0x25   :  { %2713 = dma.done.wait [#allocation7], 65536  }
  0x26   :  { %2714 = vsyncadd [#allocation7], 4294901760  ;;  %v57_v0 = vld [vmem:[#allocation3] sm:$0xff]  ;;  %v58_v1 = vld [vmem:[#allocation3 + $0x8] sm:$0xff]  ;;  %s2721_s1 = smov [#allocation8]  }
  0x27   :  { %v569_v2 = vld [vmem:[#allocation6] sm:$0xff]  ;;  %v570_v3 = vld [vmem:[#allocation6 + $0x8] sm:$0xff]  ;;  %v59_v4 = vld [vmem:[#allocation3 + $0x10] sm:$0xff]  ;;  %s2630_s6 = sshll.u32 %s2721_s1, 4  ;;  %s2631_s6 = int_to_ptr.vmem [resolvable:$true] %s2630_s6 }
  0x28   :  { %v571_v5 = vld [vmem:[#allocation6 + $0x10] sm:$0xff]  ;;  %v1081_v6 = vsub.f32 %v57_v0, %v569_v2  ;;  %v1082_v7 = vsub.f32 %v58_v1, %v570_v3  ;;  %v60_v8 = vld [vmem:[#allocation3 + $0x18] sm:$0xff]  ;;  %v61_v11 = vld [vmem:[#allocation3 + $0x20] sm:$0xff]  ;;  %s2689_s7 = scalar_lea.vmem %s2631_s6, 128  ;;  %p2694_p3 = scmp.lt.s32.totalorder %s2631_s6, %s2631_s6 }
  0x29   :  { %v572_v9 = vld [vmem:[#allocation6 + $0x18] sm:$0xff]  ;;  %v1083_v10 = vsub.f32 %v59_v4, %v571_v5  ;;  %v573_v12 = vld [vmem:[#allocation6 + $0x20] sm:$0xff]  ;;  %v62_v16 = vld [vmem:[#allocation3 + $0x28] sm:$0xff]  ;;  %p2690_p2 = scmp.ne.s32.totalorder %s2631_s6, %s2689_s7  ;;  %p2695_p4 = scmp.lt.s32.totalorder %s2689_s7, %s2689_s7 }
  0x2a   :  { %v1084_v13 = vsub.f32 %v60_v8, %v572_v9  ;;  %v1593_v14 = vmul.f32 %v1081_v6, %v1081_v6  ;;  %v1594_v15 = vmul.f32 %v1082_v7, %v1082_v7  ;;  %v574_v17 = vld [vmem:[#allocation6 + $0x28] sm:$0xff]  ;;  %v1085_v18 = vsub.f32 %v61_v11, %v573_v12  ;;  %v63_v20 = vld [vmem:[#allocation3 + $0x30] sm:$0xff]  ;;  %v64_v25 = vld [vmem:[#allocation3 + $0x38] sm:$0xff] }
  0x2b   :  { %v1595_v19 = vmul.f32 %v1083_v10, %v1083_v10  ;;  %v575_v21 = vld [vmem:[#allocation6 + $0x30] sm:$0xff]  ;;  %v1086_v22 = vsub.f32 %v62_v16, %v574_v17  ;;  %v576_v26 = vld [vmem:[#allocation6 + $0x38] sm:$0xff]  ;;  %v65_v30 = vld [vmem:[#allocation3 + $0x40] sm:$0xff]  ;;  %p2696_p5 = por %p2695_p4, %p2694_p3 }
  0x2c   :  { %v1596_v23 = vmul.f32 %v1084_v13, %v1084_v13  ;;  %v2106_v24 = vadd.f32 %v1594_v15, %v1593_v14  ;;  %v1087_v27 = vsub.f32 %v63_v20, %v575_v21  ;;  %v1597_v28 = vmul.f32 %v1085_v18, %v1085_v18  ;;  %v577_v31 = vld [vmem:[#allocation6 + $0x40] sm:$0xff]  ;;  %v66_v35 = vld [vmem:[#allocation3 + $0x48] sm:$0xff]  ;;  %v67_v40 = vld [vmem:[#allocation3 + $0x50] sm:$0xff] }
  0x2d   :  { %v1088_v32 = vsub.f32 %v64_v25, %v576_v26  ;;  %v1598_v33 = vmul.f32 %v1086_v22, %v1086_v22  ;;  %v578_v36 = vld [vmem:[#allocation6 + $0x48] sm:$0xff]  ;;  %v1089_v37 = vsub.f32 %v65_v30, %v577_v31  ;;  %v579_v41 = vld [vmem:[#allocation6 + $0x50] sm:$0xff]  ;;  %v68_v45 = vld [vmem:[#allocation3 + $0x58] sm:$0xff]  ;;  %p2697_p6 = pnand %p2696_p5, %p2690_p2 }
  0x2e   :  { %v2107_v29 = vadd.f32 %v2106_v24, %v1595_v19  ;;  %v1599_v38 = vmul.f32 %v1087_v27, %v1087_v27  ;;  %v1090_v42 = vsub.f32 %v66_v35, %v578_v36  ;;  %v580_v46 = vld [vmem:[#allocation6 + $0x58] sm:$0xff]  ;;  %v1091_v47 = vsub.f32 %v67_v40, %v579_v41  ;;  %v69_v50 = vld [vmem:[#allocation3 + $0x60] sm:$0xff]  ;;  %v70_v55 = vld [vmem:[#allocation3 + $0x68] sm:$0xff] }
  0x2f   :  { %v1600_v43 = vmul.f32 %v1088_v32, %v1088_v32  ;;  %v1601_v48 = vmul.f32 %v1089_v37, %v1089_v37  ;;  %v581_v51 = vld [vmem:[#allocation6 + $0x60] sm:$0xff]  ;;  %v1092_v52 = vsub.f32 %v68_v45, %v580_v46  ;;  %v582_v56 = vld [vmem:[#allocation6 + $0x68] sm:$0xff]  ;;  %v71_v60 = vld [vmem:[#allocation3 + $0x70] sm:$0xff] }
  0x30   :  { %v2108_v34 = vadd.f32 %v2107_v29, %v1596_v23  ;;  %v1602_v53 = vmul.f32 %v1090_v42, %v1090_v42  ;;  %v1093_v57 = vsub.f32 %v69_v50, %v581_v51  ;;  %v1603_v58 = vmul.f32 %v1091_v47, %v1091_v47  ;;  %v583_v61 = vld [vmem:[#allocation6 + $0x70] sm:$0xff]  ;;  %v72_v1 = vld [vmem:[#allocation3 + $0x78] sm:$0xff]  ;;  %v73_v6 = vld [vmem:[#allocation3 + $0x80] sm:$0xff] }
  0x31   :  { %v1094_v62 = vsub.f32 %v70_v55, %v582_v56  ;;  %v1604_v63 = vmul.f32 %v1092_v52, %v1092_v52  ;;  %v584_v2 = vld [vmem:[#allocation6 + $0x78] sm:$0xff]  ;;  %v1095_v3 = vsub.f32 %v71_v60, %v583_v61  ;;  %v585_v7 = vld [vmem:[#allocation6 + $0x80] sm:$0xff]  ;;  %v74_v11 = vld [vmem:[#allocation3 + $0x88] sm:$0xff] }
  0x32   :  { %v2109_v39 = vadd.f32 %v2108_v34, %v1597_v28  ;;  %v1605_v4 = vmul.f32 %v1093_v57, %v1093_v57  ;;  %v1096_v8 = vsub.f32 %v72_v1, %v584_v2  ;;  %v586_v12 = vld [vmem:[#allocation6 + $0x88] sm:$0xff]  ;;  %v1097_v13 = vsub.f32 %v73_v6, %v585_v7  ;;  %v75_v16 = vld [vmem:[#allocation3 + $0x90] sm:$0xff]  ;;  %v76_v21 = vld [vmem:[#allocation3 + $0x98] sm:$0xff] }
  0x33   :  { %v1606_v9 = vmul.f32 %v1094_v62, %v1094_v62  ;;  %v1607_v14 = vmul.f32 %v1095_v3, %v1095_v3  ;;  %v587_v17 = vld [vmem:[#allocation6 + $0x90] sm:$0xff]  ;;  %v1098_v18 = vsub.f32 %v74_v11, %v586_v12  ;;  %v588_v22 = vld [vmem:[#allocation6 + $0x98] sm:$0xff]  ;;  %v77_v26 = vld [vmem:[#allocation3 + $0xa0] sm:$0xff] }
  0x34   :  { %v2110_v44 = vadd.f32 %v2109_v39, %v1598_v33  ;;  %v1608_v19 = vmul.f32 %v1096_v8, %v1096_v8  ;;  %v1099_v23 = vsub.f32 %v75_v16, %v587_v17  ;;  %v1609_v24 = vmul.f32 %v1097_v13, %v1097_v13  ;;  %v589_v27 = vld [vmem:[#allocation6 + $0xa0] sm:$0xff]  ;;  %v78_v31 = vld [vmem:[#allocation3 + $0xa8] sm:$0xff]  ;;  %v79_v36 = vld [vmem:[#allocation3 + $0xb0] sm:$0xff] }
  0x35   :  { %v1100_v28 = vsub.f32 %v76_v21, %v588_v22  ;;  %v1610_v29 = vmul.f32 %v1098_v18, %v1098_v18  ;;  %v590_v32 = vld [vmem:[#allocation6 + $0xa8] sm:$0xff]  ;;  %v1101_v33 = vsub.f32 %v77_v26, %v589_v27  ;;  %v591_v37 = vld [vmem:[#allocation6 + $0xb0] sm:$0xff]  ;;  %v80_v41 = vld [vmem:[#allocation3 + $0xb8] sm:$0xff] }
  0x36   :  { %v2111_v49 = vadd.f32 %v2110_v44, %v1599_v38  ;;  %v1611_v34 = vmul.f32 %v1099_v23, %v1099_v23  ;;  %v1102_v38 = vsub.f32 %v78_v31, %v590_v32  ;;  %v592_v42 = vld [vmem:[#allocation6 + $0xb8] sm:$0xff]  ;;  %v81_v46 = vld [vmem:[#allocation3 + $0xc0] sm:$0xff]  ;;  %v82_v51 = vld [vmem:[#allocation3 + $0xc8] sm:$0xff] }
  0x37   :  { %v1612_v39 = vmul.f32 %v1100_v28, %v1100_v28  ;;  %v1613_v44 = vmul.f32 %v1101_v33, %v1101_v33  ;;  %v593_v47 = vld [vmem:[#allocation6 + $0xc0] sm:$0xff]  ;;  %v594_v52 = vld [vmem:[#allocation6 + $0xc8] sm:$0xff]  ;;  %v83_v56 = vld [vmem:[#allocation3 + $0xd0] sm:$0xff] }
  0x38   :  { %v2112_v54 = vadd.f32 %v2111_v49, %v1600_v43  ;;  %v1103_v43 = vsub.f32 %v79_v36, %v591_v37  ;;  %v1614_v49 = vmul.f32 %v1102_v38, %v1102_v38  ;;  %v595_v57 = vld [vmem:[#allocation6 + $0xd0] sm:$0xff]  ;;  %v84_v61 = vld [vmem:[#allocation3 + $0xd8] sm:$0xff]  ;;  %v85_v2 = vld [vmem:[#allocation3 + $0xe0] sm:$0xff] }
  0x39   :  { %v596_v62 = vld [vmem:[#allocation6 + $0xd8] sm:$0xff]  ;;  %v597_v3 = vld [vmem:[#allocation6 + $0xe0] sm:$0xff]  ;;  %v86_v7 = vld [vmem:[#allocation3 + $0xe8] sm:$0xff] }
  0x3a   :  { %v2113_v59 = vadd.f32 %v2112_v54, %v1601_v48  ;;  %v1104_v48 = vsub.f32 %v80_v41, %v592_v42  ;;  %v1615_v54 = vmul.f32 %v1103_v43, %v1103_v43  ;;  %v598_v8 = vld [vmem:[#allocation6 + $0xe8] sm:$0xff]  ;;  %v87_v12 = vld [vmem:[#allocation3 + $0xf0] sm:$0xff]  ;;  %v88_v17 = vld [vmem:[#allocation3 + $0xf8] sm:$0xff] }
  0x3b   :  { %v599_v13 = vld [vmem:[#allocation6 + $0xf0] sm:$0xff]  ;;  %v600_v18 = vld [vmem:[#allocation6 + $0xf8] sm:$0xff]  ;;  %v89_v22 = vld [vmem:[#allocation3 + $0x100] sm:$0xff] }
  0x3c   :  { %v2114_v0 = vadd.f32 %v2113_v59, %v1602_v53  ;;  %v1105_v53 = vsub.f32 %v81_v46, %v593_v47  ;;  %v1616_v59 = vmul.f32 %v1104_v48, %v1104_v48  ;;  %v601_v23 = vld [vmem:[#allocation6 + $0x100] sm:$0xff]  ;;  %v90_v27 = vld [vmem:[#allocation3 + $0x108] sm:$0xff]  ;;  %v91_v32 = vld [vmem:[#allocation3 + $0x110] sm:$0xff] }
  0x3d   :  { %v602_v28 = vld [vmem:[#allocation6 + $0x108] sm:$0xff]  ;;  %v603_v33 = vld [vmem:[#allocation6 + $0x110] sm:$0xff]  ;;  %v92_v37 = vld [vmem:[#allocation3 + $0x118] sm:$0xff] }
  0x3e   :  { %v2115_v5 = vadd.f32 %v2114_v0, %v1603_v58  ;;  %v1106_v58 = vsub.f32 %v82_v51, %v594_v52  ;;  %v1617_v0 = vmul.f32 %v1105_v53, %v1105_v53  ;;  %v604_v38 = vld [vmem:[#allocation6 + $0x118] sm:$0xff]  ;;  %v93_v42 = vld [vmem:[#allocation3 + $0x120] sm:$0xff]  ;;  %v94_v47 = vld [vmem:[#allocation3 + $0x128] sm:$0xff] }
  0x3f   :  { %v605_v43 = vld [vmem:[#allocation6 + $0x120] sm:$0xff]  ;;  %v606_v48 = vld [vmem:[#allocation6 + $0x128] sm:$0xff]  ;;  %v95_v52 = vld [vmem:[#allocation3 + $0x130] sm:$0xff] }
  0x40   :  { %v2116_v10 = vadd.f32 %v2115_v5, %v1604_v63  ;;  %v1107_v63 = vsub.f32 %v83_v56, %v595_v57  ;;  %v1618_v5 = vmul.f32 %v1106_v58, %v1106_v58  ;;  %v607_v53 = vld [vmem:[#allocation6 + $0x130] sm:$0xff]  ;;  %v96_v57 = vld [vmem:[#allocation3 + $0x138] sm:$0xff] }
  0x41   :  { %v608_v58 = vld [vmem:[#allocation6 + $0x138] sm:$0xff] }
  0x42   :  { %v2117_v15 = vadd.f32 %v2116_v10, %v1605_v4  ;;  %v1108_v4 = vsub.f32 %v84_v61, %v596_v62  ;;  %v1619_v10 = vmul.f32 %v1107_v63, %v1107_v63  ;;  %v97_v62 = vld [vmem:[#allocation3 + $0x140] sm:$0xff] }
  0x43   :  { %v609_v63 = vld [vmem:[#allocation6 + $0x140] sm:$0xff] }
  0x44   :  { %v2118_v20 = vadd.f32 %v2117_v15, %v1606_v9  ;;  %v1109_v9 = vsub.f32 %v85_v2, %v597_v3  ;;  %v1620_v15 = vmul.f32 %v1108_v4, %v1108_v4  ;;  %v98_v3 = vld [vmem:[#allocation3 + $0x148] sm:$0xff] }
  0x45   :  { %v610_v4 = vld [vmem:[#allocation6 + $0x148] sm:$0xff] }
  0x46   :  { %v2119_v25 = vadd.f32 %v2118_v20, %v1607_v14  ;;  %v1110_v14 = vsub.f32 %v86_v7, %v598_v8  ;;  %v1621_v20 = vmul.f32 %v1109_v9, %v1109_v9  ;;  %v99_v8 = vld [vmem:[#allocation3 + $0x150] sm:$0xff] }
  0x47   :  { %v611_v9 = vld [vmem:[#allocation6 + $0x150] sm:$0xff] }
  0x48   :  { %v2120_v30 = vadd.f32 %v2119_v25, %v1608_v19  ;;  %v1111_v19 = vsub.f32 %v87_v12, %v599_v13  ;;  %v1622_v25 = vmul.f32 %v1110_v14, %v1110_v14  ;;  %v100_v13 = vld [vmem:[#allocation3 + $0x158] sm:$0xff] }
  0x49   :  { %v612_v14 = vld [vmem:[#allocation6 + $0x158] sm:$0xff] }
  0x4a   :  { %v2121_v35 = vadd.f32 %v2120_v30, %v1609_v24  ;;  %v1112_v24 = vsub.f32 %v88_v17, %v600_v18  ;;  %v1623_v30 = vmul.f32 %v1111_v19, %v1111_v19  ;;  %v101_v18 = vld [vmem:[#allocation3 + $0x160] sm:$0xff] }
  0x4b   :  { %v613_v19 = vld [vmem:[#allocation6 + $0x160] sm:$0xff] }
  0x4c   :  { %v2122_v40 = vadd.f32 %v2121_v35, %v1610_v29  ;;  %v1113_v29 = vsub.f32 %v89_v22, %v601_v23  ;;  %v1624_v35 = vmul.f32 %v1112_v24, %v1112_v24  ;;  %v102_v23 = vld [vmem:[#allocation3 + $0x168] sm:$0xff] }
  0x4d   :  { %v614_v24 = vld [vmem:[#allocation6 + $0x168] sm:$0xff] }
  0x4e   :  { %v2123_v45 = vadd.f32 %v2122_v40, %v1611_v34  ;;  %v1114_v34 = vsub.f32 %v90_v27, %v602_v28  ;;  %v1625_v40 = vmul.f32 %v1113_v29, %v1113_v29  ;;  %v103_v28 = vld [vmem:[#allocation3 + $0x170] sm:$0xff] }
  0x4f   :  { %v615_v29 = vld [vmem:[#allocation6 + $0x170] sm:$0xff] }
  0x50   :  { %v2124_v50 = vadd.f32 %v2123_v45, %v1612_v39  ;;  %v1115_v39 = vsub.f32 %v91_v32, %v603_v33  ;;  %v1626_v45 = vmul.f32 %v1114_v34, %v1114_v34  ;;  %v104_v33 = vld [vmem:[#allocation3 + $0x178] sm:$0xff] }
  0x51   :  { %v616_v34 = vld [vmem:[#allocation6 + $0x178] sm:$0xff] }
  0x52   :  { %v2125_v55 = vadd.f32 %v2124_v50, %v1613_v44  ;;  %v1116_v44 = vsub.f32 %v92_v37, %v604_v38  ;;  %v1627_v50 = vmul.f32 %v1115_v39, %v1115_v39  ;;  %v105_v38 = vld [vmem:[#allocation3 + $0x180] sm:$0xff] }
  0x53   :  { %v617_v39 = vld [vmem:[#allocation6 + $0x180] sm:$0xff] }
  0x54   :  { %v2126_v60 = vadd.f32 %v2125_v55, %v1614_v49  ;;  %v1117_v49 = vsub.f32 %v93_v42, %v605_v43  ;;  %v1628_v55 = vmul.f32 %v1116_v44, %v1116_v44  ;;  %v106_v43 = vld [vmem:[#allocation3 + $0x188] sm:$0xff] }
  0x55   :  { %v618_v44 = vld [vmem:[#allocation6 + $0x188] sm:$0xff] }
  0x56   :  { %v2127_v1 = vadd.f32 %v2126_v60, %v1615_v54  ;;  %v1118_v54 = vsub.f32 %v94_v47, %v606_v48  ;;  %v1629_v60 = vmul.f32 %v1117_v49, %v1117_v49  ;;  %v107_v48 = vld [vmem:[#allocation3 + $0x190] sm:$0xff] }
  0x57   :  { %v619_v49 = vld [vmem:[#allocation6 + $0x190] sm:$0xff] }
  0x58   :  { %v2128_v6 = vadd.f32 %v2127_v1, %v1616_v59  ;;  %v1119_v59 = vsub.f32 %v95_v52, %v607_v53  ;;  %v1630_v1 = vmul.f32 %v1118_v54, %v1118_v54  ;;  %v108_v53 = vld [vmem:[#allocation3 + $0x198] sm:$0xff] }
  0x59   :  { %v620_v54 = vld [vmem:[#allocation6 + $0x198] sm:$0xff] }
  0x5a   :  { %v2129_v11 = vadd.f32 %v2128_v6, %v1617_v0  ;;  %v1120_v0 = vsub.f32 %v96_v57, %v608_v58  ;;  %v1631_v6 = vmul.f32 %v1119_v59, %v1119_v59  ;;  %v109_v58 = vld [vmem:[#allocation3 + $0x1a0] sm:$0xff] }
  0x5b   :  { %v621_v59 = vld [vmem:[#allocation6 + $0x1a0] sm:$0xff] }
  0x5c   :  { %v2130_v16 = vadd.f32 %v2129_v11, %v1618_v5  ;;  %v1121_v5 = vsub.f32 %v97_v62, %v609_v63  ;;  %v1632_v11 = vmul.f32 %v1120_v0, %v1120_v0  ;;  %v110_v63 = vld [vmem:[#allocation3 + $0x1a8] sm:$0xff] }
  0x5d   :  { %v622_v0 = vld [vmem:[#allocation6 + $0x1a8] sm:$0xff] }
  0x5e   :  { %v2131_v21 = vadd.f32 %v2130_v16, %v1619_v10  ;;  %v1122_v10 = vsub.f32 %v98_v3, %v610_v4  ;;  %v1633_v16 = vmul.f32 %v1121_v5, %v1121_v5  ;;  %v111_v4 = vld [vmem:[#allocation3 + $0x1b0] sm:$0xff] }
  0x5f   :  { %v623_v5 = vld [vmem:[#allocation6 + $0x1b0] sm:$0xff] }
  0x60   :  { %v2132_v26 = vadd.f32 %v2131_v21, %v1620_v15  ;;  %v1123_v15 = vsub.f32 %v99_v8, %v611_v9  ;;  %v1634_v21 = vmul.f32 %v1122_v10, %v1122_v10  ;;  %v112_v9 = vld [vmem:[#allocation3 + $0x1b8] sm:$0xff] }
  0x61   :  { %v624_v10 = vld [vmem:[#allocation6 + $0x1b8] sm:$0xff] }
  0x62   :  { %v2133_v31 = vadd.f32 %v2132_v26, %v1621_v20  ;;  %v1124_v20 = vsub.f32 %v100_v13, %v612_v14  ;;  %v1635_v26 = vmul.f32 %v1123_v15, %v1123_v15  ;;  %v113_v14 = vld [vmem:[#allocation3 + $0x1c0] sm:$0xff] }
  0x63   :  { %v625_v15 = vld [vmem:[#allocation6 + $0x1c0] sm:$0xff] }
  0x64   :  { %v2134_v36 = vadd.f32 %v2133_v31, %v1622_v25  ;;  %v1125_v25 = vsub.f32 %v101_v18, %v613_v19  ;;  %v1636_v31 = vmul.f32 %v1124_v20, %v1124_v20  ;;  %v114_v19 = vld [vmem:[#allocation3 + $0x1c8] sm:$0xff] }
  0x65   :  { %v626_v20 = vld [vmem:[#allocation6 + $0x1c8] sm:$0xff] }
  0x66   :  { %v2135_v41 = vadd.f32 %v2134_v36, %v1623_v30  ;;  %v1126_v30 = vsub.f32 %v102_v23, %v614_v24  ;;  %v1637_v36 = vmul.f32 %v1125_v25, %v1125_v25  ;;  %v115_v24 = vld [vmem:[#allocation3 + $0x1d0] sm:$0xff] }
  0x67   :  { %v627_v25 = vld [vmem:[#allocation6 + $0x1d0] sm:$0xff] }
  0x68   :  { %v2136_v46 = vadd.f32 %v2135_v41, %v1624_v35  ;;  %v1127_v35 = vsub.f32 %v103_v28, %v615_v29  ;;  %v1638_v41 = vmul.f32 %v1126_v30, %v1126_v30  ;;  %v116_v29 = vld [vmem:[#allocation3 + $0x1d8] sm:$0xff] }
  0x69   :  { %v628_v30 = vld [vmem:[#allocation6 + $0x1d8] sm:$0xff] }
  0x6a   :  { %v2137_v51 = vadd.f32 %v2136_v46, %v1625_v40  ;;  %v1128_v40 = vsub.f32 %v104_v33, %v616_v34  ;;  %v1639_v46 = vmul.f32 %v1127_v35, %v1127_v35  ;;  %v117_v34 = vld [vmem:[#allocation3 + $0x1e0] sm:$0xff] }
  0x6b   :  { %v629_v35 = vld [vmem:[#allocation6 + $0x1e0] sm:$0xff] }
  0x6c   :  { %v2138_v56 = vadd.f32 %v2137_v51, %v1626_v45  ;;  %v1129_v45 = vsub.f32 %v105_v38, %v617_v39  ;;  %v1640_v51 = vmul.f32 %v1128_v40, %v1128_v40  ;;  %v118_v39 = vld [vmem:[#allocation3 + $0x1e8] sm:$0xff] }
  0x6d   :  { %v630_v40 = vld [vmem:[#allocation6 + $0x1e8] sm:$0xff] }
  0x6e   :  { %v2139_v61 = vadd.f32 %v2138_v56, %v1627_v50  ;;  %v1130_v50 = vsub.f32 %v106_v43, %v618_v44  ;;  %v1641_v56 = vmul.f32 %v1129_v45, %v1129_v45  ;;  %v119_v44 = vld [vmem:[#allocation3 + $0x1f0] sm:$0xff] }
  0x6f   :  { %v631_v45 = vld [vmem:[#allocation6 + $0x1f0] sm:$0xff] }
  0x70   :  { %v2140_v2 = vadd.f32 %v2139_v61, %v1628_v55  ;;  %v1131_v55 = vsub.f32 %v107_v48, %v619_v49  ;;  %v1642_v61 = vmul.f32 %v1130_v50, %v1130_v50  ;;  %v120_v49 = vld [vmem:[#allocation3 + $0x1f8] sm:$0xff] }
  0x71   :  { %v632_v50 = vld [vmem:[#allocation6 + $0x1f8] sm:$0xff] }
  0x72   :  { %v2141_v7 = vadd.f32 %v2140_v2, %v1629_v60  ;;  %v1132_v60 = vsub.f32 %v108_v53, %v620_v54  ;;  %v1643_v2 = vmul.f32 %v1131_v55, %v1131_v55  ;;  %v121_v54 = vld [vmem:[#allocation3 + $0x200] sm:$0xff] }
  0x73   :  { %v633_v55 = vld [vmem:[#allocation6 + $0x200] sm:$0xff] }
  0x74   :  { %v2142_v12 = vadd.f32 %v2141_v7, %v1630_v1  ;;  %v1133_v1 = vsub.f32 %v109_v58, %v621_v59  ;;  %v1644_v7 = vmul.f32 %v1132_v60, %v1132_v60  ;;  %v122_v59 = vld [vmem:[#allocation3 + $0x208] sm:$0xff] }
  0x75   :  { %v634_v60 = vld [vmem:[#allocation6 + $0x208] sm:$0xff] }
  0x76   :  { %v2143_v17 = vadd.f32 %v2142_v12, %v1631_v6  ;;  %v1134_v6 = vsub.f32 %v110_v63, %v622_v0  ;;  %v1645_v12 = vmul.f32 %v1133_v1, %v1133_v1  ;;  %v123_v0 = vld [vmem:[#allocation3 + $0x210] sm:$0xff] }
  0x77   :  { %v635_v1 = vld [vmem:[#allocation6 + $0x210] sm:$0xff] }
  0x78   :  { %v2144_v22 = vadd.f32 %v2143_v17, %v1632_v11  ;;  %v1135_v11 = vsub.f32 %v111_v4, %v623_v5  ;;  %v1646_v17 = vmul.f32 %v1134_v6, %v1134_v6  ;;  %v124_v5 = vld [vmem:[#allocation3 + $0x218] sm:$0xff] }
  0x79   :  { %v636_v6 = vld [vmem:[#allocation6 + $0x218] sm:$0xff] }
  0x7a   :  { %v2145_v27 = vadd.f32 %v2144_v22, %v1633_v16  ;;  %v1136_v16 = vsub.f32 %v112_v9, %v624_v10  ;;  %v1647_v22 = vmul.f32 %v1135_v11, %v1135_v11  ;;  %v125_v10 = vld [vmem:[#allocation3 + $0x220] sm:$0xff] }
  0x7b   :  { %v637_v11 = vld [vmem:[#allocation6 + $0x220] sm:$0xff] }
  0x7c   :  { %v2146_v32 = vadd.f32 %v2145_v27, %v1634_v21  ;;  %v1137_v21 = vsub.f32 %v113_v14, %v625_v15  ;;  %v1648_v27 = vmul.f32 %v1136_v16, %v1136_v16  ;;  %v126_v15 = vld [vmem:[#allocation3 + $0x228] sm:$0xff] }
  0x7d   :  { %v638_v16 = vld [vmem:[#allocation6 + $0x228] sm:$0xff] }
  0x7e   :  { %v2147_v37 = vadd.f32 %v2146_v32, %v1635_v26  ;;  %v1138_v26 = vsub.f32 %v114_v19, %v626_v20  ;;  %v1649_v32 = vmul.f32 %v1137_v21, %v1137_v21  ;;  %v127_v20 = vld [vmem:[#allocation3 + $0x230] sm:$0xff] }
  0x7f   :  { %v639_v21 = vld [vmem:[#allocation6 + $0x230] sm:$0xff] }
  0x80   :  { %v2148_v42 = vadd.f32 %v2147_v37, %v1636_v31  ;;  %v1139_v31 = vsub.f32 %v115_v24, %v627_v25  ;;  %v1650_v37 = vmul.f32 %v1138_v26, %v1138_v26  ;;  %v128_v25 = vld [vmem:[#allocation3 + $0x238] sm:$0xff] }
  0x81   :  { %v640_v26 = vld [vmem:[#allocation6 + $0x238] sm:$0xff] }
  0x82   :  { %v2149_v47 = vadd.f32 %v2148_v42, %v1637_v36  ;;  %v1140_v36 = vsub.f32 %v116_v29, %v628_v30  ;;  %v1651_v42 = vmul.f32 %v1139_v31, %v1139_v31  ;;  %v129_v30 = vld [vmem:[#allocation3 + $0x240] sm:$0xff] }
  0x83   :  { %v641_v31 = vld [vmem:[#allocation6 + $0x240] sm:$0xff] }
  0x84   :  { %v2150_v52 = vadd.f32 %v2149_v47, %v1638_v41  ;;  %v1141_v41 = vsub.f32 %v117_v34, %v629_v35  ;;  %v1652_v47 = vmul.f32 %v1140_v36, %v1140_v36  ;;  %v130_v35 = vld [vmem:[#allocation3 + $0x248] sm:$0xff] }
  0x85   :  { %v642_v36 = vld [vmem:[#allocation6 + $0x248] sm:$0xff] }
  0x86   :  { %v2151_v57 = vadd.f32 %v2150_v52, %v1639_v46  ;;  %v1142_v46 = vsub.f32 %v118_v39, %v630_v40  ;;  %v1653_v52 = vmul.f32 %v1141_v41, %v1141_v41  ;;  %v131_v40 = vld [vmem:[#allocation3 + $0x250] sm:$0xff] }
  0x87   :  { %v643_v41 = vld [vmem:[#allocation6 + $0x250] sm:$0xff] }
  0x88   :  { %v2152_v62 = vadd.f32 %v2151_v57, %v1640_v51  ;;  %v1143_v51 = vsub.f32 %v119_v44, %v631_v45  ;;  %v1654_v57 = vmul.f32 %v1142_v46, %v1142_v46  ;;  %v132_v45 = vld [vmem:[#allocation3 + $0x258] sm:$0xff] }
  0x89   :  { %v644_v46 = vld [vmem:[#allocation6 + $0x258] sm:$0xff] }
  0x8a   :  { %v2153_v3 = vadd.f32 %v2152_v62, %v1641_v56  ;;  %v1144_v56 = vsub.f32 %v120_v49, %v632_v50  ;;  %v1655_v62 = vmul.f32 %v1143_v51, %v1143_v51  ;;  %v133_v50 = vld [vmem:[#allocation3 + $0x260] sm:$0xff] }
  0x8b   :  { %v645_v51 = vld [vmem:[#allocation6 + $0x260] sm:$0xff] }
  0x8c   :  { %v2154_v8 = vadd.f32 %v2153_v3, %v1642_v61  ;;  %v1145_v61 = vsub.f32 %v121_v54, %v633_v55  ;;  %v1656_v3 = vmul.f32 %v1144_v56, %v1144_v56  ;;  %v134_v55 = vld [vmem:[#allocation3 + $0x268] sm:$0xff] }
  0x8d   :  { %v646_v56 = vld [vmem:[#allocation6 + $0x268] sm:$0xff] }
  0x8e   :  { %v2155_v13 = vadd.f32 %v2154_v8, %v1643_v2  ;;  %v1146_v2 = vsub.f32 %v122_v59, %v634_v60  ;;  %v1657_v8 = vmul.f32 %v1145_v61, %v1145_v61  ;;  %v135_v60 = vld [vmem:[#allocation3 + $0x270] sm:$0xff] }
  0x8f   :  { %v647_v61 = vld [vmem:[#allocation6 + $0x270] sm:$0xff] }
  0x90   :  { %v2156_v18 = vadd.f32 %v2155_v13, %v1644_v7  ;;  %v1147_v7 = vsub.f32 %v123_v0, %v635_v1  ;;  %v1658_v13 = vmul.f32 %v1146_v2, %v1146_v2  ;;  %v136_v1 = vld [vmem:[#allocation3 + $0x278] sm:$0xff] }
  0x91   :  { %v648_v2 = vld [vmem:[#allocation6 + $0x278] sm:$0xff] }
  0x92   :  { %v2157_v23 = vadd.f32 %v2156_v18, %v1645_v12  ;;  %v1148_v12 = vsub.f32 %v124_v5, %v636_v6  ;;  %v1659_v18 = vmul.f32 %v1147_v7, %v1147_v7  ;;  %v137_v6 = vld [vmem:[#allocation3 + $0x280] sm:$0xff] }
  0x93   :  { %v649_v7 = vld [vmem:[#allocation6 + $0x280] sm:$0xff] }
  0x94   :  { %v2158_v28 = vadd.f32 %v2157_v23, %v1646_v17  ;;  %v1149_v17 = vsub.f32 %v125_v10, %v637_v11  ;;  %v1660_v23 = vmul.f32 %v1148_v12, %v1148_v12  ;;  %v138_v11 = vld [vmem:[#allocation3 + $0x288] sm:$0xff] }
  0x95   :  { %v650_v12 = vld [vmem:[#allocation6 + $0x288] sm:$0xff] }
  0x96   :  { %v2159_v33 = vadd.f32 %v2158_v28, %v1647_v22  ;;  %v1150_v22 = vsub.f32 %v126_v15, %v638_v16  ;;  %v1661_v28 = vmul.f32 %v1149_v17, %v1149_v17  ;;  %v139_v16 = vld [vmem:[#allocation3 + $0x290] sm:$0xff] }
  0x97   :  { %v651_v17 = vld [vmem:[#allocation6 + $0x290] sm:$0xff] }
  0x98   :  { %v2160_v38 = vadd.f32 %v2159_v33, %v1648_v27  ;;  %v1151_v27 = vsub.f32 %v127_v20, %v639_v21  ;;  %v1662_v33 = vmul.f32 %v1150_v22, %v1150_v22  ;;  %v140_v21 = vld [vmem:[#allocation3 + $0x298] sm:$0xff] }
  0x99   :  { %v652_v22 = vld [vmem:[#allocation6 + $0x298] sm:$0xff] }
  0x9a   :  { %v2161_v43 = vadd.f32 %v2160_v38, %v1649_v32  ;;  %v1152_v32 = vsub.f32 %v128_v25, %v640_v26  ;;  %v1663_v38 = vmul.f32 %v1151_v27, %v1151_v27  ;;  %v141_v26 = vld [vmem:[#allocation3 + $0x2a0] sm:$0xff] }
  0x9b   :  { %v653_v27 = vld [vmem:[#allocation6 + $0x2a0] sm:$0xff] }
  0x9c   :  { %v2162_v48 = vadd.f32 %v2161_v43, %v1650_v37  ;;  %v1153_v37 = vsub.f32 %v129_v30, %v641_v31  ;;  %v1664_v43 = vmul.f32 %v1152_v32, %v1152_v32  ;;  %v142_v31 = vld [vmem:[#allocation3 + $0x2a8] sm:$0xff] }
  0x9d   :  { %v654_v32 = vld [vmem:[#allocation6 + $0x2a8] sm:$0xff] }
  0x9e   :  { %v2163_v53 = vadd.f32 %v2162_v48, %v1651_v42  ;;  %v1154_v42 = vsub.f32 %v130_v35, %v642_v36  ;;  %v1665_v48 = vmul.f32 %v1153_v37, %v1153_v37  ;;  %v143_v36 = vld [vmem:[#allocation3 + $0x2b0] sm:$0xff] }
  0x9f   :  { %v655_v37 = vld [vmem:[#allocation6 + $0x2b0] sm:$0xff] }
  0xa0   :  { %v2164_v58 = vadd.f32 %v2163_v53, %v1652_v47  ;;  %v1155_v47 = vsub.f32 %v131_v40, %v643_v41  ;;  %v1666_v53 = vmul.f32 %v1154_v42, %v1154_v42  ;;  %v144_v41 = vld [vmem:[#allocation3 + $0x2b8] sm:$0xff] }
  0xa1   :  { %v656_v42 = vld [vmem:[#allocation6 + $0x2b8] sm:$0xff] }
  0xa2   :  { %v2165_v63 = vadd.f32 %v2164_v58, %v1653_v52  ;;  %v1156_v52 = vsub.f32 %v132_v45, %v644_v46  ;;  %v1667_v58 = vmul.f32 %v1155_v47, %v1155_v47  ;;  %v145_v46 = vld [vmem:[#allocation3 + $0x2c0] sm:$0xff] }
  0xa3   :  { %v657_v47 = vld [vmem:[#allocation6 + $0x2c0] sm:$0xff] }
  0xa4   :  { %v2166_v4 = vadd.f32 %v2165_v63, %v1654_v57  ;;  %v1157_v57 = vsub.f32 %v133_v50, %v645_v51  ;;  %v1668_v63 = vmul.f32 %v1156_v52, %v1156_v52  ;;  %v146_v51 = vld [vmem:[#allocation3 + $0x2c8] sm:$0xff] }
  0xa5   :  { %v658_v52 = vld [vmem:[#allocation6 + $0x2c8] sm:$0xff] }
  0xa6   :  { %v2167_v9 = vadd.f32 %v2166_v4, %v1655_v62  ;;  %v1158_v62 = vsub.f32 %v134_v55, %v646_v56  ;;  %v1669_v4 = vmul.f32 %v1157_v57, %v1157_v57  ;;  %v147_v56 = vld [vmem:[#allocation3 + $0x2d0] sm:$0xff] }
  0xa7   :  { %v659_v57 = vld [vmem:[#allocation6 + $0x2d0] sm:$0xff] }
  0xa8   :  { %v2168_v14 = vadd.f32 %v2167_v9, %v1656_v3  ;;  %v1159_v3 = vsub.f32 %v135_v60, %v647_v61  ;;  %v1670_v9 = vmul.f32 %v1158_v62, %v1158_v62  ;;  %v148_v61 = vld [vmem:[#allocation3 + $0x2d8] sm:$0xff] }
  0xa9   :  { %v660_v62 = vld [vmem:[#allocation6 + $0x2d8] sm:$0xff] }
  0xaa   :  { %v2169_v19 = vadd.f32 %v2168_v14, %v1657_v8  ;;  %v1160_v8 = vsub.f32 %v136_v1, %v648_v2  ;;  %v1671_v14 = vmul.f32 %v1159_v3, %v1159_v3  ;;  %v149_v2 = vld [vmem:[#allocation3 + $0x2e0] sm:$0xff] }
  0xab   :  { %v661_v3 = vld [vmem:[#allocation6 + $0x2e0] sm:$0xff] }
  0xac   :  { %v2170_v24 = vadd.f32 %v2169_v19, %v1658_v13  ;;  %v1161_v13 = vsub.f32 %v137_v6, %v649_v7  ;;  %v1672_v19 = vmul.f32 %v1160_v8, %v1160_v8  ;;  %v150_v7 = vld [vmem:[#allocation3 + $0x2e8] sm:$0xff] }
  0xad   :  { %v662_v8 = vld [vmem:[#allocation6 + $0x2e8] sm:$0xff] }
  0xae   :  { %v2171_v29 = vadd.f32 %v2170_v24, %v1659_v18  ;;  %v1162_v18 = vsub.f32 %v138_v11, %v650_v12  ;;  %v1673_v24 = vmul.f32 %v1161_v13, %v1161_v13  ;;  %v151_v12 = vld [vmem:[#allocation3 + $0x2f0] sm:$0xff] }
  0xaf   :  { %v663_v13 = vld [vmem:[#allocation6 + $0x2f0] sm:$0xff] }
  0xb0   :  { %v2172_v34 = vadd.f32 %v2171_v29, %v1660_v23  ;;  %v1163_v23 = vsub.f32 %v139_v16, %v651_v17  ;;  %v1674_v29 = vmul.f32 %v1162_v18, %v1162_v18  ;;  %v152_v17 = vld [vmem:[#allocation3 + $0x2f8] sm:$0xff] }
  0xb1   :  { %v664_v18 = vld [vmem:[#allocation6 + $0x2f8] sm:$0xff] }
  0xb2   :  { %v2173_v39 = vadd.f32 %v2172_v34, %v1661_v28  ;;  %v1164_v28 = vsub.f32 %v140_v21, %v652_v22  ;;  %v1675_v34 = vmul.f32 %v1163_v23, %v1163_v23  ;;  %v153_v22 = vld [vmem:[#allocation3 + $0x300] sm:$0xff] }
  0xb3   :  { %v665_v23 = vld [vmem:[#allocation6 + $0x300] sm:$0xff] }
  0xb4   :  { %v2174_v44 = vadd.f32 %v2173_v39, %v1662_v33  ;;  %v1165_v33 = vsub.f32 %v141_v26, %v653_v27  ;;  %v1676_v39 = vmul.f32 %v1164_v28, %v1164_v28  ;;  %v154_v27 = vld [vmem:[#allocation3 + $0x308] sm:$0xff] }
  0xb5   :  { %v666_v28 = vld [vmem:[#allocation6 + $0x308] sm:$0xff] }
  0xb6   :  { %v2175_v49 = vadd.f32 %v2174_v44, %v1663_v38  ;;  %v1166_v38 = vsub.f32 %v142_v31, %v654_v32  ;;  %v1677_v44 = vmul.f32 %v1165_v33, %v1165_v33  ;;  %v155_v32 = vld [vmem:[#allocation3 + $0x310] sm:$0xff] }
  0xb7   :  { %v667_v33 = vld [vmem:[#allocation6 + $0x310] sm:$0xff] }
  0xb8   :  { %v2176_v54 = vadd.f32 %v2175_v49, %v1664_v43  ;;  %v1167_v43 = vsub.f32 %v143_v36, %v655_v37  ;;  %v1678_v49 = vmul.f32 %v1166_v38, %v1166_v38  ;;  %v156_v37 = vld [vmem:[#allocation3 + $0x318] sm:$0xff] }
  0xb9   :  { %v668_v38 = vld [vmem:[#allocation6 + $0x318] sm:$0xff] }
  0xba   :  { %v2177_v59 = vadd.f32 %v2176_v54, %v1665_v48  ;;  %v1168_v48 = vsub.f32 %v144_v41, %v656_v42  ;;  %v1679_v54 = vmul.f32 %v1167_v43, %v1167_v43  ;;  %v157_v42 = vld [vmem:[#allocation3 + $0x320] sm:$0xff] }
  0xbb   :  { %v669_v43 = vld [vmem:[#allocation6 + $0x320] sm:$0xff] }
  0xbc   :  { %v2178_v0 = vadd.f32 %v2177_v59, %v1666_v53  ;;  %v1169_v53 = vsub.f32 %v145_v46, %v657_v47  ;;  %v1680_v59 = vmul.f32 %v1168_v48, %v1168_v48  ;;  %v158_v47 = vld [vmem:[#allocation3 + $0x328] sm:$0xff] }
  0xbd   :  { %v670_v48 = vld [vmem:[#allocation6 + $0x328] sm:$0xff] }
  0xbe   :  { %v2179_v5 = vadd.f32 %v2178_v0, %v1667_v58  ;;  %v1170_v58 = vsub.f32 %v146_v51, %v658_v52  ;;  %v1681_v0 = vmul.f32 %v1169_v53, %v1169_v53  ;;  %v159_v52 = vld [vmem:[#allocation3 + $0x330] sm:$0xff] }
  0xbf   :  { %v671_v53 = vld [vmem:[#allocation6 + $0x330] sm:$0xff] }
  0xc0   :  { %v2180_v10 = vadd.f32 %v2179_v5, %v1668_v63  ;;  %v1171_v63 = vsub.f32 %v147_v56, %v659_v57  ;;  %v1682_v5 = vmul.f32 %v1170_v58, %v1170_v58  ;;  %v160_v57 = vld [vmem:[#allocation3 + $0x338] sm:$0xff] }
  0xc1   :  { %v672_v58 = vld [vmem:[#allocation6 + $0x338] sm:$0xff] }
  0xc2   :  { %v2181_v15 = vadd.f32 %v2180_v10, %v1669_v4  ;;  %v1172_v4 = vsub.f32 %v148_v61, %v660_v62  ;;  %v1683_v10 = vmul.f32 %v1171_v63, %v1171_v63  ;;  %v161_v62 = vld [vmem:[#allocation3 + $0x340] sm:$0xff] }
  0xc3   :  { %v673_v63 = vld [vmem:[#allocation6 + $0x340] sm:$0xff] }
  0xc4   :  { %v2182_v20 = vadd.f32 %v2181_v15, %v1670_v9  ;;  %v1173_v9 = vsub.f32 %v149_v2, %v661_v3  ;;  %v1684_v15 = vmul.f32 %v1172_v4, %v1172_v4  ;;  %v162_v3 = vld [vmem:[#allocation3 + $0x348] sm:$0xff] }
  0xc5   :  { %v674_v4 = vld [vmem:[#allocation6 + $0x348] sm:$0xff] }
  0xc6   :  { %v2183_v25 = vadd.f32 %v2182_v20, %v1671_v14  ;;  %v1174_v14 = vsub.f32 %v150_v7, %v662_v8  ;;  %v1685_v20 = vmul.f32 %v1173_v9, %v1173_v9  ;;  %v163_v8 = vld [vmem:[#allocation3 + $0x350] sm:$0xff] }
  0xc7   :  { %v675_v9 = vld [vmem:[#allocation6 + $0x350] sm:$0xff] }
  0xc8   :  { %v2184_v30 = vadd.f32 %v2183_v25, %v1672_v19  ;;  %v1175_v19 = vsub.f32 %v151_v12, %v663_v13  ;;  %v1686_v25 = vmul.f32 %v1174_v14, %v1174_v14  ;;  %v164_v13 = vld [vmem:[#allocation3 + $0x358] sm:$0xff] }
  0xc9   :  { %v676_v14 = vld [vmem:[#allocation6 + $0x358] sm:$0xff] }
  0xca   :  { %v2185_v35 = vadd.f32 %v2184_v30, %v1673_v24  ;;  %v1176_v24 = vsub.f32 %v152_v17, %v664_v18  ;;  %v1687_v30 = vmul.f32 %v1175_v19, %v1175_v19  ;;  %v165_v18 = vld [vmem:[#allocation3 + $0x360] sm:$0xff] }
  0xcb   :  { %v677_v19 = vld [vmem:[#allocation6 + $0x360] sm:$0xff] }
  0xcc   :  { %v2186_v40 = vadd.f32 %v2185_v35, %v1674_v29  ;;  %v1177_v29 = vsub.f32 %v153_v22, %v665_v23  ;;  %v1688_v35 = vmul.f32 %v1176_v24, %v1176_v24  ;;  %v166_v23 = vld [vmem:[#allocation3 + $0x368] sm:$0xff] }
  0xcd   :  { %v678_v24 = vld [vmem:[#allocation6 + $0x368] sm:$0xff] }
  0xce   :  { %v2187_v45 = vadd.f32 %v2186_v40, %v1675_v34  ;;  %v1178_v34 = vsub.f32 %v154_v27, %v666_v28  ;;  %v1689_v40 = vmul.f32 %v1177_v29, %v1177_v29  ;;  %v167_v28 = vld [vmem:[#allocation3 + $0x370] sm:$0xff] }
  0xcf   :  { %v679_v29 = vld [vmem:[#allocation6 + $0x370] sm:$0xff] }
  0xd0   :  { %v2188_v50 = vadd.f32 %v2187_v45, %v1676_v39  ;;  %v1179_v39 = vsub.f32 %v155_v32, %v667_v33  ;;  %v1690_v45 = vmul.f32 %v1178_v34, %v1178_v34  ;;  %v168_v33 = vld [vmem:[#allocation3 + $0x378] sm:$0xff] }
  0xd1   :  { %v680_v34 = vld [vmem:[#allocation6 + $0x378] sm:$0xff] }
  0xd2   :  { %v2189_v55 = vadd.f32 %v2188_v50, %v1677_v44  ;;  %v1180_v44 = vsub.f32 %v156_v37, %v668_v38  ;;  %v1691_v50 = vmul.f32 %v1179_v39, %v1179_v39  ;;  %v169_v38 = vld [vmem:[#allocation3 + $0x380] sm:$0xff] }
  0xd3   :  { %v681_v39 = vld [vmem:[#allocation6 + $0x380] sm:$0xff] }
  0xd4   :  { %v2190_v60 = vadd.f32 %v2189_v55, %v1678_v49  ;;  %v1181_v49 = vsub.f32 %v157_v42, %v669_v43  ;;  %v1692_v55 = vmul.f32 %v1180_v44, %v1180_v44  ;;  %v170_v43 = vld [vmem:[#allocation3 + $0x388] sm:$0xff] }
  0xd5   :  { %v682_v44 = vld [vmem:[#allocation6 + $0x388] sm:$0xff] }
  0xd6   :  { %v2191_v1 = vadd.f32 %v2190_v60, %v1679_v54  ;;  %v1182_v54 = vsub.f32 %v158_v47, %v670_v48  ;;  %v1693_v60 = vmul.f32 %v1181_v49, %v1181_v49  ;;  %v171_v48 = vld [vmem:[#allocation3 + $0x390] sm:$0xff] }
  0xd7   :  { %v683_v49 = vld [vmem:[#allocation6 + $0x390] sm:$0xff] }
  0xd8   :  { %v2192_v6 = vadd.f32 %v2191_v1, %v1680_v59  ;;  %v1183_v59 = vsub.f32 %v159_v52, %v671_v53  ;;  %v1694_v1 = vmul.f32 %v1182_v54, %v1182_v54  ;;  %v172_v53 = vld [vmem:[#allocation3 + $0x398] sm:$0xff] }
  0xd9   :  { %v684_v54 = vld [vmem:[#allocation6 + $0x398] sm:$0xff] }
  0xda   :  { %v2193_v11 = vadd.f32 %v2192_v6, %v1681_v0  ;;  %v1184_v0 = vsub.f32 %v160_v57, %v672_v58  ;;  %v1695_v6 = vmul.f32 %v1183_v59, %v1183_v59  ;;  %v173_v58 = vld [vmem:[#allocation3 + $0x3a0] sm:$0xff] }
  0xdb   :  { %v685_v59 = vld [vmem:[#allocation6 + $0x3a0] sm:$0xff] }
  0xdc   :  { %v2194_v16 = vadd.f32 %v2193_v11, %v1682_v5  ;;  %v1185_v5 = vsub.f32 %v161_v62, %v673_v63  ;;  %v1696_v11 = vmul.f32 %v1184_v0, %v1184_v0  ;;  %v174_v63 = vld [vmem:[#allocation3 + $0x3a8] sm:$0xff] }
  0xdd   :  { %v686_v0 = vld [vmem:[#allocation6 + $0x3a8] sm:$0xff] }
  0xde   :  { %v2195_v21 = vadd.f32 %v2194_v16, %v1683_v10  ;;  %v1186_v10 = vsub.f32 %v162_v3, %v674_v4  ;;  %v1697_v16 = vmul.f32 %v1185_v5, %v1185_v5  ;;  %v175_v4 = vld [vmem:[#allocation3 + $0x3b0] sm:$0xff] }
  0xdf   :  { %v687_v5 = vld [vmem:[#allocation6 + $0x3b0] sm:$0xff] }
  0xe0   :  { %v2196_v26 = vadd.f32 %v2195_v21, %v1684_v15  ;;  %v1187_v15 = vsub.f32 %v163_v8, %v675_v9  ;;  %v1698_v21 = vmul.f32 %v1186_v10, %v1186_v10  ;;  %v176_v9 = vld [vmem:[#allocation3 + $0x3b8] sm:$0xff] }
  0xe1   :  { %v688_v10 = vld [vmem:[#allocation6 + $0x3b8] sm:$0xff] }
  0xe2   :  { %v2197_v31 = vadd.f32 %v2196_v26, %v1685_v20  ;;  %v1188_v20 = vsub.f32 %v164_v13, %v676_v14  ;;  %v1699_v26 = vmul.f32 %v1187_v15, %v1187_v15  ;;  %v177_v14 = vld [vmem:[#allocation3 + $0x3c0] sm:$0xff] }
  0xe3   :  { %v689_v15 = vld [vmem:[#allocation6 + $0x3c0] sm:$0xff] }
  0xe4   :  { %v2198_v36 = vadd.f32 %v2197_v31, %v1686_v25  ;;  %v1189_v25 = vsub.f32 %v165_v18, %v677_v19  ;;  %v1700_v31 = vmul.f32 %v1188_v20, %v1188_v20  ;;  %v178_v19 = vld [vmem:[#allocation3 + $0x3c8] sm:$0xff] }
  0xe5   :  { %v690_v20 = vld [vmem:[#allocation6 + $0x3c8] sm:$0xff] }
  0xe6   :  { %v2199_v41 = vadd.f32 %v2198_v36, %v1687_v30  ;;  %v1190_v30 = vsub.f32 %v166_v23, %v678_v24  ;;  %v1701_v36 = vmul.f32 %v1189_v25, %v1189_v25  ;;  %v179_v24 = vld [vmem:[#allocation3 + $0x3d0] sm:$0xff] }
  0xe7   :  { %v691_v25 = vld [vmem:[#allocation6 + $0x3d0] sm:$0xff] }
  0xe8   :  { %v2200_v46 = vadd.f32 %v2199_v41, %v1688_v35  ;;  %v1191_v35 = vsub.f32 %v167_v28, %v679_v29  ;;  %v1702_v41 = vmul.f32 %v1190_v30, %v1190_v30  ;;  %v180_v29 = vld [vmem:[#allocation3 + $0x3d8] sm:$0xff] }
  0xe9   :  { %v692_v30 = vld [vmem:[#allocation6 + $0x3d8] sm:$0xff] }
  0xea   :  { %v2201_v51 = vadd.f32 %v2200_v46, %v1689_v40  ;;  %v1192_v40 = vsub.f32 %v168_v33, %v680_v34  ;;  %v1703_v46 = vmul.f32 %v1191_v35, %v1191_v35  ;;  %v181_v34 = vld [vmem:[#allocation3 + $0x3e0] sm:$0xff] }
  0xeb   :  { %v693_v35 = vld [vmem:[#allocation6 + $0x3e0] sm:$0xff] }
  0xec   :  { %v2202_v56 = vadd.f32 %v2201_v51, %v1690_v45  ;;  %v1193_v45 = vsub.f32 %v169_v38, %v681_v39  ;;  %v1704_v51 = vmul.f32 %v1192_v40, %v1192_v40  ;;  %v182_v39 = vld [vmem:[#allocation3 + $0x3e8] sm:$0xff] }
  0xed   :  { %v694_v40 = vld [vmem:[#allocation6 + $0x3e8] sm:$0xff] }
  0xee   :  { %v2203_v61 = vadd.f32 %v2202_v56, %v1691_v50  ;;  %v1194_v50 = vsub.f32 %v170_v43, %v682_v44  ;;  %v1705_v56 = vmul.f32 %v1193_v45, %v1193_v45  ;;  %v183_v44 = vld [vmem:[#allocation3 + $0x3f0] sm:$0xff] }
  0xef   :  { %v695_v45 = vld [vmem:[#allocation6 + $0x3f0] sm:$0xff] }
  0xf0   :  { %v2204_v2 = vadd.f32 %v2203_v61, %v1692_v55  ;;  %v1195_v55 = vsub.f32 %v171_v48, %v683_v49  ;;  %v1706_v61 = vmul.f32 %v1194_v50, %v1194_v50  ;;  %v184_v49 = vld [vmem:[#allocation3 + $0x3f8] sm:$0xff] }
  0xf1   :  { %v696_v50 = vld [vmem:[#allocation6 + $0x3f8] sm:$0xff] }
  0xf2   :  { %v2205_v7 = vadd.f32 %v2204_v2, %v1693_v60  ;;  %v1196_v60 = vsub.f32 %v172_v53, %v684_v54  ;;  %v1707_v2 = vmul.f32 %v1195_v55, %v1195_v55  ;;  %v185_v54 = vld [vmem:[#allocation3 + $0x400] sm:$0xff] }
  0xf3   :  { %v697_v55 = vld [vmem:[#allocation6 + $0x400] sm:$0xff] }
  0xf4   :  { %v2206_v12 = vadd.f32 %v2205_v7, %v1694_v1  ;;  %v1197_v1 = vsub.f32 %v173_v58, %v685_v59  ;;  %v1708_v7 = vmul.f32 %v1196_v60, %v1196_v60  ;;  %v186_v59 = vld [vmem:[#allocation3 + $0x408] sm:$0xff] }
  0xf5   :  { %v698_v60 = vld [vmem:[#allocation6 + $0x408] sm:$0xff] }
  0xf6   :  { %v2207_v17 = vadd.f32 %v2206_v12, %v1695_v6  ;;  %v1198_v6 = vsub.f32 %v174_v63, %v686_v0  ;;  %v1709_v12 = vmul.f32 %v1197_v1, %v1197_v1  ;;  %v187_v0 = vld [vmem:[#allocation3 + $0x410] sm:$0xff] }
  0xf7   :  { %v699_v1 = vld [vmem:[#allocation6 + $0x410] sm:$0xff] }
  0xf8   :  { %v2208_v22 = vadd.f32 %v2207_v17, %v1696_v11  ;;  %v1199_v11 = vsub.f32 %v175_v4, %v687_v5  ;;  %v1710_v17 = vmul.f32 %v1198_v6, %v1198_v6  ;;  %v188_v5 = vld [vmem:[#allocation3 + $0x418] sm:$0xff] }
  0xf9   :  { %v700_v6 = vld [vmem:[#allocation6 + $0x418] sm:$0xff] }
  0xfa   :  { %v2209_v27 = vadd.f32 %v2208_v22, %v1697_v16  ;;  %v1200_v16 = vsub.f32 %v176_v9, %v688_v10  ;;  %v1711_v22 = vmul.f32 %v1199_v11, %v1199_v11  ;;  %v189_v10 = vld [vmem:[#allocation3 + $0x420] sm:$0xff] }
  0xfb   :  { %v701_v11 = vld [vmem:[#allocation6 + $0x420] sm:$0xff] }
  0xfc   :  { %v2210_v32 = vadd.f32 %v2209_v27, %v1698_v21  ;;  %v1201_v21 = vsub.f32 %v177_v14, %v689_v15  ;;  %v1712_v27 = vmul.f32 %v1200_v16, %v1200_v16  ;;  %v190_v15 = vld [vmem:[#allocation3 + $0x428] sm:$0xff] }
  0xfd   :  { %v702_v16 = vld [vmem:[#allocation6 + $0x428] sm:$0xff] }
  0xfe   :  { %v2211_v37 = vadd.f32 %v2210_v32, %v1699_v26  ;;  %v1202_v26 = vsub.f32 %v178_v19, %v690_v20  ;;  %v1713_v32 = vmul.f32 %v1201_v21, %v1201_v21  ;;  %v191_v20 = vld [vmem:[#allocation3 + $0x430] sm:$0xff] }
  0xff   :  { %v703_v21 = vld [vmem:[#allocation6 + $0x430] sm:$0xff] }
 0x100   :  { %v2212_v42 = vadd.f32 %v2211_v37, %v1700_v31  ;;  %v1203_v31 = vsub.f32 %v179_v24, %v691_v25  ;;  %v1714_v37 = vmul.f32 %v1202_v26, %v1202_v26  ;;  %v192_v25 = vld [vmem:[#allocation3 + $0x438] sm:$0xff] }
 0x101   :  { %v704_v26 = vld [vmem:[#allocation6 + $0x438] sm:$0xff] }
 0x102   :  { %v2213_v47 = vadd.f32 %v2212_v42, %v1701_v36  ;;  %v1204_v36 = vsub.f32 %v180_v29, %v692_v30  ;;  %v1715_v42 = vmul.f32 %v1203_v31, %v1203_v31  ;;  %v193_v30 = vld [vmem:[#allocation3 + $0x440] sm:$0xff] }
 0x103   :  { %v705_v31 = vld [vmem:[#allocation6 + $0x440] sm:$0xff] }
 0x104   :  { %v2214_v52 = vadd.f32 %v2213_v47, %v1702_v41  ;;  %v1205_v41 = vsub.f32 %v181_v34, %v693_v35  ;;  %v1716_v47 = vmul.f32 %v1204_v36, %v1204_v36  ;;  %v194_v35 = vld [vmem:[#allocation3 + $0x448] sm:$0xff] }
 0x105   :  { %v706_v36 = vld [vmem:[#allocation6 + $0x448] sm:$0xff] }
 0x106   :  { %v2215_v57 = vadd.f32 %v2214_v52, %v1703_v46  ;;  %v1206_v46 = vsub.f32 %v182_v39, %v694_v40  ;;  %v1717_v52 = vmul.f32 %v1205_v41, %v1205_v41  ;;  %v195_v40 = vld [vmem:[#allocation3 + $0x450] sm:$0xff] }
 0x107   :  { %v707_v41 = vld [vmem:[#allocation6 + $0x450] sm:$0xff] }
 0x108   :  { %v2216_v62 = vadd.f32 %v2215_v57, %v1704_v51  ;;  %v1207_v51 = vsub.f32 %v183_v44, %v695_v45  ;;  %v1718_v57 = vmul.f32 %v1206_v46, %v1206_v46  ;;  %v196_v45 = vld [vmem:[#allocation3 + $0x458] sm:$0xff] }
 0x109   :  { %v708_v46 = vld [vmem:[#allocation6 + $0x458] sm:$0xff] }
 0x10a   :  { %v2217_v3 = vadd.f32 %v2216_v62, %v1705_v56  ;;  %v1208_v56 = vsub.f32 %v184_v49, %v696_v50  ;;  %v1719_v62 = vmul.f32 %v1207_v51, %v1207_v51  ;;  %v197_v50 = vld [vmem:[#allocation3 + $0x460] sm:$0xff] }
 0x10b   :  { %v709_v51 = vld [vmem:[#allocation6 + $0x460] sm:$0xff] }
 0x10c   :  { %v2218_v8 = vadd.f32 %v2217_v3, %v1706_v61  ;;  %v1209_v61 = vsub.f32 %v185_v54, %v697_v55  ;;  %v1720_v3 = vmul.f32 %v1208_v56, %v1208_v56  ;;  %v198_v55 = vld [vmem:[#allocation3 + $0x468] sm:$0xff] }
 0x10d   :  { %v710_v56 = vld [vmem:[#allocation6 + $0x468] sm:$0xff] }
 0x10e   :  { %v2219_v13 = vadd.f32 %v2218_v8, %v1707_v2  ;;  %v1210_v2 = vsub.f32 %v186_v59, %v698_v60  ;;  %v1721_v8 = vmul.f32 %v1209_v61, %v1209_v61  ;;  %v199_v60 = vld [vmem:[#allocation3 + $0x470] sm:$0xff] }
 0x10f   :  { %v711_v61 = vld [vmem:[#allocation6 + $0x470] sm:$0xff] }
 0x110   :  { %v2220_v18 = vadd.f32 %v2219_v13, %v1708_v7  ;;  %v1211_v7 = vsub.f32 %v187_v0, %v699_v1  ;;  %v1722_v13 = vmul.f32 %v1210_v2, %v1210_v2  ;;  %v200_v1 = vld [vmem:[#allocation3 + $0x478] sm:$0xff] }
 0x111   :  { %v712_v2 = vld [vmem:[#allocation6 + $0x478] sm:$0xff] }
 0x112   :  { %v2221_v23 = vadd.f32 %v2220_v18, %v1709_v12  ;;  %v1212_v12 = vsub.f32 %v188_v5, %v700_v6  ;;  %v1723_v18 = vmul.f32 %v1211_v7, %v1211_v7  ;;  %v201_v6 = vld [vmem:[#allocation3 + $0x480] sm:$0xff] }
 0x113   :  { %v713_v7 = vld [vmem:[#allocation6 + $0x480] sm:$0xff] }
 0x114   :  { %v2222_v28 = vadd.f32 %v2221_v23, %v1710_v17  ;;  %v1213_v17 = vsub.f32 %v189_v10, %v701_v11  ;;  %v1724_v23 = vmul.f32 %v1212_v12, %v1212_v12  ;;  %v202_v11 = vld [vmem:[#allocation3 + $0x488] sm:$0xff] }
 0x115   :  { %v714_v12 = vld [vmem:[#allocation6 + $0x488] sm:$0xff] }
 0x116   :  { %v2223_v33 = vadd.f32 %v2222_v28, %v1711_v22  ;;  %v1214_v22 = vsub.f32 %v190_v15, %v702_v16  ;;  %v1725_v28 = vmul.f32 %v1213_v17, %v1213_v17  ;;  %v203_v16 = vld [vmem:[#allocation3 + $0x490] sm:$0xff] }
 0x117   :  { %v715_v17 = vld [vmem:[#allocation6 + $0x490] sm:$0xff] }
 0x118   :  { %v2224_v38 = vadd.f32 %v2223_v33, %v1712_v27  ;;  %v1215_v27 = vsub.f32 %v191_v20, %v703_v21  ;;  %v1726_v33 = vmul.f32 %v1214_v22, %v1214_v22  ;;  %v204_v21 = vld [vmem:[#allocation3 + $0x498] sm:$0xff] }
 0x119   :  { %v716_v22 = vld [vmem:[#allocation6 + $0x498] sm:$0xff] }
 0x11a   :  { %v2225_v43 = vadd.f32 %v2224_v38, %v1713_v32  ;;  %v1216_v32 = vsub.f32 %v192_v25, %v704_v26  ;;  %v1727_v38 = vmul.f32 %v1215_v27, %v1215_v27  ;;  %v205_v26 = vld [vmem:[#allocation3 + $0x4a0] sm:$0xff] }
 0x11b   :  { %v717_v27 = vld [vmem:[#allocation6 + $0x4a0] sm:$0xff] }
 0x11c   :  { %v2226_v48 = vadd.f32 %v2225_v43, %v1714_v37  ;;  %v1217_v37 = vsub.f32 %v193_v30, %v705_v31  ;;  %v1728_v43 = vmul.f32 %v1216_v32, %v1216_v32  ;;  %v206_v31 = vld [vmem:[#allocation3 + $0x4a8] sm:$0xff] }
 0x11d   :  { %v718_v32 = vld [vmem:[#allocation6 + $0x4a8] sm:$0xff] }
 0x11e   :  { %v2227_v53 = vadd.f32 %v2226_v48, %v1715_v42  ;;  %v1218_v42 = vsub.f32 %v194_v35, %v706_v36  ;;  %v1729_v48 = vmul.f32 %v1217_v37, %v1217_v37  ;;  %v207_v36 = vld [vmem:[#allocation3 + $0x4b0] sm:$0xff] }
 0x11f   :  { %v719_v37 = vld [vmem:[#allocation6 + $0x4b0] sm:$0xff] }
 0x120   :  { %v2228_v58 = vadd.f32 %v2227_v53, %v1716_v47  ;;  %v1219_v47 = vsub.f32 %v195_v40, %v707_v41  ;;  %v1730_v53 = vmul.f32 %v1218_v42, %v1218_v42  ;;  %v208_v41 = vld [vmem:[#allocation3 + $0x4b8] sm:$0xff] }
 0x121   :  { %v720_v42 = vld [vmem:[#allocation6 + $0x4b8] sm:$0xff] }
 0x122   :  { %v2229_v63 = vadd.f32 %v2228_v58, %v1717_v52  ;;  %v1220_v52 = vsub.f32 %v196_v45, %v708_v46  ;;  %v1731_v58 = vmul.f32 %v1219_v47, %v1219_v47  ;;  %v209_v46 = vld [vmem:[#allocation3 + $0x4c0] sm:$0xff] }
 0x123   :  { %v721_v47 = vld [vmem:[#allocation6 + $0x4c0] sm:$0xff] }
 0x124   :  { %v2230_v4 = vadd.f32 %v2229_v63, %v1718_v57  ;;  %v1221_v57 = vsub.f32 %v197_v50, %v709_v51  ;;  %v1732_v63 = vmul.f32 %v1220_v52, %v1220_v52  ;;  %v210_v51 = vld [vmem:[#allocation3 + $0x4c8] sm:$0xff] }
 0x125   :  { %v722_v52 = vld [vmem:[#allocation6 + $0x4c8] sm:$0xff] }
 0x126   :  { %v2231_v9 = vadd.f32 %v2230_v4, %v1719_v62  ;;  %v1222_v62 = vsub.f32 %v198_v55, %v710_v56  ;;  %v1733_v4 = vmul.f32 %v1221_v57, %v1221_v57  ;;  %v211_v56 = vld [vmem:[#allocation3 + $0x4d0] sm:$0xff] }
 0x127   :  { %v723_v57 = vld [vmem:[#allocation6 + $0x4d0] sm:$0xff] }
 0x128   :  { %v2232_v14 = vadd.f32 %v2231_v9, %v1720_v3  ;;  %v1223_v3 = vsub.f32 %v199_v60, %v711_v61  ;;  %v1734_v9 = vmul.f32 %v1222_v62, %v1222_v62  ;;  %v212_v61 = vld [vmem:[#allocation3 + $0x4d8] sm:$0xff] }
 0x129   :  { %v724_v62 = vld [vmem:[#allocation6 + $0x4d8] sm:$0xff] }
 0x12a   :  { %v2233_v19 = vadd.f32 %v2232_v14, %v1721_v8  ;;  %v1224_v8 = vsub.f32 %v200_v1, %v712_v2  ;;  %v1735_v14 = vmul.f32 %v1223_v3, %v1223_v3  ;;  %v213_v2 = vld [vmem:[#allocation3 + $0x4e0] sm:$0xff] }
 0x12b   :  { %v725_v3 = vld [vmem:[#allocation6 + $0x4e0] sm:$0xff] }
 0x12c   :  { %v2234_v24 = vadd.f32 %v2233_v19, %v1722_v13  ;;  %v1225_v13 = vsub.f32 %v201_v6, %v713_v7  ;;  %v1736_v19 = vmul.f32 %v1224_v8, %v1224_v8  ;;  %v214_v7 = vld [vmem:[#allocation3 + $0x4e8] sm:$0xff] }
 0x12d   :  { %v726_v8 = vld [vmem:[#allocation6 + $0x4e8] sm:$0xff] }
 0x12e   :  { %v2235_v29 = vadd.f32 %v2234_v24, %v1723_v18  ;;  %v1226_v18 = vsub.f32 %v202_v11, %v714_v12  ;;  %v1737_v24 = vmul.f32 %v1225_v13, %v1225_v13  ;;  %v215_v12 = vld [vmem:[#allocation3 + $0x4f0] sm:$0xff] }
 0x12f   :  { %v727_v13 = vld [vmem:[#allocation6 + $0x4f0] sm:$0xff] }
 0x130   :  { %v2236_v34 = vadd.f32 %v2235_v29, %v1724_v23  ;;  %v1227_v23 = vsub.f32 %v203_v16, %v715_v17  ;;  %v1738_v29 = vmul.f32 %v1226_v18, %v1226_v18  ;;  %v216_v17 = vld [vmem:[#allocation3 + $0x4f8] sm:$0xff] }
 0x131   :  { %v728_v18 = vld [vmem:[#allocation6 + $0x4f8] sm:$0xff] }
 0x132   :  { %v2237_v39 = vadd.f32 %v2236_v34, %v1725_v28  ;;  %v1228_v28 = vsub.f32 %v204_v21, %v716_v22  ;;  %v1739_v34 = vmul.f32 %v1227_v23, %v1227_v23  ;;  %v217_v22 = vld [vmem:[#allocation3 + $0x500] sm:$0xff] }
 0x133   :  { %v729_v23 = vld [vmem:[#allocation6 + $0x500] sm:$0xff] }
 0x134   :  { %v2238_v44 = vadd.f32 %v2237_v39, %v1726_v33  ;;  %v1229_v33 = vsub.f32 %v205_v26, %v717_v27  ;;  %v1740_v39 = vmul.f32 %v1228_v28, %v1228_v28  ;;  %v218_v27 = vld [vmem:[#allocation3 + $0x508] sm:$0xff] }
 0x135   :  { %v730_v28 = vld [vmem:[#allocation6 + $0x508] sm:$0xff] }
 0x136   :  { %v2239_v49 = vadd.f32 %v2238_v44, %v1727_v38  ;;  %v1230_v38 = vsub.f32 %v206_v31, %v718_v32  ;;  %v1741_v44 = vmul.f32 %v1229_v33, %v1229_v33  ;;  %v219_v32 = vld [vmem:[#allocation3 + $0x510] sm:$0xff] }
 0x137   :  { %v731_v33 = vld [vmem:[#allocation6 + $0x510] sm:$0xff] }
 0x138   :  { %v2240_v54 = vadd.f32 %v2239_v49, %v1728_v43  ;;  %v1231_v43 = vsub.f32 %v207_v36, %v719_v37  ;;  %v1742_v49 = vmul.f32 %v1230_v38, %v1230_v38  ;;  %v220_v37 = vld [vmem:[#allocation3 + $0x518] sm:$0xff] }
 0x139   :  { %v732_v38 = vld [vmem:[#allocation6 + $0x518] sm:$0xff] }
 0x13a   :  { %v2241_v59 = vadd.f32 %v2240_v54, %v1729_v48  ;;  %v1232_v48 = vsub.f32 %v208_v41, %v720_v42  ;;  %v1743_v54 = vmul.f32 %v1231_v43, %v1231_v43  ;;  %v221_v42 = vld [vmem:[#allocation3 + $0x520] sm:$0xff] }
 0x13b   :  { %v733_v43 = vld [vmem:[#allocation6 + $0x520] sm:$0xff] }
 0x13c   :  { %v2242_v0 = vadd.f32 %v2241_v59, %v1730_v53  ;;  %v1233_v53 = vsub.f32 %v209_v46, %v721_v47  ;;  %v1744_v59 = vmul.f32 %v1232_v48, %v1232_v48  ;;  %v222_v47 = vld [vmem:[#allocation3 + $0x528] sm:$0xff] }
 0x13d   :  { %v734_v48 = vld [vmem:[#allocation6 + $0x528] sm:$0xff] }
 0x13e   :  { %v2243_v5 = vadd.f32 %v2242_v0, %v1731_v58  ;;  %v1234_v58 = vsub.f32 %v210_v51, %v722_v52  ;;  %v1745_v0 = vmul.f32 %v1233_v53, %v1233_v53  ;;  %v223_v52 = vld [vmem:[#allocation3 + $0x530] sm:$0xff] }
 0x13f   :  { %v735_v53 = vld [vmem:[#allocation6 + $0x530] sm:$0xff] }
 0x140   :  { %v2244_v10 = vadd.f32 %v2243_v5, %v1732_v63  ;;  %v1235_v63 = vsub.f32 %v211_v56, %v723_v57  ;;  %v1746_v5 = vmul.f32 %v1234_v58, %v1234_v58  ;;  %v224_v57 = vld [vmem:[#allocation3 + $0x538] sm:$0xff] }
 0x141   :  { %v736_v58 = vld [vmem:[#allocation6 + $0x538] sm:$0xff] }
 0x142   :  { %v2245_v15 = vadd.f32 %v2244_v10, %v1733_v4  ;;  %v1236_v4 = vsub.f32 %v212_v61, %v724_v62  ;;  %v1747_v10 = vmul.f32 %v1235_v63, %v1235_v63  ;;  %v225_v62 = vld [vmem:[#allocation3 + $0x540] sm:$0xff] }
 0x143   :  { %v737_v63 = vld [vmem:[#allocation6 + $0x540] sm:$0xff] }
 0x144   :  { %v2246_v20 = vadd.f32 %v2245_v15, %v1734_v9  ;;  %v1237_v9 = vsub.f32 %v213_v2, %v725_v3  ;;  %v1748_v15 = vmul.f32 %v1236_v4, %v1236_v4  ;;  %v226_v3 = vld [vmem:[#allocation3 + $0x548] sm:$0xff] }
 0x145   :  { %v738_v4 = vld [vmem:[#allocation6 + $0x548] sm:$0xff] }
 0x146   :  { %v2247_v25 = vadd.f32 %v2246_v20, %v1735_v14  ;;  %v1238_v14 = vsub.f32 %v214_v7, %v726_v8  ;;  %v1749_v20 = vmul.f32 %v1237_v9, %v1237_v9  ;;  %v227_v8 = vld [vmem:[#allocation3 + $0x550] sm:$0xff] }
 0x147   :  { %v739_v9 = vld [vmem:[#allocation6 + $0x550] sm:$0xff] }
 0x148   :  { %v2248_v30 = vadd.f32 %v2247_v25, %v1736_v19  ;;  %v1239_v19 = vsub.f32 %v215_v12, %v727_v13  ;;  %v1750_v25 = vmul.f32 %v1238_v14, %v1238_v14  ;;  %v228_v13 = vld [vmem:[#allocation3 + $0x558] sm:$0xff] }
 0x149   :  { %v740_v14 = vld [vmem:[#allocation6 + $0x558] sm:$0xff] }
 0x14a   :  { %v2249_v35 = vadd.f32 %v2248_v30, %v1737_v24  ;;  %v1240_v24 = vsub.f32 %v216_v17, %v728_v18  ;;  %v1751_v30 = vmul.f32 %v1239_v19, %v1239_v19  ;;  %v229_v18 = vld [vmem:[#allocation3 + $0x560] sm:$0xff] }
 0x14b   :  { %v741_v19 = vld [vmem:[#allocation6 + $0x560] sm:$0xff] }
 0x14c   :  { %v2250_v40 = vadd.f32 %v2249_v35, %v1738_v29  ;;  %v1241_v29 = vsub.f32 %v217_v22, %v729_v23  ;;  %v1752_v35 = vmul.f32 %v1240_v24, %v1240_v24  ;;  %v230_v23 = vld [vmem:[#allocation3 + $0x568] sm:$0xff] }
 0x14d   :  { %v742_v24 = vld [vmem:[#allocation6 + $0x568] sm:$0xff] }
 0x14e   :  { %v2251_v45 = vadd.f32 %v2250_v40, %v1739_v34  ;;  %v1242_v34 = vsub.f32 %v218_v27, %v730_v28  ;;  %v1753_v40 = vmul.f32 %v1241_v29, %v1241_v29  ;;  %v231_v28 = vld [vmem:[#allocation3 + $0x570] sm:$0xff] }
 0x14f   :  { %v743_v29 = vld [vmem:[#allocation6 + $0x570] sm:$0xff] }
 0x150   :  { %v2252_v50 = vadd.f32 %v2251_v45, %v1740_v39  ;;  %v1243_v39 = vsub.f32 %v219_v32, %v731_v33  ;;  %v1754_v45 = vmul.f32 %v1242_v34, %v1242_v34  ;;  %v232_v33 = vld [vmem:[#allocation3 + $0x578] sm:$0xff] }
 0x151   :  { %v744_v34 = vld [vmem:[#allocation6 + $0x578] sm:$0xff] }
 0x152   :  { %v2253_v55 = vadd.f32 %v2252_v50, %v1741_v44  ;;  %v1244_v44 = vsub.f32 %v220_v37, %v732_v38  ;;  %v1755_v50 = vmul.f32 %v1243_v39, %v1243_v39  ;;  %v233_v38 = vld [vmem:[#allocation3 + $0x580] sm:$0xff] }
 0x153   :  { %v745_v39 = vld [vmem:[#allocation6 + $0x580] sm:$0xff] }
 0x154   :  { %v2254_v60 = vadd.f32 %v2253_v55, %v1742_v49  ;;  %v1245_v49 = vsub.f32 %v221_v42, %v733_v43  ;;  %v1756_v55 = vmul.f32 %v1244_v44, %v1244_v44  ;;  %v234_v43 = vld [vmem:[#allocation3 + $0x588] sm:$0xff] }
 0x155   :  { %v746_v44 = vld [vmem:[#allocation6 + $0x588] sm:$0xff] }
 0x156   :  { %v2255_v1 = vadd.f32 %v2254_v60, %v1743_v54  ;;  %v1246_v54 = vsub.f32 %v222_v47, %v734_v48  ;;  %v1757_v60 = vmul.f32 %v1245_v49, %v1245_v49  ;;  %v235_v48 = vld [vmem:[#allocation3 + $0x590] sm:$0xff] }
 0x157   :  { %v747_v49 = vld [vmem:[#allocation6 + $0x590] sm:$0xff] }
 0x158   :  { %v2256_v6 = vadd.f32 %v2255_v1, %v1744_v59  ;;  %v1247_v59 = vsub.f32 %v223_v52, %v735_v53  ;;  %v1758_v1 = vmul.f32 %v1246_v54, %v1246_v54  ;;  %v236_v53 = vld [vmem:[#allocation3 + $0x598] sm:$0xff] }
 0x159   :  { %v748_v54 = vld [vmem:[#allocation6 + $0x598] sm:$0xff] }
 0x15a   :  { %v2257_v11 = vadd.f32 %v2256_v6, %v1745_v0  ;;  %v1248_v0 = vsub.f32 %v224_v57, %v736_v58  ;;  %v1759_v6 = vmul.f32 %v1247_v59, %v1247_v59  ;;  %v237_v58 = vld [vmem:[#allocation3 + $0x5a0] sm:$0xff] }
 0x15b   :  { %v749_v59 = vld [vmem:[#allocation6 + $0x5a0] sm:$0xff] }
 0x15c   :  { %v2258_v16 = vadd.f32 %v2257_v11, %v1746_v5  ;;  %v1249_v5 = vsub.f32 %v225_v62, %v737_v63  ;;  %v1760_v11 = vmul.f32 %v1248_v0, %v1248_v0  ;;  %v238_v63 = vld [vmem:[#allocation3 + $0x5a8] sm:$0xff] }
 0x15d   :  { %v750_v0 = vld [vmem:[#allocation6 + $0x5a8] sm:$0xff] }
 0x15e   :  { %v2259_v21 = vadd.f32 %v2258_v16, %v1747_v10  ;;  %v1250_v10 = vsub.f32 %v226_v3, %v738_v4  ;;  %v1761_v16 = vmul.f32 %v1249_v5, %v1249_v5  ;;  %v239_v4 = vld [vmem:[#allocation3 + $0x5b0] sm:$0xff] }
 0x15f   :  { %v751_v5 = vld [vmem:[#allocation6 + $0x5b0] sm:$0xff] }
 0x160   :  { %v2260_v26 = vadd.f32 %v2259_v21, %v1748_v15  ;;  %v1251_v15 = vsub.f32 %v227_v8, %v739_v9  ;;  %v1762_v21 = vmul.f32 %v1250_v10, %v1250_v10  ;;  %v240_v9 = vld [vmem:[#allocation3 + $0x5b8] sm:$0xff] }
 0x161   :  { %v752_v10 = vld [vmem:[#allocation6 + $0x5b8] sm:$0xff] }
 0x162   :  { %v2261_v31 = vadd.f32 %v2260_v26, %v1749_v20  ;;  %v1252_v20 = vsub.f32 %v228_v13, %v740_v14  ;;  %v1763_v26 = vmul.f32 %v1251_v15, %v1251_v15  ;;  %v241_v14 = vld [vmem:[#allocation3 + $0x5c0] sm:$0xff] }
 0x163   :  { %v753_v15 = vld [vmem:[#allocation6 + $0x5c0] sm:$0xff] }
 0x164   :  { %v2262_v36 = vadd.f32 %v2261_v31, %v1750_v25  ;;  %v1253_v25 = vsub.f32 %v229_v18, %v741_v19  ;;  %v1764_v31 = vmul.f32 %v1252_v20, %v1252_v20  ;;  %v242_v19 = vld [vmem:[#allocation3 + $0x5c8] sm:$0xff] }
 0x165   :  { %v754_v20 = vld [vmem:[#allocation6 + $0x5c8] sm:$0xff] }
 0x166   :  { %v2263_v41 = vadd.f32 %v2262_v36, %v1751_v30  ;;  %v1254_v30 = vsub.f32 %v230_v23, %v742_v24  ;;  %v1765_v36 = vmul.f32 %v1253_v25, %v1253_v25  ;;  %v243_v24 = vld [vmem:[#allocation3 + $0x5d0] sm:$0xff] }
 0x167   :  { %v755_v25 = vld [vmem:[#allocation6 + $0x5d0] sm:$0xff] }
 0x168   :  { %v2264_v46 = vadd.f32 %v2263_v41, %v1752_v35  ;;  %v1255_v35 = vsub.f32 %v231_v28, %v743_v29  ;;  %v1766_v41 = vmul.f32 %v1254_v30, %v1254_v30  ;;  %v244_v29 = vld [vmem:[#allocation3 + $0x5d8] sm:$0xff] }
 0x169   :  { %v756_v30 = vld [vmem:[#allocation6 + $0x5d8] sm:$0xff] }
 0x16a   :  { %v2265_v51 = vadd.f32 %v2264_v46, %v1753_v40  ;;  %v1256_v40 = vsub.f32 %v232_v33, %v744_v34  ;;  %v1767_v46 = vmul.f32 %v1255_v35, %v1255_v35  ;;  %v245_v34 = vld [vmem:[#allocation3 + $0x5e0] sm:$0xff] }
 0x16b   :  { %v757_v35 = vld [vmem:[#allocation6 + $0x5e0] sm:$0xff] }
 0x16c   :  { %v2266_v56 = vadd.f32 %v2265_v51, %v1754_v45  ;;  %v1257_v45 = vsub.f32 %v233_v38, %v745_v39  ;;  %v1768_v51 = vmul.f32 %v1256_v40, %v1256_v40  ;;  %v246_v39 = vld [vmem:[#allocation3 + $0x5e8] sm:$0xff] }
 0x16d   :  { %v758_v40 = vld [vmem:[#allocation6 + $0x5e8] sm:$0xff] }
 0x16e   :  { %v2267_v61 = vadd.f32 %v2266_v56, %v1755_v50  ;;  %v1258_v50 = vsub.f32 %v234_v43, %v746_v44  ;;  %v1769_v56 = vmul.f32 %v1257_v45, %v1257_v45  ;;  %v247_v44 = vld [vmem:[#allocation3 + $0x5f0] sm:$0xff] }
 0x16f   :  { %v759_v45 = vld [vmem:[#allocation6 + $0x5f0] sm:$0xff] }
 0x170   :  { %v2268_v2 = vadd.f32 %v2267_v61, %v1756_v55  ;;  %v1259_v55 = vsub.f32 %v235_v48, %v747_v49  ;;  %v1770_v61 = vmul.f32 %v1258_v50, %v1258_v50  ;;  %v248_v49 = vld [vmem:[#allocation3 + $0x5f8] sm:$0xff] }
 0x171   :  { %v760_v50 = vld [vmem:[#allocation6 + $0x5f8] sm:$0xff] }
 0x172   :  { %v2269_v7 = vadd.f32 %v2268_v2, %v1757_v60  ;;  %v1260_v60 = vsub.f32 %v236_v53, %v748_v54  ;;  %v1771_v2 = vmul.f32 %v1259_v55, %v1259_v55  ;;  %v249_v54 = vld [vmem:[#allocation3 + $0x600] sm:$0xff] }
 0x173   :  { %v761_v55 = vld [vmem:[#allocation6 + $0x600] sm:$0xff] }
 0x174   :  { %v2270_v12 = vadd.f32 %v2269_v7, %v1758_v1  ;;  %v1261_v1 = vsub.f32 %v237_v58, %v749_v59  ;;  %v1772_v7 = vmul.f32 %v1260_v60, %v1260_v60  ;;  %v250_v59 = vld [vmem:[#allocation3 + $0x608] sm:$0xff] }
 0x175   :  { %v762_v60 = vld [vmem:[#allocation6 + $0x608] sm:$0xff] }
 0x176   :  { %v2271_v17 = vadd.f32 %v2270_v12, %v1759_v6  ;;  %v1262_v6 = vsub.f32 %v238_v63, %v750_v0  ;;  %v1773_v12 = vmul.f32 %v1261_v1, %v1261_v1  ;;  %v251_v0 = vld [vmem:[#allocation3 + $0x610] sm:$0xff] }
 0x177   :  { %v763_v1 = vld [vmem:[#allocation6 + $0x610] sm:$0xff] }
 0x178   :  { %v2272_v22 = vadd.f32 %v2271_v17, %v1760_v11  ;;  %v1263_v11 = vsub.f32 %v239_v4, %v751_v5  ;;  %v1774_v17 = vmul.f32 %v1262_v6, %v1262_v6  ;;  %v252_v5 = vld [vmem:[#allocation3 + $0x618] sm:$0xff] }
 0x179   :  { %v764_v6 = vld [vmem:[#allocation6 + $0x618] sm:$0xff] }
 0x17a   :  { %v2273_v27 = vadd.f32 %v2272_v22, %v1761_v16  ;;  %v1264_v16 = vsub.f32 %v240_v9, %v752_v10  ;;  %v1775_v22 = vmul.f32 %v1263_v11, %v1263_v11  ;;  %v253_v10 = vld [vmem:[#allocation3 + $0x620] sm:$0xff] }
 0x17b   :  { %v765_v11 = vld [vmem:[#allocation6 + $0x620] sm:$0xff] }
 0x17c   :  { %v2274_v32 = vadd.f32 %v2273_v27, %v1762_v21  ;;  %v1265_v21 = vsub.f32 %v241_v14, %v753_v15  ;;  %v1776_v27 = vmul.f32 %v1264_v16, %v1264_v16  ;;  %v254_v15 = vld [vmem:[#allocation3 + $0x628] sm:$0xff] }
 0x17d   :  { %v766_v16 = vld [vmem:[#allocation6 + $0x628] sm:$0xff] }
 0x17e   :  { %v2275_v37 = vadd.f32 %v2274_v32, %v1763_v26  ;;  %v1266_v26 = vsub.f32 %v242_v19, %v754_v20  ;;  %v1777_v32 = vmul.f32 %v1265_v21, %v1265_v21  ;;  %v255_v20 = vld [vmem:[#allocation3 + $0x630] sm:$0xff] }
 0x17f   :  { %v767_v21 = vld [vmem:[#allocation6 + $0x630] sm:$0xff] }
 0x180   :  { %v2276_v42 = vadd.f32 %v2275_v37, %v1764_v31  ;;  %v1267_v31 = vsub.f32 %v243_v24, %v755_v25  ;;  %v1778_v37 = vmul.f32 %v1266_v26, %v1266_v26  ;;  %v256_v25 = vld [vmem:[#allocation3 + $0x638] sm:$0xff] }
 0x181   :  { %v768_v26 = vld [vmem:[#allocation6 + $0x638] sm:$0xff] }
 0x182   :  { %v2277_v47 = vadd.f32 %v2276_v42, %v1765_v36  ;;  %v1268_v36 = vsub.f32 %v244_v29, %v756_v30  ;;  %v1779_v42 = vmul.f32 %v1267_v31, %v1267_v31  ;;  %v257_v30 = vld [vmem:[#allocation3 + $0x640] sm:$0xff] }
 0x183   :  { %v769_v31 = vld [vmem:[#allocation6 + $0x640] sm:$0xff] }
 0x184   :  { %v2278_v52 = vadd.f32 %v2277_v47, %v1766_v41  ;;  %v1269_v41 = vsub.f32 %v245_v34, %v757_v35  ;;  %v1780_v47 = vmul.f32 %v1268_v36, %v1268_v36  ;;  %v258_v35 = vld [vmem:[#allocation3 + $0x648] sm:$0xff] }
 0x185   :  { %v770_v36 = vld [vmem:[#allocation6 + $0x648] sm:$0xff] }
 0x186   :  { %v2279_v57 = vadd.f32 %v2278_v52, %v1767_v46  ;;  %v1270_v46 = vsub.f32 %v246_v39, %v758_v40  ;;  %v1781_v52 = vmul.f32 %v1269_v41, %v1269_v41  ;;  %v259_v40 = vld [vmem:[#allocation3 + $0x650] sm:$0xff] }
 0x187   :  { %v771_v41 = vld [vmem:[#allocation6 + $0x650] sm:$0xff] }
 0x188   :  { %v2280_v62 = vadd.f32 %v2279_v57, %v1768_v51  ;;  %v1271_v51 = vsub.f32 %v247_v44, %v759_v45  ;;  %v1782_v57 = vmul.f32 %v1270_v46, %v1270_v46  ;;  %v260_v45 = vld [vmem:[#allocation3 + $0x658] sm:$0xff] }
 0x189   :  { %v772_v46 = vld [vmem:[#allocation6 + $0x658] sm:$0xff] }
 0x18a   :  { %v2281_v3 = vadd.f32 %v2280_v62, %v1769_v56  ;;  %v1272_v56 = vsub.f32 %v248_v49, %v760_v50  ;;  %v1783_v62 = vmul.f32 %v1271_v51, %v1271_v51  ;;  %v261_v50 = vld [vmem:[#allocation3 + $0x660] sm:$0xff] }
 0x18b   :  { %v773_v51 = vld [vmem:[#allocation6 + $0x660] sm:$0xff] }
 0x18c   :  { %v2282_v8 = vadd.f32 %v2281_v3, %v1770_v61  ;;  %v1273_v61 = vsub.f32 %v249_v54, %v761_v55  ;;  %v1784_v3 = vmul.f32 %v1272_v56, %v1272_v56  ;;  %v262_v55 = vld [vmem:[#allocation3 + $0x668] sm:$0xff] }
 0x18d   :  { %v774_v56 = vld [vmem:[#allocation6 + $0x668] sm:$0xff] }
 0x18e   :  { %v2283_v13 = vadd.f32 %v2282_v8, %v1771_v2  ;;  %v1274_v2 = vsub.f32 %v250_v59, %v762_v60  ;;  %v1785_v8 = vmul.f32 %v1273_v61, %v1273_v61  ;;  %v263_v60 = vld [vmem:[#allocation3 + $0x670] sm:$0xff] }
 0x18f   :  { %v775_v61 = vld [vmem:[#allocation6 + $0x670] sm:$0xff] }
 0x190   :  { %v2284_v18 = vadd.f32 %v2283_v13, %v1772_v7  ;;  %v1275_v7 = vsub.f32 %v251_v0, %v763_v1  ;;  %v1786_v13 = vmul.f32 %v1274_v2, %v1274_v2  ;;  %v264_v1 = vld [vmem:[#allocation3 + $0x678] sm:$0xff] }
 0x191   :  { %v776_v2 = vld [vmem:[#allocation6 + $0x678] sm:$0xff] }
 0x192   :  { %v2285_v23 = vadd.f32 %v2284_v18, %v1773_v12  ;;  %v1276_v12 = vsub.f32 %v252_v5, %v764_v6  ;;  %v1787_v18 = vmul.f32 %v1275_v7, %v1275_v7  ;;  %v265_v6 = vld [vmem:[#allocation3 + $0x680] sm:$0xff] }
 0x193   :  { %v777_v7 = vld [vmem:[#allocation6 + $0x680] sm:$0xff] }
 0x194   :  { %v2286_v28 = vadd.f32 %v2285_v23, %v1774_v17  ;;  %v1277_v17 = vsub.f32 %v253_v10, %v765_v11  ;;  %v1788_v23 = vmul.f32 %v1276_v12, %v1276_v12  ;;  %v266_v11 = vld [vmem:[#allocation3 + $0x688] sm:$0xff] }
 0x195   :  { %v778_v12 = vld [vmem:[#allocation6 + $0x688] sm:$0xff] }
 0x196   :  { %v2287_v33 = vadd.f32 %v2286_v28, %v1775_v22  ;;  %v1278_v22 = vsub.f32 %v254_v15, %v766_v16  ;;  %v1789_v28 = vmul.f32 %v1277_v17, %v1277_v17  ;;  %v267_v16 = vld [vmem:[#allocation3 + $0x690] sm:$0xff] }
 0x197   :  { %v779_v17 = vld [vmem:[#allocation6 + $0x690] sm:$0xff] }
 0x198   :  { %v2288_v38 = vadd.f32 %v2287_v33, %v1776_v27  ;;  %v1279_v27 = vsub.f32 %v255_v20, %v767_v21  ;;  %v1790_v33 = vmul.f32 %v1278_v22, %v1278_v22  ;;  %v268_v21 = vld [vmem:[#allocation3 + $0x698] sm:$0xff] }
 0x199   :  { %v780_v22 = vld [vmem:[#allocation6 + $0x698] sm:$0xff] }
 0x19a   :  { %v2289_v43 = vadd.f32 %v2288_v38, %v1777_v32  ;;  %v1280_v32 = vsub.f32 %v256_v25, %v768_v26  ;;  %v1791_v38 = vmul.f32 %v1279_v27, %v1279_v27  ;;  %v269_v26 = vld [vmem:[#allocation3 + $0x6a0] sm:$0xff] }
 0x19b   :  { %v781_v27 = vld [vmem:[#allocation6 + $0x6a0] sm:$0xff] }
 0x19c   :  { %v2290_v48 = vadd.f32 %v2289_v43, %v1778_v37  ;;  %v1281_v37 = vsub.f32 %v257_v30, %v769_v31  ;;  %v1792_v43 = vmul.f32 %v1280_v32, %v1280_v32  ;;  %v270_v31 = vld [vmem:[#allocation3 + $0x6a8] sm:$0xff] }
 0x19d   :  { %v782_v32 = vld [vmem:[#allocation6 + $0x6a8] sm:$0xff] }
 0x19e   :  { %v2291_v53 = vadd.f32 %v2290_v48, %v1779_v42  ;;  %v1282_v42 = vsub.f32 %v258_v35, %v770_v36  ;;  %v1793_v48 = vmul.f32 %v1281_v37, %v1281_v37  ;;  %v271_v36 = vld [vmem:[#allocation3 + $0x6b0] sm:$0xff] }
 0x19f   :  { %v783_v37 = vld [vmem:[#allocation6 + $0x6b0] sm:$0xff] }
 0x1a0   :  { %v2292_v58 = vadd.f32 %v2291_v53, %v1780_v47  ;;  %v1283_v47 = vsub.f32 %v259_v40, %v771_v41  ;;  %v1794_v53 = vmul.f32 %v1282_v42, %v1282_v42  ;;  %v272_v41 = vld [vmem:[#allocation3 + $0x6b8] sm:$0xff] }
 0x1a1   :  { %v784_v42 = vld [vmem:[#allocation6 + $0x6b8] sm:$0xff] }
 0x1a2   :  { %v2293_v63 = vadd.f32 %v2292_v58, %v1781_v52  ;;  %v1284_v52 = vsub.f32 %v260_v45, %v772_v46  ;;  %v1795_v58 = vmul.f32 %v1283_v47, %v1283_v47  ;;  %v273_v46 = vld [vmem:[#allocation3 + $0x6c0] sm:$0xff] }
 0x1a3   :  { %v785_v47 = vld [vmem:[#allocation6 + $0x6c0] sm:$0xff] }
 0x1a4   :  { %v2294_v4 = vadd.f32 %v2293_v63, %v1782_v57  ;;  %v1285_v57 = vsub.f32 %v261_v50, %v773_v51  ;;  %v1796_v63 = vmul.f32 %v1284_v52, %v1284_v52  ;;  %v274_v51 = vld [vmem:[#allocation3 + $0x6c8] sm:$0xff] }
 0x1a5   :  { %v786_v52 = vld [vmem:[#allocation6 + $0x6c8] sm:$0xff] }
 0x1a6   :  { %v2295_v9 = vadd.f32 %v2294_v4, %v1783_v62  ;;  %v1286_v62 = vsub.f32 %v262_v55, %v774_v56  ;;  %v1797_v4 = vmul.f32 %v1285_v57, %v1285_v57  ;;  %v275_v56 = vld [vmem:[#allocation3 + $0x6d0] sm:$0xff] }
 0x1a7   :  { %v787_v57 = vld [vmem:[#allocation6 + $0x6d0] sm:$0xff] }
 0x1a8   :  { %v2296_v14 = vadd.f32 %v2295_v9, %v1784_v3  ;;  %v1287_v3 = vsub.f32 %v263_v60, %v775_v61  ;;  %v1798_v9 = vmul.f32 %v1286_v62, %v1286_v62  ;;  %v276_v61 = vld [vmem:[#allocation3 + $0x6d8] sm:$0xff] }
 0x1a9   :  { %v788_v62 = vld [vmem:[#allocation6 + $0x6d8] sm:$0xff] }
 0x1aa   :  { %v2297_v19 = vadd.f32 %v2296_v14, %v1785_v8  ;;  %v1288_v8 = vsub.f32 %v264_v1, %v776_v2  ;;  %v1799_v14 = vmul.f32 %v1287_v3, %v1287_v3  ;;  %v277_v2 = vld [vmem:[#allocation3 + $0x6e0] sm:$0xff] }
 0x1ab   :  { %v789_v3 = vld [vmem:[#allocation6 + $0x6e0] sm:$0xff] }
 0x1ac   :  { %v2298_v24 = vadd.f32 %v2297_v19, %v1786_v13  ;;  %v1289_v13 = vsub.f32 %v265_v6, %v777_v7  ;;  %v1800_v19 = vmul.f32 %v1288_v8, %v1288_v8  ;;  %v278_v7 = vld [vmem:[#allocation3 + $0x6e8] sm:$0xff] }
 0x1ad   :  { %v790_v8 = vld [vmem:[#allocation6 + $0x6e8] sm:$0xff] }
 0x1ae   :  { %v2299_v29 = vadd.f32 %v2298_v24, %v1787_v18  ;;  %v1290_v18 = vsub.f32 %v266_v11, %v778_v12  ;;  %v1801_v24 = vmul.f32 %v1289_v13, %v1289_v13  ;;  %v279_v12 = vld [vmem:[#allocation3 + $0x6f0] sm:$0xff] }
 0x1af   :  { %v791_v13 = vld [vmem:[#allocation6 + $0x6f0] sm:$0xff] }
 0x1b0   :  { %v2300_v34 = vadd.f32 %v2299_v29, %v1788_v23  ;;  %v1291_v23 = vsub.f32 %v267_v16, %v779_v17  ;;  %v1802_v29 = vmul.f32 %v1290_v18, %v1290_v18  ;;  %v280_v17 = vld [vmem:[#allocation3 + $0x6f8] sm:$0xff] }
 0x1b1   :  { %v792_v18 = vld [vmem:[#allocation6 + $0x6f8] sm:$0xff] }
 0x1b2   :  { %v2301_v39 = vadd.f32 %v2300_v34, %v1789_v28  ;;  %v1292_v28 = vsub.f32 %v268_v21, %v780_v22  ;;  %v1803_v34 = vmul.f32 %v1291_v23, %v1291_v23  ;;  %v281_v22 = vld [vmem:[#allocation3 + $0x700] sm:$0xff] }
 0x1b3   :  { %v793_v23 = vld [vmem:[#allocation6 + $0x700] sm:$0xff] }
 0x1b4   :  { %v2302_v44 = vadd.f32 %v2301_v39, %v1790_v33  ;;  %v1293_v33 = vsub.f32 %v269_v26, %v781_v27  ;;  %v1804_v39 = vmul.f32 %v1292_v28, %v1292_v28  ;;  %v282_v27 = vld [vmem:[#allocation3 + $0x708] sm:$0xff] }
 0x1b5   :  { %v794_v28 = vld [vmem:[#allocation6 + $0x708] sm:$0xff] }
 0x1b6   :  { %v2303_v49 = vadd.f32 %v2302_v44, %v1791_v38  ;;  %v1294_v38 = vsub.f32 %v270_v31, %v782_v32  ;;  %v1805_v44 = vmul.f32 %v1293_v33, %v1293_v33  ;;  %v283_v32 = vld [vmem:[#allocation3 + $0x710] sm:$0xff] }
 0x1b7   :  { %v795_v33 = vld [vmem:[#allocation6 + $0x710] sm:$0xff] }
 0x1b8   :  { %v2304_v54 = vadd.f32 %v2303_v49, %v1792_v43  ;;  %v1295_v43 = vsub.f32 %v271_v36, %v783_v37  ;;  %v1806_v49 = vmul.f32 %v1294_v38, %v1294_v38  ;;  %v284_v37 = vld [vmem:[#allocation3 + $0x718] sm:$0xff] }
 0x1b9   :  { %v796_v38 = vld [vmem:[#allocation6 + $0x718] sm:$0xff] }
 0x1ba   :  { %v2305_v59 = vadd.f32 %v2304_v54, %v1793_v48  ;;  %v1296_v48 = vsub.f32 %v272_v41, %v784_v42  ;;  %v1807_v54 = vmul.f32 %v1295_v43, %v1295_v43  ;;  %v285_v42 = vld [vmem:[#allocation3 + $0x720] sm:$0xff] }
 0x1bb   :  { %v797_v43 = vld [vmem:[#allocation6 + $0x720] sm:$0xff] }
 0x1bc   :  { %v2306_v0 = vadd.f32 %v2305_v59, %v1794_v53  ;;  %v1297_v53 = vsub.f32 %v273_v46, %v785_v47  ;;  %v1808_v59 = vmul.f32 %v1296_v48, %v1296_v48  ;;  %v286_v47 = vld [vmem:[#allocation3 + $0x728] sm:$0xff] }
 0x1bd   :  { %v798_v48 = vld [vmem:[#allocation6 + $0x728] sm:$0xff] }
 0x1be   :  { %v2307_v5 = vadd.f32 %v2306_v0, %v1795_v58  ;;  %v1298_v58 = vsub.f32 %v274_v51, %v786_v52  ;;  %v1809_v0 = vmul.f32 %v1297_v53, %v1297_v53  ;;  %v287_v52 = vld [vmem:[#allocation3 + $0x730] sm:$0xff] }
 0x1bf   :  { %v799_v53 = vld [vmem:[#allocation6 + $0x730] sm:$0xff] }
 0x1c0   :  { %v2308_v10 = vadd.f32 %v2307_v5, %v1796_v63  ;;  %v1299_v63 = vsub.f32 %v275_v56, %v787_v57  ;;  %v1810_v5 = vmul.f32 %v1298_v58, %v1298_v58  ;;  %v288_v57 = vld [vmem:[#allocation3 + $0x738] sm:$0xff] }
 0x1c1   :  { %v800_v58 = vld [vmem:[#allocation6 + $0x738] sm:$0xff] }
 0x1c2   :  { %v2309_v15 = vadd.f32 %v2308_v10, %v1797_v4  ;;  %v1300_v4 = vsub.f32 %v276_v61, %v788_v62  ;;  %v1811_v10 = vmul.f32 %v1299_v63, %v1299_v63  ;;  %v289_v62 = vld [vmem:[#allocation3 + $0x740] sm:$0xff] }
 0x1c3   :  { %v801_v63 = vld [vmem:[#allocation6 + $0x740] sm:$0xff] }
 0x1c4   :  { %v2310_v20 = vadd.f32 %v2309_v15, %v1798_v9  ;;  %v1301_v9 = vsub.f32 %v277_v2, %v789_v3  ;;  %v1812_v15 = vmul.f32 %v1300_v4, %v1300_v4  ;;  %v290_v3 = vld [vmem:[#allocation3 + $0x748] sm:$0xff] }
 0x1c5   :  { %v802_v4 = vld [vmem:[#allocation6 + $0x748] sm:$0xff] }
 0x1c6   :  { %v2311_v25 = vadd.f32 %v2310_v20, %v1799_v14  ;;  %v1302_v14 = vsub.f32 %v278_v7, %v790_v8  ;;  %v1813_v20 = vmul.f32 %v1301_v9, %v1301_v9  ;;  %v291_v8 = vld [vmem:[#allocation3 + $0x750] sm:$0xff] }
 0x1c7   :  { %v803_v9 = vld [vmem:[#allocation6 + $0x750] sm:$0xff] }
 0x1c8   :  { %v2312_v30 = vadd.f32 %v2311_v25, %v1800_v19  ;;  %v1303_v19 = vsub.f32 %v279_v12, %v791_v13  ;;  %v1814_v25 = vmul.f32 %v1302_v14, %v1302_v14  ;;  %v292_v13 = vld [vmem:[#allocation3 + $0x758] sm:$0xff] }
 0x1c9   :  { %v804_v14 = vld [vmem:[#allocation6 + $0x758] sm:$0xff] }
 0x1ca   :  { %v2313_v35 = vadd.f32 %v2312_v30, %v1801_v24  ;;  %v1304_v24 = vsub.f32 %v280_v17, %v792_v18  ;;  %v1815_v30 = vmul.f32 %v1303_v19, %v1303_v19  ;;  %v293_v18 = vld [vmem:[#allocation3 + $0x760] sm:$0xff] }
 0x1cb   :  { %v805_v19 = vld [vmem:[#allocation6 + $0x760] sm:$0xff] }
 0x1cc   :  { %v2314_v40 = vadd.f32 %v2313_v35, %v1802_v29  ;;  %v1305_v29 = vsub.f32 %v281_v22, %v793_v23  ;;  %v1816_v35 = vmul.f32 %v1304_v24, %v1304_v24  ;;  %v294_v23 = vld [vmem:[#allocation3 + $0x768] sm:$0xff] }
 0x1cd   :  { %v806_v24 = vld [vmem:[#allocation6 + $0x768] sm:$0xff] }
 0x1ce   :  { %v2315_v45 = vadd.f32 %v2314_v40, %v1803_v34  ;;  %v1306_v34 = vsub.f32 %v282_v27, %v794_v28  ;;  %v1817_v40 = vmul.f32 %v1305_v29, %v1305_v29  ;;  %v295_v28 = vld [vmem:[#allocation3 + $0x770] sm:$0xff] }
 0x1cf   :  { %v807_v29 = vld [vmem:[#allocation6 + $0x770] sm:$0xff] }
 0x1d0   :  { %v2316_v50 = vadd.f32 %v2315_v45, %v1804_v39  ;;  %v1307_v39 = vsub.f32 %v283_v32, %v795_v33  ;;  %v1818_v45 = vmul.f32 %v1306_v34, %v1306_v34  ;;  %v296_v33 = vld [vmem:[#allocation3 + $0x778] sm:$0xff] }
 0x1d1   :  { %v808_v34 = vld [vmem:[#allocation6 + $0x778] sm:$0xff] }
 0x1d2   :  { %v2317_v55 = vadd.f32 %v2316_v50, %v1805_v44  ;;  %v1308_v44 = vsub.f32 %v284_v37, %v796_v38  ;;  %v1819_v50 = vmul.f32 %v1307_v39, %v1307_v39  ;;  %v297_v38 = vld [vmem:[#allocation3 + $0x780] sm:$0xff] }
 0x1d3   :  { %v809_v39 = vld [vmem:[#allocation6 + $0x780] sm:$0xff] }
 0x1d4   :  { %v2318_v60 = vadd.f32 %v2317_v55, %v1806_v49  ;;  %v1309_v49 = vsub.f32 %v285_v42, %v797_v43  ;;  %v1820_v55 = vmul.f32 %v1308_v44, %v1308_v44  ;;  %v298_v43 = vld [vmem:[#allocation3 + $0x788] sm:$0xff] }
 0x1d5   :  { %v810_v44 = vld [vmem:[#allocation6 + $0x788] sm:$0xff] }
 0x1d6   :  { %v2319_v1 = vadd.f32 %v2318_v60, %v1807_v54  ;;  %v1310_v54 = vsub.f32 %v286_v47, %v798_v48  ;;  %v1821_v60 = vmul.f32 %v1309_v49, %v1309_v49  ;;  %v299_v48 = vld [vmem:[#allocation3 + $0x790] sm:$0xff] }
 0x1d7   :  { %v811_v49 = vld [vmem:[#allocation6 + $0x790] sm:$0xff] }
 0x1d8   :  { %v2320_v6 = vadd.f32 %v2319_v1, %v1808_v59  ;;  %v1311_v59 = vsub.f32 %v287_v52, %v799_v53  ;;  %v1822_v1 = vmul.f32 %v1310_v54, %v1310_v54  ;;  %v300_v53 = vld [vmem:[#allocation3 + $0x798] sm:$0xff] }
 0x1d9   :  { %v812_v54 = vld [vmem:[#allocation6 + $0x798] sm:$0xff] }
 0x1da   :  { %v2321_v11 = vadd.f32 %v2320_v6, %v1809_v0  ;;  %v1312_v0 = vsub.f32 %v288_v57, %v800_v58  ;;  %v1823_v6 = vmul.f32 %v1311_v59, %v1311_v59  ;;  %v301_v58 = vld [vmem:[#allocation3 + $0x7a0] sm:$0xff] }
 0x1db   :  { %v813_v59 = vld [vmem:[#allocation6 + $0x7a0] sm:$0xff] }
 0x1dc   :  { %v2322_v16 = vadd.f32 %v2321_v11, %v1810_v5  ;;  %v1313_v5 = vsub.f32 %v289_v62, %v801_v63  ;;  %v1824_v11 = vmul.f32 %v1312_v0, %v1312_v0  ;;  %v302_v63 = vld [vmem:[#allocation3 + $0x7a8] sm:$0xff] }
 0x1dd   :  { %v814_v0 = vld [vmem:[#allocation6 + $0x7a8] sm:$0xff] }
 0x1de   :  { %v2323_v21 = vadd.f32 %v2322_v16, %v1811_v10  ;;  %v1314_v10 = vsub.f32 %v290_v3, %v802_v4  ;;  %v1825_v16 = vmul.f32 %v1313_v5, %v1313_v5  ;;  %v303_v4 = vld [vmem:[#allocation3 + $0x7b0] sm:$0xff] }
 0x1df   :  { %v815_v5 = vld [vmem:[#allocation6 + $0x7b0] sm:$0xff] }
 0x1e0   :  { %v2324_v26 = vadd.f32 %v2323_v21, %v1812_v15  ;;  %v1315_v15 = vsub.f32 %v291_v8, %v803_v9  ;;  %v1826_v21 = vmul.f32 %v1314_v10, %v1314_v10  ;;  %v304_v9 = vld [vmem:[#allocation3 + $0x7b8] sm:$0xff] }
 0x1e1   :  { %v816_v10 = vld [vmem:[#allocation6 + $0x7b8] sm:$0xff] }
 0x1e2   :  { %v2325_v31 = vadd.f32 %v2324_v26, %v1813_v20  ;;  %v1316_v20 = vsub.f32 %v292_v13, %v804_v14  ;;  %v1827_v26 = vmul.f32 %v1315_v15, %v1315_v15  ;;  %v305_v14 = vld [vmem:[#allocation3 + $0x7c0] sm:$0xff] }
 0x1e3   :  { %v817_v15 = vld [vmem:[#allocation6 + $0x7c0] sm:$0xff] }
 0x1e4   :  { %v2326_v36 = vadd.f32 %v2325_v31, %v1814_v25  ;;  %v1317_v25 = vsub.f32 %v293_v18, %v805_v19  ;;  %v1828_v31 = vmul.f32 %v1316_v20, %v1316_v20  ;;  %v306_v19 = vld [vmem:[#allocation3 + $0x7c8] sm:$0xff] }
 0x1e5   :  { %v818_v20 = vld [vmem:[#allocation6 + $0x7c8] sm:$0xff] }
 0x1e6   :  { %v2327_v41 = vadd.f32 %v2326_v36, %v1815_v30  ;;  %v1318_v30 = vsub.f32 %v294_v23, %v806_v24  ;;  %v1829_v36 = vmul.f32 %v1317_v25, %v1317_v25  ;;  %v307_v24 = vld [vmem:[#allocation3 + $0x7d0] sm:$0xff] }
 0x1e7   :  { %v819_v25 = vld [vmem:[#allocation6 + $0x7d0] sm:$0xff] }
 0x1e8   :  { %v2328_v46 = vadd.f32 %v2327_v41, %v1816_v35  ;;  %v1319_v35 = vsub.f32 %v295_v28, %v807_v29  ;;  %v1830_v41 = vmul.f32 %v1318_v30, %v1318_v30  ;;  %v308_v29 = vld [vmem:[#allocation3 + $0x7d8] sm:$0xff] }
 0x1e9   :  { %v820_v30 = vld [vmem:[#allocation6 + $0x7d8] sm:$0xff] }
 0x1ea   :  { %v2329_v51 = vadd.f32 %v2328_v46, %v1817_v40  ;;  %v1320_v40 = vsub.f32 %v296_v33, %v808_v34  ;;  %v1831_v46 = vmul.f32 %v1319_v35, %v1319_v35  ;;  %v309_v34 = vld [vmem:[#allocation3 + $0x7e0] sm:$0xff] }
 0x1eb   :  { %v821_v35 = vld [vmem:[#allocation6 + $0x7e0] sm:$0xff] }
 0x1ec   :  { %v2330_v56 = vadd.f32 %v2329_v51, %v1818_v45  ;;  %v1321_v45 = vsub.f32 %v297_v38, %v809_v39  ;;  %v1832_v51 = vmul.f32 %v1320_v40, %v1320_v40  ;;  %v310_v39 = vld [vmem:[#allocation3 + $0x7e8] sm:$0xff] }
 0x1ed   :  { %v822_v40 = vld [vmem:[#allocation6 + $0x7e8] sm:$0xff] }
 0x1ee   :  { %v2331_v61 = vadd.f32 %v2330_v56, %v1819_v50  ;;  %v1322_v50 = vsub.f32 %v298_v43, %v810_v44  ;;  %v1833_v56 = vmul.f32 %v1321_v45, %v1321_v45  ;;  %v311_v44 = vld [vmem:[#allocation3 + $0x7f0] sm:$0xff] }
 0x1ef   :  { %v823_v45 = vld [vmem:[#allocation6 + $0x7f0] sm:$0xff] }
 0x1f0   :  { %v2332_v2 = vadd.f32 %v2331_v61, %v1820_v55  ;;  %v1323_v55 = vsub.f32 %v299_v48, %v811_v49  ;;  %v1834_v61 = vmul.f32 %v1322_v50, %v1322_v50  ;;  %v312_v49 = vld [vmem:[#allocation3 + $0x7f8] sm:$0xff] }
 0x1f1   :  { %v824_v50 = vld [vmem:[#allocation6 + $0x7f8] sm:$0xff] }
 0x1f2   :  { %v2333_v7 = vadd.f32 %v2332_v2, %v1821_v60  ;;  %v1324_v60 = vsub.f32 %v300_v53, %v812_v54  ;;  %v1835_v2 = vmul.f32 %v1323_v55, %v1323_v55  ;;  %v313_v54 = vld [vmem:[#allocation3 + $0x800] sm:$0xff] }
 0x1f3   :  { %v825_v55 = vld [vmem:[#allocation6 + $0x800] sm:$0xff] }
 0x1f4   :  { %v2334_v12 = vadd.f32 %v2333_v7, %v1822_v1  ;;  %v1325_v1 = vsub.f32 %v301_v58, %v813_v59  ;;  %v1836_v7 = vmul.f32 %v1324_v60, %v1324_v60  ;;  %v314_v59 = vld [vmem:[#allocation3 + $0x808] sm:$0xff] }
 0x1f5   :  { %v826_v60 = vld [vmem:[#allocation6 + $0x808] sm:$0xff] }
 0x1f6   :  { %v2335_v17 = vadd.f32 %v2334_v12, %v1823_v6  ;;  %v1326_v6 = vsub.f32 %v302_v63, %v814_v0  ;;  %v1837_v12 = vmul.f32 %v1325_v1, %v1325_v1  ;;  %v315_v0 = vld [vmem:[#allocation3 + $0x810] sm:$0xff] }
 0x1f7   :  { %v827_v1 = vld [vmem:[#allocation6 + $0x810] sm:$0xff] }
 0x1f8   :  { %v2336_v22 = vadd.f32 %v2335_v17, %v1824_v11  ;;  %v1327_v11 = vsub.f32 %v303_v4, %v815_v5  ;;  %v1838_v17 = vmul.f32 %v1326_v6, %v1326_v6  ;;  %v316_v5 = vld [vmem:[#allocation3 + $0x818] sm:$0xff] }
 0x1f9   :  { %v828_v6 = vld [vmem:[#allocation6 + $0x818] sm:$0xff] }
 0x1fa   :  { %v2337_v27 = vadd.f32 %v2336_v22, %v1825_v16  ;;  %v1328_v16 = vsub.f32 %v304_v9, %v816_v10  ;;  %v1839_v22 = vmul.f32 %v1327_v11, %v1327_v11  ;;  %v317_v10 = vld [vmem:[#allocation3 + $0x820] sm:$0xff] }
 0x1fb   :  { %v829_v11 = vld [vmem:[#allocation6 + $0x820] sm:$0xff] }
 0x1fc   :  { %v2338_v32 = vadd.f32 %v2337_v27, %v1826_v21  ;;  %v1329_v21 = vsub.f32 %v305_v14, %v817_v15  ;;  %v1840_v27 = vmul.f32 %v1328_v16, %v1328_v16  ;;  %v318_v15 = vld [vmem:[#allocation3 + $0x828] sm:$0xff] }
 0x1fd   :  { %v830_v16 = vld [vmem:[#allocation6 + $0x828] sm:$0xff] }
 0x1fe   :  { %v2339_v37 = vadd.f32 %v2338_v32, %v1827_v26  ;;  %v1330_v26 = vsub.f32 %v306_v19, %v818_v20  ;;  %v1841_v32 = vmul.f32 %v1329_v21, %v1329_v21  ;;  %v319_v20 = vld [vmem:[#allocation3 + $0x830] sm:$0xff] }
 0x1ff   :  { %v831_v21 = vld [vmem:[#allocation6 + $0x830] sm:$0xff] }
 0x200   :  { %v2340_v42 = vadd.f32 %v2339_v37, %v1828_v31  ;;  %v1331_v31 = vsub.f32 %v307_v24, %v819_v25  ;;  %v1842_v37 = vmul.f32 %v1330_v26, %v1330_v26  ;;  %v320_v25 = vld [vmem:[#allocation3 + $0x838] sm:$0xff] }
 0x201   :  { %v832_v26 = vld [vmem:[#allocation6 + $0x838] sm:$0xff] }
 0x202   :  { %v2341_v47 = vadd.f32 %v2340_v42, %v1829_v36  ;;  %v1332_v36 = vsub.f32 %v308_v29, %v820_v30  ;;  %v1843_v42 = vmul.f32 %v1331_v31, %v1331_v31  ;;  %v321_v30 = vld [vmem:[#allocation3 + $0x840] sm:$0xff] }
 0x203   :  { %v833_v31 = vld [vmem:[#allocation6 + $0x840] sm:$0xff] }
 0x204   :  { %v2342_v52 = vadd.f32 %v2341_v47, %v1830_v41  ;;  %v1333_v41 = vsub.f32 %v309_v34, %v821_v35  ;;  %v1844_v47 = vmul.f32 %v1332_v36, %v1332_v36  ;;  %v322_v35 = vld [vmem:[#allocation3 + $0x848] sm:$0xff] }
 0x205   :  { %v834_v36 = vld [vmem:[#allocation6 + $0x848] sm:$0xff] }
 0x206   :  { %v2343_v57 = vadd.f32 %v2342_v52, %v1831_v46  ;;  %v1334_v46 = vsub.f32 %v310_v39, %v822_v40  ;;  %v1845_v52 = vmul.f32 %v1333_v41, %v1333_v41  ;;  %v323_v40 = vld [vmem:[#allocation3 + $0x850] sm:$0xff] }
 0x207   :  { %v835_v41 = vld [vmem:[#allocation6 + $0x850] sm:$0xff] }
 0x208   :  { %v2344_v62 = vadd.f32 %v2343_v57, %v1832_v51  ;;  %v1335_v51 = vsub.f32 %v311_v44, %v823_v45  ;;  %v1846_v57 = vmul.f32 %v1334_v46, %v1334_v46  ;;  %v324_v45 = vld [vmem:[#allocation3 + $0x858] sm:$0xff] }
 0x209   :  { %v836_v46 = vld [vmem:[#allocation6 + $0x858] sm:$0xff] }
 0x20a   :  { %v2345_v3 = vadd.f32 %v2344_v62, %v1833_v56  ;;  %v1336_v56 = vsub.f32 %v312_v49, %v824_v50  ;;  %v1847_v62 = vmul.f32 %v1335_v51, %v1335_v51  ;;  %v325_v50 = vld [vmem:[#allocation3 + $0x860] sm:$0xff] }
 0x20b   :  { %v837_v51 = vld [vmem:[#allocation6 + $0x860] sm:$0xff] }
 0x20c   :  { %v2346_v8 = vadd.f32 %v2345_v3, %v1834_v61  ;;  %v1337_v61 = vsub.f32 %v313_v54, %v825_v55  ;;  %v1848_v3 = vmul.f32 %v1336_v56, %v1336_v56  ;;  %v326_v55 = vld [vmem:[#allocation3 + $0x868] sm:$0xff] }
 0x20d   :  { %v838_v56 = vld [vmem:[#allocation6 + $0x868] sm:$0xff] }
 0x20e   :  { %v2347_v13 = vadd.f32 %v2346_v8, %v1835_v2  ;;  %v1338_v2 = vsub.f32 %v314_v59, %v826_v60  ;;  %v1849_v8 = vmul.f32 %v1337_v61, %v1337_v61  ;;  %v327_v60 = vld [vmem:[#allocation3 + $0x870] sm:$0xff] }
 0x20f   :  { %v839_v61 = vld [vmem:[#allocation6 + $0x870] sm:$0xff] }
 0x210   :  { %v2348_v18 = vadd.f32 %v2347_v13, %v1836_v7  ;;  %v1339_v7 = vsub.f32 %v315_v0, %v827_v1  ;;  %v1850_v13 = vmul.f32 %v1338_v2, %v1338_v2  ;;  %v328_v1 = vld [vmem:[#allocation3 + $0x878] sm:$0xff] }
 0x211   :  { %v840_v2 = vld [vmem:[#allocation6 + $0x878] sm:$0xff] }
 0x212   :  { %v2349_v23 = vadd.f32 %v2348_v18, %v1837_v12  ;;  %v1340_v12 = vsub.f32 %v316_v5, %v828_v6  ;;  %v1851_v18 = vmul.f32 %v1339_v7, %v1339_v7  ;;  %v329_v6 = vld [vmem:[#allocation3 + $0x880] sm:$0xff] }
 0x213   :  { %v841_v7 = vld [vmem:[#allocation6 + $0x880] sm:$0xff] }
 0x214   :  { %v2350_v28 = vadd.f32 %v2349_v23, %v1838_v17  ;;  %v1341_v17 = vsub.f32 %v317_v10, %v829_v11  ;;  %v1852_v23 = vmul.f32 %v1340_v12, %v1340_v12  ;;  %v330_v11 = vld [vmem:[#allocation3 + $0x888] sm:$0xff] }
 0x215   :  { %v842_v12 = vld [vmem:[#allocation6 + $0x888] sm:$0xff] }
 0x216   :  { %v2351_v33 = vadd.f32 %v2350_v28, %v1839_v22  ;;  %v1342_v22 = vsub.f32 %v318_v15, %v830_v16  ;;  %v1853_v28 = vmul.f32 %v1341_v17, %v1341_v17  ;;  %v331_v16 = vld [vmem:[#allocation3 + $0x890] sm:$0xff] }
 0x217   :  { %v843_v17 = vld [vmem:[#allocation6 + $0x890] sm:$0xff] }
 0x218   :  { %v2352_v38 = vadd.f32 %v2351_v33, %v1840_v27  ;;  %v1343_v27 = vsub.f32 %v319_v20, %v831_v21  ;;  %v1854_v33 = vmul.f32 %v1342_v22, %v1342_v22  ;;  %v332_v21 = vld [vmem:[#allocation3 + $0x898] sm:$0xff] }
 0x219   :  { %v844_v22 = vld [vmem:[#allocation6 + $0x898] sm:$0xff] }
 0x21a   :  { %v2353_v43 = vadd.f32 %v2352_v38, %v1841_v32  ;;  %v1344_v32 = vsub.f32 %v320_v25, %v832_v26  ;;  %v1855_v38 = vmul.f32 %v1343_v27, %v1343_v27  ;;  %v333_v26 = vld [vmem:[#allocation3 + $0x8a0] sm:$0xff] }
 0x21b   :  { %v845_v27 = vld [vmem:[#allocation6 + $0x8a0] sm:$0xff] }
 0x21c   :  { %v2354_v48 = vadd.f32 %v2353_v43, %v1842_v37  ;;  %v1345_v37 = vsub.f32 %v321_v30, %v833_v31  ;;  %v1856_v43 = vmul.f32 %v1344_v32, %v1344_v32  ;;  %v334_v31 = vld [vmem:[#allocation3 + $0x8a8] sm:$0xff] }
 0x21d   :  { %v846_v32 = vld [vmem:[#allocation6 + $0x8a8] sm:$0xff] }
 0x21e   :  { %v2355_v53 = vadd.f32 %v2354_v48, %v1843_v42  ;;  %v1346_v42 = vsub.f32 %v322_v35, %v834_v36  ;;  %v1857_v48 = vmul.f32 %v1345_v37, %v1345_v37  ;;  %v335_v36 = vld [vmem:[#allocation3 + $0x8b0] sm:$0xff] }
 0x21f   :  { %v847_v37 = vld [vmem:[#allocation6 + $0x8b0] sm:$0xff] }
 0x220   :  { %v2356_v58 = vadd.f32 %v2355_v53, %v1844_v47  ;;  %v1347_v47 = vsub.f32 %v323_v40, %v835_v41  ;;  %v1858_v53 = vmul.f32 %v1346_v42, %v1346_v42  ;;  %v336_v41 = vld [vmem:[#allocation3 + $0x8b8] sm:$0xff] }
 0x221   :  { %v848_v42 = vld [vmem:[#allocation6 + $0x8b8] sm:$0xff] }
 0x222   :  { %v2357_v63 = vadd.f32 %v2356_v58, %v1845_v52  ;;  %v1348_v52 = vsub.f32 %v324_v45, %v836_v46  ;;  %v1859_v58 = vmul.f32 %v1347_v47, %v1347_v47  ;;  %v337_v46 = vld [vmem:[#allocation3 + $0x8c0] sm:$0xff] }
 0x223   :  { %v849_v47 = vld [vmem:[#allocation6 + $0x8c0] sm:$0xff] }
 0x224   :  { %v2358_v4 = vadd.f32 %v2357_v63, %v1846_v57  ;;  %v1349_v57 = vsub.f32 %v325_v50, %v837_v51  ;;  %v1860_v63 = vmul.f32 %v1348_v52, %v1348_v52  ;;  %v338_v51 = vld [vmem:[#allocation3 + $0x8c8] sm:$0xff] }
 0x225   :  { %v850_v52 = vld [vmem:[#allocation6 + $0x8c8] sm:$0xff] }
 0x226   :  { %v2359_v9 = vadd.f32 %v2358_v4, %v1847_v62  ;;  %v1350_v62 = vsub.f32 %v326_v55, %v838_v56  ;;  %v1861_v4 = vmul.f32 %v1349_v57, %v1349_v57  ;;  %v339_v56 = vld [vmem:[#allocation3 + $0x8d0] sm:$0xff] }
 0x227   :  { %v851_v57 = vld [vmem:[#allocation6 + $0x8d0] sm:$0xff] }
 0x228   :  { %v2360_v14 = vadd.f32 %v2359_v9, %v1848_v3  ;;  %v1351_v3 = vsub.f32 %v327_v60, %v839_v61  ;;  %v1862_v9 = vmul.f32 %v1350_v62, %v1350_v62  ;;  %v340_v61 = vld [vmem:[#allocation3 + $0x8d8] sm:$0xff] }
 0x229   :  { %v852_v62 = vld [vmem:[#allocation6 + $0x8d8] sm:$0xff] }
 0x22a   :  { %v2361_v19 = vadd.f32 %v2360_v14, %v1849_v8  ;;  %v1352_v8 = vsub.f32 %v328_v1, %v840_v2  ;;  %v1863_v14 = vmul.f32 %v1351_v3, %v1351_v3  ;;  %v341_v2 = vld [vmem:[#allocation3 + $0x8e0] sm:$0xff] }
 0x22b   :  { %v853_v3 = vld [vmem:[#allocation6 + $0x8e0] sm:$0xff] }
 0x22c   :  { %v2362_v24 = vadd.f32 %v2361_v19, %v1850_v13  ;;  %v1353_v13 = vsub.f32 %v329_v6, %v841_v7  ;;  %v1864_v19 = vmul.f32 %v1352_v8, %v1352_v8  ;;  %v342_v7 = vld [vmem:[#allocation3 + $0x8e8] sm:$0xff] }
 0x22d   :  { %v854_v8 = vld [vmem:[#allocation6 + $0x8e8] sm:$0xff] }
 0x22e   :  { %v2363_v29 = vadd.f32 %v2362_v24, %v1851_v18  ;;  %v1354_v18 = vsub.f32 %v330_v11, %v842_v12  ;;  %v1865_v24 = vmul.f32 %v1353_v13, %v1353_v13  ;;  %v343_v12 = vld [vmem:[#allocation3 + $0x8f0] sm:$0xff] }
 0x22f   :  { %v855_v13 = vld [vmem:[#allocation6 + $0x8f0] sm:$0xff] }
 0x230   :  { %v2364_v34 = vadd.f32 %v2363_v29, %v1852_v23  ;;  %v1355_v23 = vsub.f32 %v331_v16, %v843_v17  ;;  %v1866_v29 = vmul.f32 %v1354_v18, %v1354_v18  ;;  %v344_v17 = vld [vmem:[#allocation3 + $0x8f8] sm:$0xff] }
 0x231   :  { %v856_v18 = vld [vmem:[#allocation6 + $0x8f8] sm:$0xff] }
 0x232   :  { %v2365_v39 = vadd.f32 %v2364_v34, %v1853_v28  ;;  %v1356_v28 = vsub.f32 %v332_v21, %v844_v22  ;;  %v1867_v34 = vmul.f32 %v1355_v23, %v1355_v23  ;;  %v345_v22 = vld [vmem:[#allocation3 + $0x900] sm:$0xff] }
 0x233   :  { %v857_v23 = vld [vmem:[#allocation6 + $0x900] sm:$0xff] }
 0x234   :  { %v2366_v44 = vadd.f32 %v2365_v39, %v1854_v33  ;;  %v1357_v33 = vsub.f32 %v333_v26, %v845_v27  ;;  %v1868_v39 = vmul.f32 %v1356_v28, %v1356_v28  ;;  %v346_v27 = vld [vmem:[#allocation3 + $0x908] sm:$0xff] }
 0x235   :  { %v858_v28 = vld [vmem:[#allocation6 + $0x908] sm:$0xff] }
 0x236   :  { %v2367_v49 = vadd.f32 %v2366_v44, %v1855_v38  ;;  %v1358_v38 = vsub.f32 %v334_v31, %v846_v32  ;;  %v1869_v44 = vmul.f32 %v1357_v33, %v1357_v33  ;;  %v347_v32 = vld [vmem:[#allocation3 + $0x910] sm:$0xff] }
 0x237   :  { %v859_v33 = vld [vmem:[#allocation6 + $0x910] sm:$0xff] }
 0x238   :  { %v2368_v54 = vadd.f32 %v2367_v49, %v1856_v43  ;;  %v1359_v43 = vsub.f32 %v335_v36, %v847_v37  ;;  %v1870_v49 = vmul.f32 %v1358_v38, %v1358_v38  ;;  %v348_v37 = vld [vmem:[#allocation3 + $0x918] sm:$0xff] }
 0x239   :  { %v860_v38 = vld [vmem:[#allocation6 + $0x918] sm:$0xff] }
 0x23a   :  { %v2369_v59 = vadd.f32 %v2368_v54, %v1857_v48  ;;  %v1360_v48 = vsub.f32 %v336_v41, %v848_v42  ;;  %v1871_v54 = vmul.f32 %v1359_v43, %v1359_v43  ;;  %v349_v42 = vld [vmem:[#allocation3 + $0x920] sm:$0xff] }
 0x23b   :  { %v861_v43 = vld [vmem:[#allocation6 + $0x920] sm:$0xff] }
 0x23c   :  { %v2370_v0 = vadd.f32 %v2369_v59, %v1858_v53  ;;  %v1361_v53 = vsub.f32 %v337_v46, %v849_v47  ;;  %v1872_v59 = vmul.f32 %v1360_v48, %v1360_v48  ;;  %v350_v47 = vld [vmem:[#allocation3 + $0x928] sm:$0xff] }
 0x23d   :  { %v862_v48 = vld [vmem:[#allocation6 + $0x928] sm:$0xff] }
 0x23e   :  { %v2371_v5 = vadd.f32 %v2370_v0, %v1859_v58  ;;  %v1362_v58 = vsub.f32 %v338_v51, %v850_v52  ;;  %v1873_v0 = vmul.f32 %v1361_v53, %v1361_v53  ;;  %v351_v52 = vld [vmem:[#allocation3 + $0x930] sm:$0xff] }
 0x23f   :  { %v863_v53 = vld [vmem:[#allocation6 + $0x930] sm:$0xff] }
 0x240   :  { %v2372_v10 = vadd.f32 %v2371_v5, %v1860_v63  ;;  %v1363_v63 = vsub.f32 %v339_v56, %v851_v57  ;;  %v1874_v5 = vmul.f32 %v1362_v58, %v1362_v58  ;;  %v352_v57 = vld [vmem:[#allocation3 + $0x938] sm:$0xff] }
 0x241   :  { %v864_v58 = vld [vmem:[#allocation6 + $0x938] sm:$0xff] }
 0x242   :  { %v2373_v15 = vadd.f32 %v2372_v10, %v1861_v4  ;;  %v1364_v4 = vsub.f32 %v340_v61, %v852_v62  ;;  %v1875_v10 = vmul.f32 %v1363_v63, %v1363_v63  ;;  %v353_v62 = vld [vmem:[#allocation3 + $0x940] sm:$0xff] }
 0x243   :  { %v865_v63 = vld [vmem:[#allocation6 + $0x940] sm:$0xff] }
 0x244   :  { %v2374_v20 = vadd.f32 %v2373_v15, %v1862_v9  ;;  %v1365_v9 = vsub.f32 %v341_v2, %v853_v3  ;;  %v1876_v15 = vmul.f32 %v1364_v4, %v1364_v4  ;;  %v354_v3 = vld [vmem:[#allocation3 + $0x948] sm:$0xff] }
 0x245   :  { %v866_v4 = vld [vmem:[#allocation6 + $0x948] sm:$0xff] }
 0x246   :  { %v2375_v25 = vadd.f32 %v2374_v20, %v1863_v14  ;;  %v1366_v14 = vsub.f32 %v342_v7, %v854_v8  ;;  %v1877_v20 = vmul.f32 %v1365_v9, %v1365_v9  ;;  %v355_v8 = vld [vmem:[#allocation3 + $0x950] sm:$0xff] }
 0x247   :  { %v867_v9 = vld [vmem:[#allocation6 + $0x950] sm:$0xff] }
 0x248   :  { %v2376_v30 = vadd.f32 %v2375_v25, %v1864_v19  ;;  %v1367_v19 = vsub.f32 %v343_v12, %v855_v13  ;;  %v1878_v25 = vmul.f32 %v1366_v14, %v1366_v14  ;;  %v356_v13 = vld [vmem:[#allocation3 + $0x958] sm:$0xff] }
 0x249   :  { %v868_v14 = vld [vmem:[#allocation6 + $0x958] sm:$0xff] }
 0x24a   :  { %v2377_v35 = vadd.f32 %v2376_v30, %v1865_v24  ;;  %v1368_v24 = vsub.f32 %v344_v17, %v856_v18  ;;  %v1879_v30 = vmul.f32 %v1367_v19, %v1367_v19  ;;  %v357_v18 = vld [vmem:[#allocation3 + $0x960] sm:$0xff] }
 0x24b   :  { %v869_v19 = vld [vmem:[#allocation6 + $0x960] sm:$0xff] }
 0x24c   :  { %v2378_v40 = vadd.f32 %v2377_v35, %v1866_v29  ;;  %v1369_v29 = vsub.f32 %v345_v22, %v857_v23  ;;  %v1880_v35 = vmul.f32 %v1368_v24, %v1368_v24  ;;  %v358_v23 = vld [vmem:[#allocation3 + $0x968] sm:$0xff] }
 0x24d   :  { %v870_v24 = vld [vmem:[#allocation6 + $0x968] sm:$0xff] }
 0x24e   :  { %v2379_v45 = vadd.f32 %v2378_v40, %v1867_v34  ;;  %v1370_v34 = vsub.f32 %v346_v27, %v858_v28  ;;  %v1881_v40 = vmul.f32 %v1369_v29, %v1369_v29  ;;  %v359_v28 = vld [vmem:[#allocation3 + $0x970] sm:$0xff] }
 0x24f   :  { %v871_v29 = vld [vmem:[#allocation6 + $0x970] sm:$0xff] }
 0x250   :  { %v2380_v50 = vadd.f32 %v2379_v45, %v1868_v39  ;;  %v1371_v39 = vsub.f32 %v347_v32, %v859_v33  ;;  %v1882_v45 = vmul.f32 %v1370_v34, %v1370_v34  ;;  %v360_v33 = vld [vmem:[#allocation3 + $0x978] sm:$0xff] }
 0x251   :  { %v872_v34 = vld [vmem:[#allocation6 + $0x978] sm:$0xff] }
 0x252   :  { %v2381_v55 = vadd.f32 %v2380_v50, %v1869_v44  ;;  %v1372_v44 = vsub.f32 %v348_v37, %v860_v38  ;;  %v1883_v50 = vmul.f32 %v1371_v39, %v1371_v39  ;;  %v361_v38 = vld [vmem:[#allocation3 + $0x980] sm:$0xff] }
 0x253   :  { %v873_v39 = vld [vmem:[#allocation6 + $0x980] sm:$0xff] }
 0x254   :  { %v2382_v60 = vadd.f32 %v2381_v55, %v1870_v49  ;;  %v1373_v49 = vsub.f32 %v349_v42, %v861_v43  ;;  %v1884_v55 = vmul.f32 %v1372_v44, %v1372_v44  ;;  %v362_v43 = vld [vmem:[#allocation3 + $0x988] sm:$0xff] }
 0x255   :  { %v874_v44 = vld [vmem:[#allocation6 + $0x988] sm:$0xff] }
 0x256   :  { %v2383_v1 = vadd.f32 %v2382_v60, %v1871_v54  ;;  %v1374_v54 = vsub.f32 %v350_v47, %v862_v48  ;;  %v1885_v60 = vmul.f32 %v1373_v49, %v1373_v49  ;;  %v363_v48 = vld [vmem:[#allocation3 + $0x990] sm:$0xff] }
 0x257   :  { %v875_v49 = vld [vmem:[#allocation6 + $0x990] sm:$0xff] }
 0x258   :  { %v2384_v6 = vadd.f32 %v2383_v1, %v1872_v59  ;;  %v1375_v59 = vsub.f32 %v351_v52, %v863_v53  ;;  %v1886_v1 = vmul.f32 %v1374_v54, %v1374_v54  ;;  %v364_v53 = vld [vmem:[#allocation3 + $0x998] sm:$0xff] }
 0x259   :  { %v876_v54 = vld [vmem:[#allocation6 + $0x998] sm:$0xff] }
 0x25a   :  { %v2385_v11 = vadd.f32 %v2384_v6, %v1873_v0  ;;  %v1376_v0 = vsub.f32 %v352_v57, %v864_v58  ;;  %v1887_v6 = vmul.f32 %v1375_v59, %v1375_v59  ;;  %v365_v58 = vld [vmem:[#allocation3 + $0x9a0] sm:$0xff] }
 0x25b   :  { %v877_v59 = vld [vmem:[#allocation6 + $0x9a0] sm:$0xff] }
 0x25c   :  { %v2386_v16 = vadd.f32 %v2385_v11, %v1874_v5  ;;  %v1377_v5 = vsub.f32 %v353_v62, %v865_v63  ;;  %v1888_v11 = vmul.f32 %v1376_v0, %v1376_v0  ;;  %v366_v63 = vld [vmem:[#allocation3 + $0x9a8] sm:$0xff] }
 0x25d   :  { %v878_v0 = vld [vmem:[#allocation6 + $0x9a8] sm:$0xff] }
 0x25e   :  { %v2387_v21 = vadd.f32 %v2386_v16, %v1875_v10  ;;  %v1378_v10 = vsub.f32 %v354_v3, %v866_v4  ;;  %v1889_v16 = vmul.f32 %v1377_v5, %v1377_v5  ;;  %v367_v4 = vld [vmem:[#allocation3 + $0x9b0] sm:$0xff] }
 0x25f   :  { %v879_v5 = vld [vmem:[#allocation6 + $0x9b0] sm:$0xff] }
 0x260   :  { %v2388_v26 = vadd.f32 %v2387_v21, %v1876_v15  ;;  %v1379_v15 = vsub.f32 %v355_v8, %v867_v9  ;;  %v1890_v21 = vmul.f32 %v1378_v10, %v1378_v10  ;;  %v368_v9 = vld [vmem:[#allocation3 + $0x9b8] sm:$0xff] }
 0x261   :  { %v880_v10 = vld [vmem:[#allocation6 + $0x9b8] sm:$0xff] }
 0x262   :  { %v2389_v31 = vadd.f32 %v2388_v26, %v1877_v20  ;;  %v1380_v20 = vsub.f32 %v356_v13, %v868_v14  ;;  %v1891_v26 = vmul.f32 %v1379_v15, %v1379_v15  ;;  %v369_v14 = vld [vmem:[#allocation3 + $0x9c0] sm:$0xff] }
 0x263   :  { %v881_v15 = vld [vmem:[#allocation6 + $0x9c0] sm:$0xff] }
 0x264   :  { %v2390_v36 = vadd.f32 %v2389_v31, %v1878_v25  ;;  %v1381_v25 = vsub.f32 %v357_v18, %v869_v19  ;;  %v1892_v31 = vmul.f32 %v1380_v20, %v1380_v20  ;;  %v370_v19 = vld [vmem:[#allocation3 + $0x9c8] sm:$0xff] }
 0x265   :  { %v882_v20 = vld [vmem:[#allocation6 + $0x9c8] sm:$0xff] }
 0x266   :  { %v2391_v41 = vadd.f32 %v2390_v36, %v1879_v30  ;;  %v1382_v30 = vsub.f32 %v358_v23, %v870_v24  ;;  %v1893_v36 = vmul.f32 %v1381_v25, %v1381_v25  ;;  %v371_v24 = vld [vmem:[#allocation3 + $0x9d0] sm:$0xff] }
 0x267   :  { %v883_v25 = vld [vmem:[#allocation6 + $0x9d0] sm:$0xff] }
 0x268   :  { %v2392_v46 = vadd.f32 %v2391_v41, %v1880_v35  ;;  %v1383_v35 = vsub.f32 %v359_v28, %v871_v29  ;;  %v1894_v41 = vmul.f32 %v1382_v30, %v1382_v30  ;;  %v372_v29 = vld [vmem:[#allocation3 + $0x9d8] sm:$0xff] }
 0x269   :  { %v884_v30 = vld [vmem:[#allocation6 + $0x9d8] sm:$0xff] }
 0x26a   :  { %v2393_v51 = vadd.f32 %v2392_v46, %v1881_v40  ;;  %v1384_v40 = vsub.f32 %v360_v33, %v872_v34  ;;  %v1895_v46 = vmul.f32 %v1383_v35, %v1383_v35  ;;  %v373_v34 = vld [vmem:[#allocation3 + $0x9e0] sm:$0xff] }
 0x26b   :  { %v885_v35 = vld [vmem:[#allocation6 + $0x9e0] sm:$0xff] }
 0x26c   :  { %v2394_v56 = vadd.f32 %v2393_v51, %v1882_v45  ;;  %v1385_v45 = vsub.f32 %v361_v38, %v873_v39  ;;  %v1896_v51 = vmul.f32 %v1384_v40, %v1384_v40  ;;  %v374_v39 = vld [vmem:[#allocation3 + $0x9e8] sm:$0xff] }
 0x26d   :  { %v886_v40 = vld [vmem:[#allocation6 + $0x9e8] sm:$0xff] }
 0x26e   :  { %v2395_v61 = vadd.f32 %v2394_v56, %v1883_v50  ;;  %v1386_v50 = vsub.f32 %v362_v43, %v874_v44  ;;  %v1897_v56 = vmul.f32 %v1385_v45, %v1385_v45  ;;  %v375_v44 = vld [vmem:[#allocation3 + $0x9f0] sm:$0xff] }
 0x26f   :  { %v887_v45 = vld [vmem:[#allocation6 + $0x9f0] sm:$0xff] }
 0x270   :  { %v2396_v2 = vadd.f32 %v2395_v61, %v1884_v55  ;;  %v1387_v55 = vsub.f32 %v363_v48, %v875_v49  ;;  %v1898_v61 = vmul.f32 %v1386_v50, %v1386_v50  ;;  %v376_v49 = vld [vmem:[#allocation3 + $0x9f8] sm:$0xff] }
 0x271   :  { %v888_v50 = vld [vmem:[#allocation6 + $0x9f8] sm:$0xff] }
 0x272   :  { %v2397_v7 = vadd.f32 %v2396_v2, %v1885_v60  ;;  %v1388_v60 = vsub.f32 %v364_v53, %v876_v54  ;;  %v1899_v2 = vmul.f32 %v1387_v55, %v1387_v55  ;;  %v377_v54 = vld [vmem:[#allocation3 + $0xa00] sm:$0xff] }
 0x273   :  { %v889_v55 = vld [vmem:[#allocation6 + $0xa00] sm:$0xff] }
 0x274   :  { %v2398_v12 = vadd.f32 %v2397_v7, %v1886_v1  ;;  %v1389_v1 = vsub.f32 %v365_v58, %v877_v59  ;;  %v1900_v7 = vmul.f32 %v1388_v60, %v1388_v60  ;;  %v378_v59 = vld [vmem:[#allocation3 + $0xa08] sm:$0xff] }
 0x275   :  { %v890_v60 = vld [vmem:[#allocation6 + $0xa08] sm:$0xff] }
 0x276   :  { %v2399_v17 = vadd.f32 %v2398_v12, %v1887_v6  ;;  %v1390_v6 = vsub.f32 %v366_v63, %v878_v0  ;;  %v1901_v12 = vmul.f32 %v1389_v1, %v1389_v1  ;;  %v379_v0 = vld [vmem:[#allocation3 + $0xa10] sm:$0xff] }
 0x277   :  { %v891_v1 = vld [vmem:[#allocation6 + $0xa10] sm:$0xff] }
 0x278   :  { %v2400_v22 = vadd.f32 %v2399_v17, %v1888_v11  ;;  %v1391_v11 = vsub.f32 %v367_v4, %v879_v5  ;;  %v1902_v17 = vmul.f32 %v1390_v6, %v1390_v6  ;;  %v380_v5 = vld [vmem:[#allocation3 + $0xa18] sm:$0xff] }
 0x279   :  { %v892_v6 = vld [vmem:[#allocation6 + $0xa18] sm:$0xff] }
 0x27a   :  { %v2401_v27 = vadd.f32 %v2400_v22, %v1889_v16  ;;  %v1392_v16 = vsub.f32 %v368_v9, %v880_v10  ;;  %v1903_v22 = vmul.f32 %v1391_v11, %v1391_v11  ;;  %v381_v10 = vld [vmem:[#allocation3 + $0xa20] sm:$0xff] }
 0x27b   :  { %v893_v11 = vld [vmem:[#allocation6 + $0xa20] sm:$0xff] }
 0x27c   :  { %v2402_v32 = vadd.f32 %v2401_v27, %v1890_v21  ;;  %v1393_v21 = vsub.f32 %v369_v14, %v881_v15  ;;  %v1904_v27 = vmul.f32 %v1392_v16, %v1392_v16  ;;  %v382_v15 = vld [vmem:[#allocation3 + $0xa28] sm:$0xff] }
 0x27d   :  { %v894_v16 = vld [vmem:[#allocation6 + $0xa28] sm:$0xff] }
 0x27e   :  { %v2403_v37 = vadd.f32 %v2402_v32, %v1891_v26  ;;  %v1394_v26 = vsub.f32 %v370_v19, %v882_v20  ;;  %v1905_v32 = vmul.f32 %v1393_v21, %v1393_v21  ;;  %v383_v20 = vld [vmem:[#allocation3 + $0xa30] sm:$0xff] }
 0x27f   :  { %v895_v21 = vld [vmem:[#allocation6 + $0xa30] sm:$0xff] }
 0x280   :  { %v2404_v42 = vadd.f32 %v2403_v37, %v1892_v31  ;;  %v1395_v31 = vsub.f32 %v371_v24, %v883_v25  ;;  %v1906_v37 = vmul.f32 %v1394_v26, %v1394_v26  ;;  %v384_v25 = vld [vmem:[#allocation3 + $0xa38] sm:$0xff] }
 0x281   :  { %v896_v26 = vld [vmem:[#allocation6 + $0xa38] sm:$0xff] }
 0x282   :  { %v2405_v47 = vadd.f32 %v2404_v42, %v1893_v36  ;;  %v1396_v36 = vsub.f32 %v372_v29, %v884_v30  ;;  %v1907_v42 = vmul.f32 %v1395_v31, %v1395_v31  ;;  %v385_v30 = vld [vmem:[#allocation3 + $0xa40] sm:$0xff] }
 0x283   :  { %v897_v31 = vld [vmem:[#allocation6 + $0xa40] sm:$0xff] }
 0x284   :  { %v2406_v52 = vadd.f32 %v2405_v47, %v1894_v41  ;;  %v1397_v41 = vsub.f32 %v373_v34, %v885_v35  ;;  %v1908_v47 = vmul.f32 %v1396_v36, %v1396_v36  ;;  %v386_v35 = vld [vmem:[#allocation3 + $0xa48] sm:$0xff] }
 0x285   :  { %v898_v36 = vld [vmem:[#allocation6 + $0xa48] sm:$0xff] }
 0x286   :  { %v2407_v57 = vadd.f32 %v2406_v52, %v1895_v46  ;;  %v1398_v46 = vsub.f32 %v374_v39, %v886_v40  ;;  %v1909_v52 = vmul.f32 %v1397_v41, %v1397_v41  ;;  %v387_v40 = vld [vmem:[#allocation3 + $0xa50] sm:$0xff] }
 0x287   :  { %v899_v41 = vld [vmem:[#allocation6 + $0xa50] sm:$0xff] }
 0x288   :  { %v2408_v62 = vadd.f32 %v2407_v57, %v1896_v51  ;;  %v1399_v51 = vsub.f32 %v375_v44, %v887_v45  ;;  %v1910_v57 = vmul.f32 %v1398_v46, %v1398_v46  ;;  %v388_v45 = vld [vmem:[#allocation3 + $0xa58] sm:$0xff] }
 0x289   :  { %v900_v46 = vld [vmem:[#allocation6 + $0xa58] sm:$0xff] }
 0x28a   :  { %v2409_v3 = vadd.f32 %v2408_v62, %v1897_v56  ;;  %v1400_v56 = vsub.f32 %v376_v49, %v888_v50  ;;  %v1911_v62 = vmul.f32 %v1399_v51, %v1399_v51  ;;  %v389_v50 = vld [vmem:[#allocation3 + $0xa60] sm:$0xff] }
 0x28b   :  { %v901_v51 = vld [vmem:[#allocation6 + $0xa60] sm:$0xff] }
 0x28c   :  { %v2410_v8 = vadd.f32 %v2409_v3, %v1898_v61  ;;  %v1401_v61 = vsub.f32 %v377_v54, %v889_v55  ;;  %v1912_v3 = vmul.f32 %v1400_v56, %v1400_v56  ;;  %v390_v55 = vld [vmem:[#allocation3 + $0xa68] sm:$0xff] }
 0x28d   :  { %v902_v56 = vld [vmem:[#allocation6 + $0xa68] sm:$0xff] }
 0x28e   :  { %v2411_v13 = vadd.f32 %v2410_v8, %v1899_v2  ;;  %v1402_v2 = vsub.f32 %v378_v59, %v890_v60  ;;  %v1913_v8 = vmul.f32 %v1401_v61, %v1401_v61  ;;  %v391_v60 = vld [vmem:[#allocation3 + $0xa70] sm:$0xff] }
 0x28f   :  { %v903_v61 = vld [vmem:[#allocation6 + $0xa70] sm:$0xff] }
 0x290   :  { %v2412_v18 = vadd.f32 %v2411_v13, %v1900_v7  ;;  %v1403_v7 = vsub.f32 %v379_v0, %v891_v1  ;;  %v1914_v13 = vmul.f32 %v1402_v2, %v1402_v2  ;;  %v392_v1 = vld [vmem:[#allocation3 + $0xa78] sm:$0xff] }
 0x291   :  { %v904_v2 = vld [vmem:[#allocation6 + $0xa78] sm:$0xff] }
 0x292   :  { %v2413_v23 = vadd.f32 %v2412_v18, %v1901_v12  ;;  %v1404_v12 = vsub.f32 %v380_v5, %v892_v6  ;;  %v1915_v18 = vmul.f32 %v1403_v7, %v1403_v7  ;;  %v393_v6 = vld [vmem:[#allocation3 + $0xa80] sm:$0xff] }
 0x293   :  { %v905_v7 = vld [vmem:[#allocation6 + $0xa80] sm:$0xff] }
 0x294   :  { %v2414_v28 = vadd.f32 %v2413_v23, %v1902_v17  ;;  %v1405_v17 = vsub.f32 %v381_v10, %v893_v11  ;;  %v1916_v23 = vmul.f32 %v1404_v12, %v1404_v12  ;;  %v394_v11 = vld [vmem:[#allocation3 + $0xa88] sm:$0xff] }
 0x295   :  { %v906_v12 = vld [vmem:[#allocation6 + $0xa88] sm:$0xff] }
 0x296   :  { %v2415_v33 = vadd.f32 %v2414_v28, %v1903_v22  ;;  %v1406_v22 = vsub.f32 %v382_v15, %v894_v16  ;;  %v1917_v28 = vmul.f32 %v1405_v17, %v1405_v17  ;;  %v395_v16 = vld [vmem:[#allocation3 + $0xa90] sm:$0xff] }
 0x297   :  { %v907_v17 = vld [vmem:[#allocation6 + $0xa90] sm:$0xff] }
 0x298   :  { %v2416_v38 = vadd.f32 %v2415_v33, %v1904_v27  ;;  %v1407_v27 = vsub.f32 %v383_v20, %v895_v21  ;;  %v1918_v33 = vmul.f32 %v1406_v22, %v1406_v22  ;;  %v396_v21 = vld [vmem:[#allocation3 + $0xa98] sm:$0xff] }
 0x299   :  { %v908_v22 = vld [vmem:[#allocation6 + $0xa98] sm:$0xff] }
 0x29a   :  { %v2417_v43 = vadd.f32 %v2416_v38, %v1905_v32  ;;  %v1408_v32 = vsub.f32 %v384_v25, %v896_v26  ;;  %v1919_v38 = vmul.f32 %v1407_v27, %v1407_v27  ;;  %v397_v26 = vld [vmem:[#allocation3 + $0xaa0] sm:$0xff] }
 0x29b   :  { %v909_v27 = vld [vmem:[#allocation6 + $0xaa0] sm:$0xff] }
 0x29c   :  { %v2418_v48 = vadd.f32 %v2417_v43, %v1906_v37  ;;  %v1409_v37 = vsub.f32 %v385_v30, %v897_v31  ;;  %v1920_v43 = vmul.f32 %v1408_v32, %v1408_v32  ;;  %v398_v31 = vld [vmem:[#allocation3 + $0xaa8] sm:$0xff] }
 0x29d   :  { %v910_v32 = vld [vmem:[#allocation6 + $0xaa8] sm:$0xff] }
 0x29e   :  { %v2419_v53 = vadd.f32 %v2418_v48, %v1907_v42  ;;  %v1410_v42 = vsub.f32 %v386_v35, %v898_v36  ;;  %v1921_v48 = vmul.f32 %v1409_v37, %v1409_v37  ;;  %v399_v36 = vld [vmem:[#allocation3 + $0xab0] sm:$0xff] }
 0x29f   :  { %v911_v37 = vld [vmem:[#allocation6 + $0xab0] sm:$0xff] }
 0x2a0   :  { %v2420_v58 = vadd.f32 %v2419_v53, %v1908_v47  ;;  %v1411_v47 = vsub.f32 %v387_v40, %v899_v41  ;;  %v1922_v53 = vmul.f32 %v1410_v42, %v1410_v42  ;;  %v400_v41 = vld [vmem:[#allocation3 + $0xab8] sm:$0xff] }
 0x2a1   :  { %v912_v42 = vld [vmem:[#allocation6 + $0xab8] sm:$0xff] }
 0x2a2   :  { %v2421_v63 = vadd.f32 %v2420_v58, %v1909_v52  ;;  %v1412_v52 = vsub.f32 %v388_v45, %v900_v46  ;;  %v1923_v58 = vmul.f32 %v1411_v47, %v1411_v47  ;;  %v401_v46 = vld [vmem:[#allocation3 + $0xac0] sm:$0xff] }
 0x2a3   :  { %v913_v47 = vld [vmem:[#allocation6 + $0xac0] sm:$0xff] }
 0x2a4   :  { %v2422_v4 = vadd.f32 %v2421_v63, %v1910_v57  ;;  %v1413_v57 = vsub.f32 %v389_v50, %v901_v51  ;;  %v1924_v63 = vmul.f32 %v1412_v52, %v1412_v52  ;;  %v402_v51 = vld [vmem:[#allocation3 + $0xac8] sm:$0xff] }
 0x2a5   :  { %v914_v52 = vld [vmem:[#allocation6 + $0xac8] sm:$0xff] }
 0x2a6   :  { %v2423_v9 = vadd.f32 %v2422_v4, %v1911_v62  ;;  %v1414_v62 = vsub.f32 %v390_v55, %v902_v56  ;;  %v1925_v4 = vmul.f32 %v1413_v57, %v1413_v57  ;;  %v403_v56 = vld [vmem:[#allocation3 + $0xad0] sm:$0xff] }
 0x2a7   :  { %v915_v57 = vld [vmem:[#allocation6 + $0xad0] sm:$0xff] }
 0x2a8   :  { %v2424_v14 = vadd.f32 %v2423_v9, %v1912_v3  ;;  %v1415_v3 = vsub.f32 %v391_v60, %v903_v61  ;;  %v1926_v9 = vmul.f32 %v1414_v62, %v1414_v62  ;;  %v404_v61 = vld [vmem:[#allocation3 + $0xad8] sm:$0xff] }
 0x2a9   :  { %v916_v62 = vld [vmem:[#allocation6 + $0xad8] sm:$0xff] }
 0x2aa   :  { %v2425_v19 = vadd.f32 %v2424_v14, %v1913_v8  ;;  %v1416_v8 = vsub.f32 %v392_v1, %v904_v2  ;;  %v1927_v14 = vmul.f32 %v1415_v3, %v1415_v3  ;;  %v405_v2 = vld [vmem:[#allocation3 + $0xae0] sm:$0xff] }
 0x2ab   :  { %v917_v3 = vld [vmem:[#allocation6 + $0xae0] sm:$0xff] }
 0x2ac   :  { %v2426_v24 = vadd.f32 %v2425_v19, %v1914_v13  ;;  %v1417_v13 = vsub.f32 %v393_v6, %v905_v7  ;;  %v1928_v19 = vmul.f32 %v1416_v8, %v1416_v8  ;;  %v406_v7 = vld [vmem:[#allocation3 + $0xae8] sm:$0xff] }
 0x2ad   :  { %v918_v8 = vld [vmem:[#allocation6 + $0xae8] sm:$0xff] }
 0x2ae   :  { %v2427_v29 = vadd.f32 %v2426_v24, %v1915_v18  ;;  %v1418_v18 = vsub.f32 %v394_v11, %v906_v12  ;;  %v1929_v24 = vmul.f32 %v1417_v13, %v1417_v13  ;;  %v407_v12 = vld [vmem:[#allocation3 + $0xaf0] sm:$0xff] }
 0x2af   :  { %v919_v13 = vld [vmem:[#allocation6 + $0xaf0] sm:$0xff] }
 0x2b0   :  { %v2428_v34 = vadd.f32 %v2427_v29, %v1916_v23  ;;  %v1419_v23 = vsub.f32 %v395_v16, %v907_v17  ;;  %v1930_v29 = vmul.f32 %v1418_v18, %v1418_v18  ;;  %v408_v17 = vld [vmem:[#allocation3 + $0xaf8] sm:$0xff] }
 0x2b1   :  { %v920_v18 = vld [vmem:[#allocation6 + $0xaf8] sm:$0xff] }
 0x2b2   :  { %v2429_v39 = vadd.f32 %v2428_v34, %v1917_v28  ;;  %v1420_v28 = vsub.f32 %v396_v21, %v908_v22  ;;  %v1931_v34 = vmul.f32 %v1419_v23, %v1419_v23  ;;  %v409_v22 = vld [vmem:[#allocation3 + $0xb00] sm:$0xff] }
 0x2b3   :  { %v921_v23 = vld [vmem:[#allocation6 + $0xb00] sm:$0xff] }
 0x2b4   :  { %v2430_v44 = vadd.f32 %v2429_v39, %v1918_v33  ;;  %v1421_v33 = vsub.f32 %v397_v26, %v909_v27  ;;  %v1932_v39 = vmul.f32 %v1420_v28, %v1420_v28  ;;  %v410_v27 = vld [vmem:[#allocation3 + $0xb08] sm:$0xff] }
 0x2b5   :  { %v922_v28 = vld [vmem:[#allocation6 + $0xb08] sm:$0xff] }
 0x2b6   :  { %v2431_v49 = vadd.f32 %v2430_v44, %v1919_v38  ;;  %v1422_v38 = vsub.f32 %v398_v31, %v910_v32  ;;  %v1933_v44 = vmul.f32 %v1421_v33, %v1421_v33  ;;  %v411_v32 = vld [vmem:[#allocation3 + $0xb10] sm:$0xff] }
 0x2b7   :  { %v923_v33 = vld [vmem:[#allocation6 + $0xb10] sm:$0xff] }
 0x2b8   :  { %v2432_v54 = vadd.f32 %v2431_v49, %v1920_v43  ;;  %v1423_v43 = vsub.f32 %v399_v36, %v911_v37  ;;  %v1934_v49 = vmul.f32 %v1422_v38, %v1422_v38  ;;  %v412_v37 = vld [vmem:[#allocation3 + $0xb18] sm:$0xff] }
 0x2b9   :  { %v924_v38 = vld [vmem:[#allocation6 + $0xb18] sm:$0xff] }
 0x2ba   :  { %v2433_v59 = vadd.f32 %v2432_v54, %v1921_v48  ;;  %v1424_v48 = vsub.f32 %v400_v41, %v912_v42  ;;  %v1935_v54 = vmul.f32 %v1423_v43, %v1423_v43  ;;  %v413_v42 = vld [vmem:[#allocation3 + $0xb20] sm:$0xff] }
 0x2bb   :  { %v925_v43 = vld [vmem:[#allocation6 + $0xb20] sm:$0xff] }
 0x2bc   :  { %v2434_v0 = vadd.f32 %v2433_v59, %v1922_v53  ;;  %v1425_v53 = vsub.f32 %v401_v46, %v913_v47  ;;  %v1936_v59 = vmul.f32 %v1424_v48, %v1424_v48  ;;  %v414_v47 = vld [vmem:[#allocation3 + $0xb28] sm:$0xff] }
 0x2bd   :  { %v926_v48 = vld [vmem:[#allocation6 + $0xb28] sm:$0xff] }
 0x2be   :  { %v2435_v5 = vadd.f32 %v2434_v0, %v1923_v58  ;;  %v1426_v58 = vsub.f32 %v402_v51, %v914_v52  ;;  %v1937_v0 = vmul.f32 %v1425_v53, %v1425_v53  ;;  %v415_v52 = vld [vmem:[#allocation3 + $0xb30] sm:$0xff] }
 0x2bf   :  { %v927_v53 = vld [vmem:[#allocation6 + $0xb30] sm:$0xff] }
 0x2c0   :  { %v2436_v10 = vadd.f32 %v2435_v5, %v1924_v63  ;;  %v1427_v63 = vsub.f32 %v403_v56, %v915_v57  ;;  %v1938_v5 = vmul.f32 %v1426_v58, %v1426_v58  ;;  %v416_v57 = vld [vmem:[#allocation3 + $0xb38] sm:$0xff] }
 0x2c1   :  { %v928_v58 = vld [vmem:[#allocation6 + $0xb38] sm:$0xff] }
 0x2c2   :  { %v2437_v15 = vadd.f32 %v2436_v10, %v1925_v4  ;;  %v1428_v4 = vsub.f32 %v404_v61, %v916_v62  ;;  %v1939_v10 = vmul.f32 %v1427_v63, %v1427_v63  ;;  %v417_v62 = vld [vmem:[#allocation3 + $0xb40] sm:$0xff] }
 0x2c3   :  { %v929_v63 = vld [vmem:[#allocation6 + $0xb40] sm:$0xff] }
 0x2c4   :  { %v2438_v20 = vadd.f32 %v2437_v15, %v1926_v9  ;;  %v1429_v9 = vsub.f32 %v405_v2, %v917_v3  ;;  %v1940_v15 = vmul.f32 %v1428_v4, %v1428_v4  ;;  %v418_v3 = vld [vmem:[#allocation3 + $0xb48] sm:$0xff] }
 0x2c5   :  { %v930_v4 = vld [vmem:[#allocation6 + $0xb48] sm:$0xff] }
 0x2c6   :  { %v2439_v25 = vadd.f32 %v2438_v20, %v1927_v14  ;;  %v1430_v14 = vsub.f32 %v406_v7, %v918_v8  ;;  %v1941_v20 = vmul.f32 %v1429_v9, %v1429_v9  ;;  %v419_v8 = vld [vmem:[#allocation3 + $0xb50] sm:$0xff] }
 0x2c7   :  { %v931_v9 = vld [vmem:[#allocation6 + $0xb50] sm:$0xff] }
 0x2c8   :  { %v2440_v30 = vadd.f32 %v2439_v25, %v1928_v19  ;;  %v1431_v19 = vsub.f32 %v407_v12, %v919_v13  ;;  %v1942_v25 = vmul.f32 %v1430_v14, %v1430_v14  ;;  %v420_v13 = vld [vmem:[#allocation3 + $0xb58] sm:$0xff] }
 0x2c9   :  { %v932_v14 = vld [vmem:[#allocation6 + $0xb58] sm:$0xff] }
 0x2ca   :  { %v2441_v35 = vadd.f32 %v2440_v30, %v1929_v24  ;;  %v1432_v24 = vsub.f32 %v408_v17, %v920_v18  ;;  %v1943_v30 = vmul.f32 %v1431_v19, %v1431_v19  ;;  %v421_v18 = vld [vmem:[#allocation3 + $0xb60] sm:$0xff] }
 0x2cb   :  { %v933_v19 = vld [vmem:[#allocation6 + $0xb60] sm:$0xff] }
 0x2cc   :  { %v2442_v40 = vadd.f32 %v2441_v35, %v1930_v29  ;;  %v1433_v29 = vsub.f32 %v409_v22, %v921_v23  ;;  %v1944_v35 = vmul.f32 %v1432_v24, %v1432_v24  ;;  %v422_v23 = vld [vmem:[#allocation3 + $0xb68] sm:$0xff] }
 0x2cd   :  { %v934_v24 = vld [vmem:[#allocation6 + $0xb68] sm:$0xff] }
 0x2ce   :  { %v2443_v45 = vadd.f32 %v2442_v40, %v1931_v34  ;;  %v1434_v34 = vsub.f32 %v410_v27, %v922_v28  ;;  %v1945_v40 = vmul.f32 %v1433_v29, %v1433_v29  ;;  %v423_v28 = vld [vmem:[#allocation3 + $0xb70] sm:$0xff] }
 0x2cf   :  { %v935_v29 = vld [vmem:[#allocation6 + $0xb70] sm:$0xff] }
 0x2d0   :  { %v2444_v50 = vadd.f32 %v2443_v45, %v1932_v39  ;;  %v1435_v39 = vsub.f32 %v411_v32, %v923_v33  ;;  %v1946_v45 = vmul.f32 %v1434_v34, %v1434_v34  ;;  %v424_v33 = vld [vmem:[#allocation3 + $0xb78] sm:$0xff] }
 0x2d1   :  { %v936_v34 = vld [vmem:[#allocation6 + $0xb78] sm:$0xff] }
 0x2d2   :  { %v2445_v55 = vadd.f32 %v2444_v50, %v1933_v44  ;;  %v1436_v44 = vsub.f32 %v412_v37, %v924_v38  ;;  %v1947_v50 = vmul.f32 %v1435_v39, %v1435_v39  ;;  %v425_v38 = vld [vmem:[#allocation3 + $0xb80] sm:$0xff] }
 0x2d3   :  { %v937_v39 = vld [vmem:[#allocation6 + $0xb80] sm:$0xff] }
 0x2d4   :  { %v2446_v60 = vadd.f32 %v2445_v55, %v1934_v49  ;;  %v1437_v49 = vsub.f32 %v413_v42, %v925_v43  ;;  %v1948_v55 = vmul.f32 %v1436_v44, %v1436_v44  ;;  %v426_v43 = vld [vmem:[#allocation3 + $0xb88] sm:$0xff] }
 0x2d5   :  { %v938_v44 = vld [vmem:[#allocation6 + $0xb88] sm:$0xff] }
 0x2d6   :  { %v2447_v1 = vadd.f32 %v2446_v60, %v1935_v54  ;;  %v1438_v54 = vsub.f32 %v414_v47, %v926_v48  ;;  %v1949_v60 = vmul.f32 %v1437_v49, %v1437_v49  ;;  %v427_v48 = vld [vmem:[#allocation3 + $0xb90] sm:$0xff] }
 0x2d7   :  { %v939_v49 = vld [vmem:[#allocation6 + $0xb90] sm:$0xff] }
 0x2d8   :  { %v2448_v6 = vadd.f32 %v2447_v1, %v1936_v59  ;;  %v1439_v59 = vsub.f32 %v415_v52, %v927_v53  ;;  %v1950_v1 = vmul.f32 %v1438_v54, %v1438_v54  ;;  %v428_v53 = vld [vmem:[#allocation3 + $0xb98] sm:$0xff] }
 0x2d9   :  { %v940_v54 = vld [vmem:[#allocation6 + $0xb98] sm:$0xff] }
 0x2da   :  { %v2449_v11 = vadd.f32 %v2448_v6, %v1937_v0  ;;  %v1440_v0 = vsub.f32 %v416_v57, %v928_v58  ;;  %v1951_v6 = vmul.f32 %v1439_v59, %v1439_v59  ;;  %v429_v58 = vld [vmem:[#allocation3 + $0xba0] sm:$0xff] }
 0x2db   :  { %v941_v59 = vld [vmem:[#allocation6 + $0xba0] sm:$0xff] }
 0x2dc   :  { %v2450_v16 = vadd.f32 %v2449_v11, %v1938_v5  ;;  %v1441_v5 = vsub.f32 %v417_v62, %v929_v63  ;;  %v1952_v11 = vmul.f32 %v1440_v0, %v1440_v0  ;;  %v430_v63 = vld [vmem:[#allocation3 + $0xba8] sm:$0xff] }
 0x2dd   :  { %v942_v0 = vld [vmem:[#allocation6 + $0xba8] sm:$0xff] }
 0x2de   :  { %v2451_v21 = vadd.f32 %v2450_v16, %v1939_v10  ;;  %v1442_v10 = vsub.f32 %v418_v3, %v930_v4  ;;  %v1953_v16 = vmul.f32 %v1441_v5, %v1441_v5  ;;  %v431_v4 = vld [vmem:[#allocation3 + $0xbb0] sm:$0xff] }
 0x2df   :  { %v943_v5 = vld [vmem:[#allocation6 + $0xbb0] sm:$0xff] }
 0x2e0   :  { %v2452_v26 = vadd.f32 %v2451_v21, %v1940_v15  ;;  %v1443_v15 = vsub.f32 %v419_v8, %v931_v9  ;;  %v1954_v21 = vmul.f32 %v1442_v10, %v1442_v10  ;;  %v432_v9 = vld [vmem:[#allocation3 + $0xbb8] sm:$0xff] }
 0x2e1   :  { %v944_v10 = vld [vmem:[#allocation6 + $0xbb8] sm:$0xff] }
 0x2e2   :  { %v2453_v31 = vadd.f32 %v2452_v26, %v1941_v20  ;;  %v1444_v20 = vsub.f32 %v420_v13, %v932_v14  ;;  %v1955_v26 = vmul.f32 %v1443_v15, %v1443_v15  ;;  %v433_v14 = vld [vmem:[#allocation3 + $0xbc0] sm:$0xff] }
 0x2e3   :  { %v945_v15 = vld [vmem:[#allocation6 + $0xbc0] sm:$0xff] }
 0x2e4   :  { %v2454_v36 = vadd.f32 %v2453_v31, %v1942_v25  ;;  %v1445_v25 = vsub.f32 %v421_v18, %v933_v19  ;;  %v1956_v31 = vmul.f32 %v1444_v20, %v1444_v20  ;;  %v434_v19 = vld [vmem:[#allocation3 + $0xbc8] sm:$0xff] }
 0x2e5   :  { %v946_v20 = vld [vmem:[#allocation6 + $0xbc8] sm:$0xff] }
 0x2e6   :  { %v2455_v41 = vadd.f32 %v2454_v36, %v1943_v30  ;;  %v1446_v30 = vsub.f32 %v422_v23, %v934_v24  ;;  %v1957_v36 = vmul.f32 %v1445_v25, %v1445_v25  ;;  %v435_v24 = vld [vmem:[#allocation3 + $0xbd0] sm:$0xff] }
 0x2e7   :  { %v947_v25 = vld [vmem:[#allocation6 + $0xbd0] sm:$0xff] }
 0x2e8   :  { %v2456_v46 = vadd.f32 %v2455_v41, %v1944_v35  ;;  %v1447_v35 = vsub.f32 %v423_v28, %v935_v29  ;;  %v1958_v41 = vmul.f32 %v1446_v30, %v1446_v30  ;;  %v436_v29 = vld [vmem:[#allocation3 + $0xbd8] sm:$0xff] }
 0x2e9   :  { %v948_v30 = vld [vmem:[#allocation6 + $0xbd8] sm:$0xff] }
 0x2ea   :  { %v2457_v51 = vadd.f32 %v2456_v46, %v1945_v40  ;;  %v1448_v40 = vsub.f32 %v424_v33, %v936_v34  ;;  %v1959_v46 = vmul.f32 %v1447_v35, %v1447_v35  ;;  %v437_v34 = vld [vmem:[#allocation3 + $0xbe0] sm:$0xff] }
 0x2eb   :  { %v949_v35 = vld [vmem:[#allocation6 + $0xbe0] sm:$0xff] }
 0x2ec   :  { %v2458_v56 = vadd.f32 %v2457_v51, %v1946_v45  ;;  %v1449_v45 = vsub.f32 %v425_v38, %v937_v39  ;;  %v1960_v51 = vmul.f32 %v1448_v40, %v1448_v40  ;;  %v438_v39 = vld [vmem:[#allocation3 + $0xbe8] sm:$0xff] }
 0x2ed   :  { %v950_v40 = vld [vmem:[#allocation6 + $0xbe8] sm:$0xff] }
 0x2ee   :  { %v2459_v61 = vadd.f32 %v2458_v56, %v1947_v50  ;;  %v1450_v50 = vsub.f32 %v426_v43, %v938_v44  ;;  %v1961_v56 = vmul.f32 %v1449_v45, %v1449_v45  ;;  %v439_v44 = vld [vmem:[#allocation3 + $0xbf0] sm:$0xff] }
 0x2ef   :  { %v951_v45 = vld [vmem:[#allocation6 + $0xbf0] sm:$0xff] }
 0x2f0   :  { %v2460_v2 = vadd.f32 %v2459_v61, %v1948_v55  ;;  %v1451_v55 = vsub.f32 %v427_v48, %v939_v49  ;;  %v1962_v61 = vmul.f32 %v1450_v50, %v1450_v50  ;;  %v440_v49 = vld [vmem:[#allocation3 + $0xbf8] sm:$0xff] }
 0x2f1   :  { %v952_v50 = vld [vmem:[#allocation6 + $0xbf8] sm:$0xff] }
 0x2f2   :  { %v2461_v7 = vadd.f32 %v2460_v2, %v1949_v60  ;;  %v1452_v60 = vsub.f32 %v428_v53, %v940_v54  ;;  %v1963_v2 = vmul.f32 %v1451_v55, %v1451_v55  ;;  %v441_v54 = vld [vmem:[#allocation3 + $0xc00] sm:$0xff] }
 0x2f3   :  { %v953_v55 = vld [vmem:[#allocation6 + $0xc00] sm:$0xff] }
 0x2f4   :  { %v2462_v12 = vadd.f32 %v2461_v7, %v1950_v1  ;;  %v1453_v1 = vsub.f32 %v429_v58, %v941_v59  ;;  %v1964_v7 = vmul.f32 %v1452_v60, %v1452_v60  ;;  %v442_v59 = vld [vmem:[#allocation3 + $0xc08] sm:$0xff] }
 0x2f5   :  { %v954_v60 = vld [vmem:[#allocation6 + $0xc08] sm:$0xff] }
 0x2f6   :  { %v2463_v17 = vadd.f32 %v2462_v12, %v1951_v6  ;;  %v1454_v6 = vsub.f32 %v430_v63, %v942_v0  ;;  %v1965_v12 = vmul.f32 %v1453_v1, %v1453_v1  ;;  %v443_v0 = vld [vmem:[#allocation3 + $0xc10] sm:$0xff] }
 0x2f7   :  { %v955_v1 = vld [vmem:[#allocation6 + $0xc10] sm:$0xff] }
 0x2f8   :  { %v2464_v22 = vadd.f32 %v2463_v17, %v1952_v11  ;;  %v1455_v11 = vsub.f32 %v431_v4, %v943_v5  ;;  %v1966_v17 = vmul.f32 %v1454_v6, %v1454_v6  ;;  %v444_v5 = vld [vmem:[#allocation3 + $0xc18] sm:$0xff] }
 0x2f9   :  { %v956_v6 = vld [vmem:[#allocation6 + $0xc18] sm:$0xff] }
 0x2fa   :  { %v2465_v27 = vadd.f32 %v2464_v22, %v1953_v16  ;;  %v1456_v16 = vsub.f32 %v432_v9, %v944_v10  ;;  %v1967_v22 = vmul.f32 %v1455_v11, %v1455_v11  ;;  %v445_v10 = vld [vmem:[#allocation3 + $0xc20] sm:$0xff] }
 0x2fb   :  { %v957_v11 = vld [vmem:[#allocation6 + $0xc20] sm:$0xff] }
 0x2fc   :  { %v2466_v32 = vadd.f32 %v2465_v27, %v1954_v21  ;;  %v1457_v21 = vsub.f32 %v433_v14, %v945_v15  ;;  %v1968_v27 = vmul.f32 %v1456_v16, %v1456_v16  ;;  %v446_v15 = vld [vmem:[#allocation3 + $0xc28] sm:$0xff] }
 0x2fd   :  { %v958_v16 = vld [vmem:[#allocation6 + $0xc28] sm:$0xff] }
 0x2fe   :  { %v2467_v37 = vadd.f32 %v2466_v32, %v1955_v26  ;;  %v1458_v26 = vsub.f32 %v434_v19, %v946_v20  ;;  %v1969_v32 = vmul.f32 %v1457_v21, %v1457_v21  ;;  %v447_v20 = vld [vmem:[#allocation3 + $0xc30] sm:$0xff] }
 0x2ff   :  { %v959_v21 = vld [vmem:[#allocation6 + $0xc30] sm:$0xff] }
 0x300   :  { %v2468_v42 = vadd.f32 %v2467_v37, %v1956_v31  ;;  %v1459_v31 = vsub.f32 %v435_v24, %v947_v25  ;;  %v1970_v37 = vmul.f32 %v1458_v26, %v1458_v26  ;;  %v448_v25 = vld [vmem:[#allocation3 + $0xc38] sm:$0xff] }
 0x301   :  { %v960_v26 = vld [vmem:[#allocation6 + $0xc38] sm:$0xff] }
 0x302   :  { %v2469_v47 = vadd.f32 %v2468_v42, %v1957_v36  ;;  %v1460_v36 = vsub.f32 %v436_v29, %v948_v30  ;;  %v1971_v42 = vmul.f32 %v1459_v31, %v1459_v31  ;;  %v449_v30 = vld [vmem:[#allocation3 + $0xc40] sm:$0xff] }
 0x303   :  { %v961_v31 = vld [vmem:[#allocation6 + $0xc40] sm:$0xff] }
 0x304   :  { %v2470_v52 = vadd.f32 %v2469_v47, %v1958_v41  ;;  %v1461_v41 = vsub.f32 %v437_v34, %v949_v35  ;;  %v1972_v47 = vmul.f32 %v1460_v36, %v1460_v36  ;;  %v450_v35 = vld [vmem:[#allocation3 + $0xc48] sm:$0xff] }
 0x305   :  { %v962_v36 = vld [vmem:[#allocation6 + $0xc48] sm:$0xff] }
 0x306   :  { %v2471_v57 = vadd.f32 %v2470_v52, %v1959_v46  ;;  %v1462_v46 = vsub.f32 %v438_v39, %v950_v40  ;;  %v1973_v52 = vmul.f32 %v1461_v41, %v1461_v41  ;;  %v451_v40 = vld [vmem:[#allocation3 + $0xc50] sm:$0xff] }
 0x307   :  { %v963_v41 = vld [vmem:[#allocation6 + $0xc50] sm:$0xff] }
 0x308   :  { %v2472_v62 = vadd.f32 %v2471_v57, %v1960_v51  ;;  %v1463_v51 = vsub.f32 %v439_v44, %v951_v45  ;;  %v1974_v57 = vmul.f32 %v1462_v46, %v1462_v46  ;;  %v452_v45 = vld [vmem:[#allocation3 + $0xc58] sm:$0xff] }
 0x309   :  { %v964_v46 = vld [vmem:[#allocation6 + $0xc58] sm:$0xff] }
 0x30a   :  { %v2473_v3 = vadd.f32 %v2472_v62, %v1961_v56  ;;  %v1464_v56 = vsub.f32 %v440_v49, %v952_v50  ;;  %v1975_v62 = vmul.f32 %v1463_v51, %v1463_v51  ;;  %v453_v50 = vld [vmem:[#allocation3 + $0xc60] sm:$0xff] }
 0x30b   :  { %v965_v51 = vld [vmem:[#allocation6 + $0xc60] sm:$0xff] }
 0x30c   :  { %v2474_v8 = vadd.f32 %v2473_v3, %v1962_v61  ;;  %v1465_v61 = vsub.f32 %v441_v54, %v953_v55  ;;  %v1976_v3 = vmul.f32 %v1464_v56, %v1464_v56  ;;  %v454_v55 = vld [vmem:[#allocation3 + $0xc68] sm:$0xff] }
 0x30d   :  { %v966_v56 = vld [vmem:[#allocation6 + $0xc68] sm:$0xff] }
 0x30e   :  { %v2475_v13 = vadd.f32 %v2474_v8, %v1963_v2  ;;  %v1466_v2 = vsub.f32 %v442_v59, %v954_v60  ;;  %v1977_v8 = vmul.f32 %v1465_v61, %v1465_v61  ;;  %v455_v60 = vld [vmem:[#allocation3 + $0xc70] sm:$0xff] }
 0x30f   :  { %v967_v61 = vld [vmem:[#allocation6 + $0xc70] sm:$0xff] }
 0x310   :  { %v2476_v18 = vadd.f32 %v2475_v13, %v1964_v7  ;;  %v1467_v7 = vsub.f32 %v443_v0, %v955_v1  ;;  %v1978_v13 = vmul.f32 %v1466_v2, %v1466_v2  ;;  %v456_v1 = vld [vmem:[#allocation3 + $0xc78] sm:$0xff] }
 0x311   :  { %v968_v2 = vld [vmem:[#allocation6 + $0xc78] sm:$0xff] }
 0x312   :  { %v2477_v23 = vadd.f32 %v2476_v18, %v1965_v12  ;;  %v1468_v12 = vsub.f32 %v444_v5, %v956_v6  ;;  %v1979_v18 = vmul.f32 %v1467_v7, %v1467_v7  ;;  %v457_v6 = vld [vmem:[#allocation3 + $0xc80] sm:$0xff] }
 0x313   :  { %v969_v7 = vld [vmem:[#allocation6 + $0xc80] sm:$0xff] }
 0x314   :  { %v2478_v28 = vadd.f32 %v2477_v23, %v1966_v17  ;;  %v1469_v17 = vsub.f32 %v445_v10, %v957_v11  ;;  %v1980_v23 = vmul.f32 %v1468_v12, %v1468_v12  ;;  %v458_v11 = vld [vmem:[#allocation3 + $0xc88] sm:$0xff] }
 0x315   :  { %v970_v12 = vld [vmem:[#allocation6 + $0xc88] sm:$0xff] }
 0x316   :  { %v2479_v33 = vadd.f32 %v2478_v28, %v1967_v22  ;;  %v1470_v22 = vsub.f32 %v446_v15, %v958_v16  ;;  %v1981_v28 = vmul.f32 %v1469_v17, %v1469_v17  ;;  %v459_v16 = vld [vmem:[#allocation3 + $0xc90] sm:$0xff] }
 0x317   :  { %v971_v17 = vld [vmem:[#allocation6 + $0xc90] sm:$0xff] }
 0x318   :  { %v2480_v38 = vadd.f32 %v2479_v33, %v1968_v27  ;;  %v1471_v27 = vsub.f32 %v447_v20, %v959_v21  ;;  %v1982_v33 = vmul.f32 %v1470_v22, %v1470_v22  ;;  %v460_v21 = vld [vmem:[#allocation3 + $0xc98] sm:$0xff] }
 0x319   :  { %v972_v22 = vld [vmem:[#allocation6 + $0xc98] sm:$0xff] }
 0x31a   :  { %v2481_v43 = vadd.f32 %v2480_v38, %v1969_v32  ;;  %v1472_v32 = vsub.f32 %v448_v25, %v960_v26  ;;  %v1983_v38 = vmul.f32 %v1471_v27, %v1471_v27  ;;  %v461_v26 = vld [vmem:[#allocation3 + $0xca0] sm:$0xff] }
 0x31b   :  { %v973_v27 = vld [vmem:[#allocation6 + $0xca0] sm:$0xff] }
 0x31c   :  { %v2482_v48 = vadd.f32 %v2481_v43, %v1970_v37  ;;  %v1473_v37 = vsub.f32 %v449_v30, %v961_v31  ;;  %v1984_v43 = vmul.f32 %v1472_v32, %v1472_v32  ;;  %v462_v31 = vld [vmem:[#allocation3 + $0xca8] sm:$0xff] }
 0x31d   :  { %v974_v32 = vld [vmem:[#allocation6 + $0xca8] sm:$0xff] }
 0x31e   :  { %v2483_v53 = vadd.f32 %v2482_v48, %v1971_v42  ;;  %v1474_v42 = vsub.f32 %v450_v35, %v962_v36  ;;  %v1985_v48 = vmul.f32 %v1473_v37, %v1473_v37  ;;  %v463_v36 = vld [vmem:[#allocation3 + $0xcb0] sm:$0xff] }
 0x31f   :  { %v975_v37 = vld [vmem:[#allocation6 + $0xcb0] sm:$0xff] }
 0x320   :  { %v2484_v58 = vadd.f32 %v2483_v53, %v1972_v47  ;;  %v1475_v47 = vsub.f32 %v451_v40, %v963_v41  ;;  %v1986_v53 = vmul.f32 %v1474_v42, %v1474_v42  ;;  %v464_v41 = vld [vmem:[#allocation3 + $0xcb8] sm:$0xff] }
 0x321   :  { %v976_v42 = vld [vmem:[#allocation6 + $0xcb8] sm:$0xff] }
 0x322   :  { %v2485_v63 = vadd.f32 %v2484_v58, %v1973_v52  ;;  %v1476_v52 = vsub.f32 %v452_v45, %v964_v46  ;;  %v1987_v58 = vmul.f32 %v1475_v47, %v1475_v47  ;;  %v465_v46 = vld [vmem:[#allocation3 + $0xcc0] sm:$0xff] }
 0x323   :  { %v977_v47 = vld [vmem:[#allocation6 + $0xcc0] sm:$0xff] }
 0x324   :  { %v2486_v4 = vadd.f32 %v2485_v63, %v1974_v57  ;;  %v1477_v57 = vsub.f32 %v453_v50, %v965_v51  ;;  %v1988_v63 = vmul.f32 %v1476_v52, %v1476_v52  ;;  %v466_v51 = vld [vmem:[#allocation3 + $0xcc8] sm:$0xff] }
 0x325   :  { %v978_v52 = vld [vmem:[#allocation6 + $0xcc8] sm:$0xff] }
 0x326   :  { %v2487_v9 = vadd.f32 %v2486_v4, %v1975_v62  ;;  %v1478_v62 = vsub.f32 %v454_v55, %v966_v56  ;;  %v1989_v4 = vmul.f32 %v1477_v57, %v1477_v57  ;;  %v467_v56 = vld [vmem:[#allocation3 + $0xcd0] sm:$0xff] }
 0x327   :  { %v979_v57 = vld [vmem:[#allocation6 + $0xcd0] sm:$0xff] }
 0x328   :  { %v2488_v14 = vadd.f32 %v2487_v9, %v1976_v3  ;;  %v1479_v3 = vsub.f32 %v455_v60, %v967_v61  ;;  %v1990_v9 = vmul.f32 %v1478_v62, %v1478_v62  ;;  %v468_v61 = vld [vmem:[#allocation3 + $0xcd8] sm:$0xff] }
 0x329   :  { %v980_v62 = vld [vmem:[#allocation6 + $0xcd8] sm:$0xff] }
 0x32a   :  { %v2489_v19 = vadd.f32 %v2488_v14, %v1977_v8  ;;  %v1480_v8 = vsub.f32 %v456_v1, %v968_v2  ;;  %v1991_v14 = vmul.f32 %v1479_v3, %v1479_v3  ;;  %v469_v2 = vld [vmem:[#allocation3 + $0xce0] sm:$0xff] }
 0x32b   :  { %v981_v3 = vld [vmem:[#allocation6 + $0xce0] sm:$0xff] }
 0x32c   :  { %v2490_v24 = vadd.f32 %v2489_v19, %v1978_v13  ;;  %v1481_v13 = vsub.f32 %v457_v6, %v969_v7  ;;  %v1992_v19 = vmul.f32 %v1480_v8, %v1480_v8  ;;  %v470_v7 = vld [vmem:[#allocation3 + $0xce8] sm:$0xff] }
 0x32d   :  { %v982_v8 = vld [vmem:[#allocation6 + $0xce8] sm:$0xff] }
 0x32e   :  { %v2491_v29 = vadd.f32 %v2490_v24, %v1979_v18  ;;  %v1482_v18 = vsub.f32 %v458_v11, %v970_v12  ;;  %v1993_v24 = vmul.f32 %v1481_v13, %v1481_v13  ;;  %v471_v12 = vld [vmem:[#allocation3 + $0xcf0] sm:$0xff] }
 0x32f   :  { %v983_v13 = vld [vmem:[#allocation6 + $0xcf0] sm:$0xff] }
 0x330   :  { %v2492_v34 = vadd.f32 %v2491_v29, %v1980_v23  ;;  %v1483_v23 = vsub.f32 %v459_v16, %v971_v17  ;;  %v1994_v29 = vmul.f32 %v1482_v18, %v1482_v18  ;;  %v472_v17 = vld [vmem:[#allocation3 + $0xcf8] sm:$0xff] }
 0x331   :  { %v984_v18 = vld [vmem:[#allocation6 + $0xcf8] sm:$0xff] }
 0x332   :  { %v2493_v39 = vadd.f32 %v2492_v34, %v1981_v28  ;;  %v1484_v28 = vsub.f32 %v460_v21, %v972_v22  ;;  %v1995_v34 = vmul.f32 %v1483_v23, %v1483_v23  ;;  %v473_v22 = vld [vmem:[#allocation3 + $0xd00] sm:$0xff] }
 0x333   :  { %v985_v23 = vld [vmem:[#allocation6 + $0xd00] sm:$0xff] }
 0x334   :  { %v2494_v44 = vadd.f32 %v2493_v39, %v1982_v33  ;;  %v1485_v33 = vsub.f32 %v461_v26, %v973_v27  ;;  %v1996_v39 = vmul.f32 %v1484_v28, %v1484_v28  ;;  %v474_v27 = vld [vmem:[#allocation3 + $0xd08] sm:$0xff] }
 0x335   :  { %v986_v28 = vld [vmem:[#allocation6 + $0xd08] sm:$0xff] }
 0x336   :  { %v2495_v49 = vadd.f32 %v2494_v44, %v1983_v38  ;;  %v1486_v38 = vsub.f32 %v462_v31, %v974_v32  ;;  %v1997_v44 = vmul.f32 %v1485_v33, %v1485_v33  ;;  %v475_v32 = vld [vmem:[#allocation3 + $0xd10] sm:$0xff] }
 0x337   :  { %v987_v33 = vld [vmem:[#allocation6 + $0xd10] sm:$0xff] }
 0x338   :  { %v2496_v54 = vadd.f32 %v2495_v49, %v1984_v43  ;;  %v1487_v43 = vsub.f32 %v463_v36, %v975_v37  ;;  %v1998_v49 = vmul.f32 %v1486_v38, %v1486_v38  ;;  %v476_v37 = vld [vmem:[#allocation3 + $0xd18] sm:$0xff] }
 0x339   :  { %v988_v38 = vld [vmem:[#allocation6 + $0xd18] sm:$0xff] }
 0x33a   :  { %v2497_v59 = vadd.f32 %v2496_v54, %v1985_v48  ;;  %v1488_v48 = vsub.f32 %v464_v41, %v976_v42  ;;  %v1999_v54 = vmul.f32 %v1487_v43, %v1487_v43  ;;  %v477_v42 = vld [vmem:[#allocation3 + $0xd20] sm:$0xff] }
 0x33b   :  { %v989_v43 = vld [vmem:[#allocation6 + $0xd20] sm:$0xff] }
 0x33c   :  { %v2498_v0 = vadd.f32 %v2497_v59, %v1986_v53  ;;  %v1489_v53 = vsub.f32 %v465_v46, %v977_v47  ;;  %v2000_v59 = vmul.f32 %v1488_v48, %v1488_v48  ;;  %v478_v47 = vld [vmem:[#allocation3 + $0xd28] sm:$0xff] }
 0x33d   :  { %v990_v48 = vld [vmem:[#allocation6 + $0xd28] sm:$0xff] }
 0x33e   :  { %v2499_v5 = vadd.f32 %v2498_v0, %v1987_v58  ;;  %v1490_v58 = vsub.f32 %v466_v51, %v978_v52  ;;  %v2001_v0 = vmul.f32 %v1489_v53, %v1489_v53  ;;  %v479_v52 = vld [vmem:[#allocation3 + $0xd30] sm:$0xff] }
 0x33f   :  { %v991_v53 = vld [vmem:[#allocation6 + $0xd30] sm:$0xff] }
 0x340   :  { %v2500_v10 = vadd.f32 %v2499_v5, %v1988_v63  ;;  %v1491_v63 = vsub.f32 %v467_v56, %v979_v57  ;;  %v2002_v5 = vmul.f32 %v1490_v58, %v1490_v58  ;;  %v480_v57 = vld [vmem:[#allocation3 + $0xd38] sm:$0xff] }
 0x341   :  { %v992_v58 = vld [vmem:[#allocation6 + $0xd38] sm:$0xff] }
 0x342   :  { %v2501_v15 = vadd.f32 %v2500_v10, %v1989_v4  ;;  %v1492_v4 = vsub.f32 %v468_v61, %v980_v62  ;;  %v2003_v10 = vmul.f32 %v1491_v63, %v1491_v63  ;;  %v481_v62 = vld [vmem:[#allocation3 + $0xd40] sm:$0xff] }
 0x343   :  { %v993_v63 = vld [vmem:[#allocation6 + $0xd40] sm:$0xff] }
 0x344   :  { %v2502_v20 = vadd.f32 %v2501_v15, %v1990_v9  ;;  %v1493_v9 = vsub.f32 %v469_v2, %v981_v3  ;;  %v2004_v15 = vmul.f32 %v1492_v4, %v1492_v4  ;;  %v482_v3 = vld [vmem:[#allocation3 + $0xd48] sm:$0xff] }
 0x345   :  { %v994_v4 = vld [vmem:[#allocation6 + $0xd48] sm:$0xff] }
 0x346   :  { %v2503_v25 = vadd.f32 %v2502_v20, %v1991_v14  ;;  %v1494_v14 = vsub.f32 %v470_v7, %v982_v8  ;;  %v2005_v20 = vmul.f32 %v1493_v9, %v1493_v9  ;;  %v483_v8 = vld [vmem:[#allocation3 + $0xd50] sm:$0xff] }
 0x347   :  { %v995_v9 = vld [vmem:[#allocation6 + $0xd50] sm:$0xff] }
 0x348   :  { %v2504_v30 = vadd.f32 %v2503_v25, %v1992_v19  ;;  %v1495_v19 = vsub.f32 %v471_v12, %v983_v13  ;;  %v2006_v25 = vmul.f32 %v1494_v14, %v1494_v14  ;;  %v484_v13 = vld [vmem:[#allocation3 + $0xd58] sm:$0xff] }
 0x349   :  { %v996_v14 = vld [vmem:[#allocation6 + $0xd58] sm:$0xff] }
 0x34a   :  { %v2505_v35 = vadd.f32 %v2504_v30, %v1993_v24  ;;  %v1496_v24 = vsub.f32 %v472_v17, %v984_v18  ;;  %v2007_v30 = vmul.f32 %v1495_v19, %v1495_v19  ;;  %v485_v18 = vld [vmem:[#allocation3 + $0xd60] sm:$0xff] }
 0x34b   :  { %v997_v19 = vld [vmem:[#allocation6 + $0xd60] sm:$0xff] }
 0x34c   :  { %v2506_v40 = vadd.f32 %v2505_v35, %v1994_v29  ;;  %v1497_v29 = vsub.f32 %v473_v22, %v985_v23  ;;  %v2008_v35 = vmul.f32 %v1496_v24, %v1496_v24  ;;  %v486_v23 = vld [vmem:[#allocation3 + $0xd68] sm:$0xff] }
 0x34d   :  { %v998_v24 = vld [vmem:[#allocation6 + $0xd68] sm:$0xff] }
 0x34e   :  { %v2507_v45 = vadd.f32 %v2506_v40, %v1995_v34  ;;  %v1498_v34 = vsub.f32 %v474_v27, %v986_v28  ;;  %v2009_v40 = vmul.f32 %v1497_v29, %v1497_v29  ;;  %v487_v28 = vld [vmem:[#allocation3 + $0xd70] sm:$0xff] }
 0x34f   :  { %v999_v29 = vld [vmem:[#allocation6 + $0xd70] sm:$0xff] }
 0x350   :  { %v2508_v50 = vadd.f32 %v2507_v45, %v1996_v39  ;;  %v1499_v39 = vsub.f32 %v475_v32, %v987_v33  ;;  %v2010_v45 = vmul.f32 %v1498_v34, %v1498_v34  ;;  %v488_v33 = vld [vmem:[#allocation3 + $0xd78] sm:$0xff] }
 0x351   :  { %v1000_v34 = vld [vmem:[#allocation6 + $0xd78] sm:$0xff] }
 0x352   :  { %v2509_v55 = vadd.f32 %v2508_v50, %v1997_v44  ;;  %v1500_v44 = vsub.f32 %v476_v37, %v988_v38  ;;  %v2011_v50 = vmul.f32 %v1499_v39, %v1499_v39  ;;  %v489_v38 = vld [vmem:[#allocation3 + $0xd80] sm:$0xff] }
 0x353   :  { %v1001_v39 = vld [vmem:[#allocation6 + $0xd80] sm:$0xff] }
 0x354   :  { %v2510_v60 = vadd.f32 %v2509_v55, %v1998_v49  ;;  %v1501_v49 = vsub.f32 %v477_v42, %v989_v43  ;;  %v2012_v55 = vmul.f32 %v1500_v44, %v1500_v44  ;;  %v490_v43 = vld [vmem:[#allocation3 + $0xd88] sm:$0xff] }
 0x355   :  { %v1002_v44 = vld [vmem:[#allocation6 + $0xd88] sm:$0xff] }
 0x356   :  { %v2511_v1 = vadd.f32 %v2510_v60, %v1999_v54  ;;  %v1502_v54 = vsub.f32 %v478_v47, %v990_v48  ;;  %v2013_v60 = vmul.f32 %v1501_v49, %v1501_v49  ;;  %v491_v48 = vld [vmem:[#allocation3 + $0xd90] sm:$0xff] }
 0x357   :  { %v1003_v49 = vld [vmem:[#allocation6 + $0xd90] sm:$0xff] }
 0x358   :  { %v2512_v6 = vadd.f32 %v2511_v1, %v2000_v59  ;;  %v1503_v59 = vsub.f32 %v479_v52, %v991_v53  ;;  %v2014_v1 = vmul.f32 %v1502_v54, %v1502_v54  ;;  %v492_v53 = vld [vmem:[#allocation3 + $0xd98] sm:$0xff] }
 0x359   :  { %v1004_v54 = vld [vmem:[#allocation6 + $0xd98] sm:$0xff] }
 0x35a   :  { %v2513_v11 = vadd.f32 %v2512_v6, %v2001_v0  ;;  %v1504_v0 = vsub.f32 %v480_v57, %v992_v58  ;;  %v2015_v6 = vmul.f32 %v1503_v59, %v1503_v59  ;;  %v493_v58 = vld [vmem:[#allocation3 + $0xda0] sm:$0xff] }
 0x35b   :  { %v1005_v59 = vld [vmem:[#allocation6 + $0xda0] sm:$0xff] }
 0x35c   :  { %v2514_v16 = vadd.f32 %v2513_v11, %v2002_v5  ;;  %v1505_v5 = vsub.f32 %v481_v62, %v993_v63  ;;  %v2016_v11 = vmul.f32 %v1504_v0, %v1504_v0  ;;  %v494_v63 = vld [vmem:[#allocation3 + $0xda8] sm:$0xff] }
 0x35d   :  { %v1006_v0 = vld [vmem:[#allocation6 + $0xda8] sm:$0xff] }
 0x35e   :  { %v2515_v21 = vadd.f32 %v2514_v16, %v2003_v10  ;;  %v1506_v10 = vsub.f32 %v482_v3, %v994_v4  ;;  %v2017_v16 = vmul.f32 %v1505_v5, %v1505_v5  ;;  %v495_v4 = vld [vmem:[#allocation3 + $0xdb0] sm:$0xff] }
 0x35f   :  { %v1007_v5 = vld [vmem:[#allocation6 + $0xdb0] sm:$0xff] }
 0x360   :  { %v2516_v26 = vadd.f32 %v2515_v21, %v2004_v15  ;;  %v1507_v15 = vsub.f32 %v483_v8, %v995_v9  ;;  %v2018_v21 = vmul.f32 %v1506_v10, %v1506_v10  ;;  %v496_v9 = vld [vmem:[#allocation3 + $0xdb8] sm:$0xff] }
 0x361   :  { %v1008_v10 = vld [vmem:[#allocation6 + $0xdb8] sm:$0xff] }
 0x362   :  { %v2517_v31 = vadd.f32 %v2516_v26, %v2005_v20  ;;  %v1508_v20 = vsub.f32 %v484_v13, %v996_v14  ;;  %v2019_v26 = vmul.f32 %v1507_v15, %v1507_v15  ;;  %v497_v14 = vld [vmem:[#allocation3 + $0xdc0] sm:$0xff] }
 0x363   :  { %v1009_v15 = vld [vmem:[#allocation6 + $0xdc0] sm:$0xff] }
 0x364   :  { %v2518_v36 = vadd.f32 %v2517_v31, %v2006_v25  ;;  %v1509_v25 = vsub.f32 %v485_v18, %v997_v19  ;;  %v2020_v31 = vmul.f32 %v1508_v20, %v1508_v20  ;;  %v498_v19 = vld [vmem:[#allocation3 + $0xdc8] sm:$0xff] }
 0x365   :  { %v1010_v20 = vld [vmem:[#allocation6 + $0xdc8] sm:$0xff] }
 0x366   :  { %v2519_v41 = vadd.f32 %v2518_v36, %v2007_v30  ;;  %v1510_v30 = vsub.f32 %v486_v23, %v998_v24  ;;  %v2021_v36 = vmul.f32 %v1509_v25, %v1509_v25  ;;  %v499_v24 = vld [vmem:[#allocation3 + $0xdd0] sm:$0xff] }
 0x367   :  { %v1011_v25 = vld [vmem:[#allocation6 + $0xdd0] sm:$0xff] }
 0x368   :  { %v2520_v46 = vadd.f32 %v2519_v41, %v2008_v35  ;;  %v1511_v35 = vsub.f32 %v487_v28, %v999_v29  ;;  %v2022_v41 = vmul.f32 %v1510_v30, %v1510_v30  ;;  %v500_v29 = vld [vmem:[#allocation3 + $0xdd8] sm:$0xff] }
 0x369   :  { %v1012_v30 = vld [vmem:[#allocation6 + $0xdd8] sm:$0xff] }
 0x36a   :  { %v2521_v51 = vadd.f32 %v2520_v46, %v2009_v40  ;;  %v1512_v40 = vsub.f32 %v488_v33, %v1000_v34  ;;  %v2023_v46 = vmul.f32 %v1511_v35, %v1511_v35  ;;  %v501_v34 = vld [vmem:[#allocation3 + $0xde0] sm:$0xff] }
 0x36b   :  { %v1013_v35 = vld [vmem:[#allocation6 + $0xde0] sm:$0xff] }
 0x36c   :  { %v2522_v56 = vadd.f32 %v2521_v51, %v2010_v45  ;;  %v1513_v45 = vsub.f32 %v489_v38, %v1001_v39  ;;  %v2024_v51 = vmul.f32 %v1512_v40, %v1512_v40  ;;  %v502_v39 = vld [vmem:[#allocation3 + $0xde8] sm:$0xff] }
 0x36d   :  { %v1014_v40 = vld [vmem:[#allocation6 + $0xde8] sm:$0xff] }
 0x36e   :  { %v2523_v61 = vadd.f32 %v2522_v56, %v2011_v50  ;;  %v1514_v50 = vsub.f32 %v490_v43, %v1002_v44  ;;  %v2025_v56 = vmul.f32 %v1513_v45, %v1513_v45  ;;  %v503_v44 = vld [vmem:[#allocation3 + $0xdf0] sm:$0xff] }
 0x36f   :  { %v1015_v45 = vld [vmem:[#allocation6 + $0xdf0] sm:$0xff] }
 0x370   :  { %v2524_v2 = vadd.f32 %v2523_v61, %v2012_v55  ;;  %v1515_v55 = vsub.f32 %v491_v48, %v1003_v49  ;;  %v2026_v61 = vmul.f32 %v1514_v50, %v1514_v50  ;;  %v504_v49 = vld [vmem:[#allocation3 + $0xdf8] sm:$0xff] }
 0x371   :  { %v1016_v50 = vld [vmem:[#allocation6 + $0xdf8] sm:$0xff] }
 0x372   :  { %v2525_v7 = vadd.f32 %v2524_v2, %v2013_v60  ;;  %v1516_v60 = vsub.f32 %v492_v53, %v1004_v54  ;;  %v2027_v2 = vmul.f32 %v1515_v55, %v1515_v55  ;;  %v505_v54 = vld [vmem:[#allocation3 + $0xe00] sm:$0xff] }
 0x373   :  { %v1017_v55 = vld [vmem:[#allocation6 + $0xe00] sm:$0xff] }
 0x374   :  { %v2526_v12 = vadd.f32 %v2525_v7, %v2014_v1  ;;  %v1517_v1 = vsub.f32 %v493_v58, %v1005_v59  ;;  %v2028_v7 = vmul.f32 %v1516_v60, %v1516_v60  ;;  %v506_v59 = vld [vmem:[#allocation3 + $0xe08] sm:$0xff] }
 0x375   :  { %v1018_v60 = vld [vmem:[#allocation6 + $0xe08] sm:$0xff] }
 0x376   :  { %v2527_v17 = vadd.f32 %v2526_v12, %v2015_v6  ;;  %v1518_v6 = vsub.f32 %v494_v63, %v1006_v0  ;;  %v2029_v12 = vmul.f32 %v1517_v1, %v1517_v1  ;;  %v507_v0 = vld [vmem:[#allocation3 + $0xe10] sm:$0xff] }
 0x377   :  { %v1019_v1 = vld [vmem:[#allocation6 + $0xe10] sm:$0xff] }
 0x378   :  { %v2528_v22 = vadd.f32 %v2527_v17, %v2016_v11  ;;  %v1519_v11 = vsub.f32 %v495_v4, %v1007_v5  ;;  %v2030_v17 = vmul.f32 %v1518_v6, %v1518_v6  ;;  %v508_v5 = vld [vmem:[#allocation3 + $0xe18] sm:$0xff] }
 0x379   :  { %v1020_v6 = vld [vmem:[#allocation6 + $0xe18] sm:$0xff] }
 0x37a   :  { %v2529_v27 = vadd.f32 %v2528_v22, %v2017_v16  ;;  %v1520_v16 = vsub.f32 %v496_v9, %v1008_v10  ;;  %v2031_v22 = vmul.f32 %v1519_v11, %v1519_v11  ;;  %v509_v10 = vld [vmem:[#allocation3 + $0xe20] sm:$0xff] }
 0x37b   :  { %v1021_v11 = vld [vmem:[#allocation6 + $0xe20] sm:$0xff] }
 0x37c   :  { %v2530_v32 = vadd.f32 %v2529_v27, %v2018_v21  ;;  %v1521_v21 = vsub.f32 %v497_v14, %v1009_v15  ;;  %v2032_v27 = vmul.f32 %v1520_v16, %v1520_v16  ;;  %v510_v15 = vld [vmem:[#allocation3 + $0xe28] sm:$0xff] }
 0x37d   :  { %v1022_v16 = vld [vmem:[#allocation6 + $0xe28] sm:$0xff] }
 0x37e   :  { %v2531_v37 = vadd.f32 %v2530_v32, %v2019_v26  ;;  %v1522_v26 = vsub.f32 %v498_v19, %v1010_v20  ;;  %v2033_v32 = vmul.f32 %v1521_v21, %v1521_v21  ;;  %v511_v20 = vld [vmem:[#allocation3 + $0xe30] sm:$0xff] }
 0x37f   :  { %v1023_v21 = vld [vmem:[#allocation6 + $0xe30] sm:$0xff] }
 0x380   :  { %v2532_v42 = vadd.f32 %v2531_v37, %v2020_v31  ;;  %v1523_v31 = vsub.f32 %v499_v24, %v1011_v25  ;;  %v2034_v37 = vmul.f32 %v1522_v26, %v1522_v26  ;;  %v512_v25 = vld [vmem:[#allocation3 + $0xe38] sm:$0xff] }
 0x381   :  { %v1024_v26 = vld [vmem:[#allocation6 + $0xe38] sm:$0xff] }
 0x382   :  { %v2533_v47 = vadd.f32 %v2532_v42, %v2021_v36  ;;  %v1524_v36 = vsub.f32 %v500_v29, %v1012_v30  ;;  %v2035_v42 = vmul.f32 %v1523_v31, %v1523_v31  ;;  %v513_v30 = vld [vmem:[#allocation3 + $0xe40] sm:$0xff] }
 0x383   :  { %v1025_v31 = vld [vmem:[#allocation6 + $0xe40] sm:$0xff] }
 0x384   :  { %v2534_v52 = vadd.f32 %v2533_v47, %v2022_v41  ;;  %v1525_v41 = vsub.f32 %v501_v34, %v1013_v35  ;;  %v2036_v47 = vmul.f32 %v1524_v36, %v1524_v36  ;;  %v514_v35 = vld [vmem:[#allocation3 + $0xe48] sm:$0xff] }
 0x385   :  { %v1026_v36 = vld [vmem:[#allocation6 + $0xe48] sm:$0xff] }
 0x386   :  { %v2535_v57 = vadd.f32 %v2534_v52, %v2023_v46  ;;  %v1526_v46 = vsub.f32 %v502_v39, %v1014_v40  ;;  %v2037_v52 = vmul.f32 %v1525_v41, %v1525_v41  ;;  %v515_v40 = vld [vmem:[#allocation3 + $0xe50] sm:$0xff] }
 0x387   :  { %v1027_v41 = vld [vmem:[#allocation6 + $0xe50] sm:$0xff] }
 0x388   :  { %v2536_v62 = vadd.f32 %v2535_v57, %v2024_v51  ;;  %v1527_v51 = vsub.f32 %v503_v44, %v1015_v45  ;;  %v2038_v57 = vmul.f32 %v1526_v46, %v1526_v46  ;;  %v516_v45 = vld [vmem:[#allocation3 + $0xe58] sm:$0xff] }
 0x389   :  { %v1028_v46 = vld [vmem:[#allocation6 + $0xe58] sm:$0xff] }
 0x38a   :  { %v2537_v3 = vadd.f32 %v2536_v62, %v2025_v56  ;;  %v1528_v56 = vsub.f32 %v504_v49, %v1016_v50  ;;  %v2039_v62 = vmul.f32 %v1527_v51, %v1527_v51  ;;  %v517_v50 = vld [vmem:[#allocation3 + $0xe60] sm:$0xff] }
 0x38b   :  { %v1029_v51 = vld [vmem:[#allocation6 + $0xe60] sm:$0xff] }
 0x38c   :  { %v2538_v8 = vadd.f32 %v2537_v3, %v2026_v61  ;;  %v1529_v61 = vsub.f32 %v505_v54, %v1017_v55  ;;  %v2040_v3 = vmul.f32 %v1528_v56, %v1528_v56  ;;  %v518_v55 = vld [vmem:[#allocation3 + $0xe68] sm:$0xff] }
 0x38d   :  { %v1030_v56 = vld [vmem:[#allocation6 + $0xe68] sm:$0xff] }
 0x38e   :  { %v2539_v13 = vadd.f32 %v2538_v8, %v2027_v2  ;;  %v1530_v2 = vsub.f32 %v506_v59, %v1018_v60  ;;  %v2041_v8 = vmul.f32 %v1529_v61, %v1529_v61  ;;  %v519_v60 = vld [vmem:[#allocation3 + $0xe70] sm:$0xff] }
 0x38f   :  { %v1031_v61 = vld [vmem:[#allocation6 + $0xe70] sm:$0xff] }
 0x390   :  { %v2540_v18 = vadd.f32 %v2539_v13, %v2028_v7  ;;  %v1531_v7 = vsub.f32 %v507_v0, %v1019_v1  ;;  %v2042_v13 = vmul.f32 %v1530_v2, %v1530_v2  ;;  %v520_v1 = vld [vmem:[#allocation3 + $0xe78] sm:$0xff] }
 0x391   :  { %v1032_v2 = vld [vmem:[#allocation6 + $0xe78] sm:$0xff] }
 0x392   :  { %v2541_v23 = vadd.f32 %v2540_v18, %v2029_v12  ;;  %v1532_v12 = vsub.f32 %v508_v5, %v1020_v6  ;;  %v2043_v18 = vmul.f32 %v1531_v7, %v1531_v7  ;;  %v521_v6 = vld [vmem:[#allocation3 + $0xe80] sm:$0xff] }
 0x393   :  { %v1033_v7 = vld [vmem:[#allocation6 + $0xe80] sm:$0xff] }
 0x394   :  { %v2542_v28 = vadd.f32 %v2541_v23, %v2030_v17  ;;  %v1533_v17 = vsub.f32 %v509_v10, %v1021_v11  ;;  %v2044_v23 = vmul.f32 %v1532_v12, %v1532_v12  ;;  %v522_v11 = vld [vmem:[#allocation3 + $0xe88] sm:$0xff] }
 0x395   :  { %v1034_v12 = vld [vmem:[#allocation6 + $0xe88] sm:$0xff] }
 0x396   :  { %v2543_v33 = vadd.f32 %v2542_v28, %v2031_v22  ;;  %v1534_v22 = vsub.f32 %v510_v15, %v1022_v16  ;;  %v2045_v28 = vmul.f32 %v1533_v17, %v1533_v17  ;;  %v523_v16 = vld [vmem:[#allocation3 + $0xe90] sm:$0xff] }
 0x397   :  { %v1035_v17 = vld [vmem:[#allocation6 + $0xe90] sm:$0xff] }
 0x398   :  { %v2544_v38 = vadd.f32 %v2543_v33, %v2032_v27  ;;  %v1535_v27 = vsub.f32 %v511_v20, %v1023_v21  ;;  %v2046_v33 = vmul.f32 %v1534_v22, %v1534_v22  ;;  %v524_v21 = vld [vmem:[#allocation3 + $0xe98] sm:$0xff] }
 0x399   :  { %v1036_v22 = vld [vmem:[#allocation6 + $0xe98] sm:$0xff] }
 0x39a   :  { %v2545_v43 = vadd.f32 %v2544_v38, %v2033_v32  ;;  %v1536_v32 = vsub.f32 %v512_v25, %v1024_v26  ;;  %v2047_v38 = vmul.f32 %v1535_v27, %v1535_v27  ;;  %v525_v26 = vld [vmem:[#allocation3 + $0xea0] sm:$0xff] }
 0x39b   :  { %v1037_v27 = vld [vmem:[#allocation6 + $0xea0] sm:$0xff] }
 0x39c   :  { %v2546_v48 = vadd.f32 %v2545_v43, %v2034_v37  ;;  %v1537_v37 = vsub.f32 %v513_v30, %v1025_v31  ;;  %v2048_v43 = vmul.f32 %v1536_v32, %v1536_v32  ;;  %v526_v31 = vld [vmem:[#allocation3 + $0xea8] sm:$0xff] }
 0x39d   :  { %v1038_v32 = vld [vmem:[#allocation6 + $0xea8] sm:$0xff] }
 0x39e   :  { %v2547_v53 = vadd.f32 %v2546_v48, %v2035_v42  ;;  %v1538_v42 = vsub.f32 %v514_v35, %v1026_v36  ;;  %v2049_v48 = vmul.f32 %v1537_v37, %v1537_v37  ;;  %v527_v36 = vld [vmem:[#allocation3 + $0xeb0] sm:$0xff] }
 0x39f   :  { %v1039_v37 = vld [vmem:[#allocation6 + $0xeb0] sm:$0xff] }
 0x3a0   :  { %v2548_v58 = vadd.f32 %v2547_v53, %v2036_v47  ;;  %v1539_v47 = vsub.f32 %v515_v40, %v1027_v41  ;;  %v2050_v53 = vmul.f32 %v1538_v42, %v1538_v42  ;;  %v528_v41 = vld [vmem:[#allocation3 + $0xeb8] sm:$0xff] }
 0x3a1   :  { %v1040_v42 = vld [vmem:[#allocation6 + $0xeb8] sm:$0xff] }
 0x3a2   :  { %v2549_v63 = vadd.f32 %v2548_v58, %v2037_v52  ;;  %v1540_v52 = vsub.f32 %v516_v45, %v1028_v46  ;;  %v2051_v58 = vmul.f32 %v1539_v47, %v1539_v47  ;;  %v529_v46 = vld [vmem:[#allocation3 + $0xec0] sm:$0xff] }
 0x3a3   :  { %v1041_v47 = vld [vmem:[#allocation6 + $0xec0] sm:$0xff] }
 0x3a4   :  { %v2550_v4 = vadd.f32 %v2549_v63, %v2038_v57  ;;  %v1541_v57 = vsub.f32 %v517_v50, %v1029_v51  ;;  %v2052_v63 = vmul.f32 %v1540_v52, %v1540_v52  ;;  %v530_v51 = vld [vmem:[#allocation3 + $0xec8] sm:$0xff] }
 0x3a5   :  { %v1042_v52 = vld [vmem:[#allocation6 + $0xec8] sm:$0xff] }
 0x3a6   :  { %v2551_v9 = vadd.f32 %v2550_v4, %v2039_v62  ;;  %v1542_v62 = vsub.f32 %v518_v55, %v1030_v56  ;;  %v2053_v4 = vmul.f32 %v1541_v57, %v1541_v57  ;;  %v531_v56 = vld [vmem:[#allocation3 + $0xed0] sm:$0xff] }
 0x3a7   :  { %v1043_v57 = vld [vmem:[#allocation6 + $0xed0] sm:$0xff] }
 0x3a8   :  { %v2552_v14 = vadd.f32 %v2551_v9, %v2040_v3  ;;  %v1543_v3 = vsub.f32 %v519_v60, %v1031_v61  ;;  %v2054_v9 = vmul.f32 %v1542_v62, %v1542_v62  ;;  %v532_v61 = vld [vmem:[#allocation3 + $0xed8] sm:$0xff] }
 0x3a9   :  { %v1044_v62 = vld [vmem:[#allocation6 + $0xed8] sm:$0xff] }
 0x3aa   :  { %v2553_v19 = vadd.f32 %v2552_v14, %v2041_v8  ;;  %v1544_v8 = vsub.f32 %v520_v1, %v1032_v2  ;;  %v2055_v14 = vmul.f32 %v1543_v3, %v1543_v3  ;;  %v533_v2 = vld [vmem:[#allocation3 + $0xee0] sm:$0xff] }
 0x3ab   :  { %v1045_v3 = vld [vmem:[#allocation6 + $0xee0] sm:$0xff] }
 0x3ac   :  { %v2554_v24 = vadd.f32 %v2553_v19, %v2042_v13  ;;  %v1545_v13 = vsub.f32 %v521_v6, %v1033_v7  ;;  %v2056_v19 = vmul.f32 %v1544_v8, %v1544_v8  ;;  %v534_v7 = vld [vmem:[#allocation3 + $0xee8] sm:$0xff] }
 0x3ad   :  { %v1046_v8 = vld [vmem:[#allocation6 + $0xee8] sm:$0xff] }
 0x3ae   :  { %v2555_v29 = vadd.f32 %v2554_v24, %v2043_v18  ;;  %v1546_v18 = vsub.f32 %v522_v11, %v1034_v12  ;;  %v2057_v24 = vmul.f32 %v1545_v13, %v1545_v13  ;;  %v535_v12 = vld [vmem:[#allocation3 + $0xef0] sm:$0xff] }
 0x3af   :  { %v1047_v13 = vld [vmem:[#allocation6 + $0xef0] sm:$0xff] }
 0x3b0   :  { %v2556_v34 = vadd.f32 %v2555_v29, %v2044_v23  ;;  %v1547_v23 = vsub.f32 %v523_v16, %v1035_v17  ;;  %v2058_v29 = vmul.f32 %v1546_v18, %v1546_v18  ;;  %v536_v17 = vld [vmem:[#allocation3 + $0xef8] sm:$0xff] }
 0x3b1   :  { %v1048_v18 = vld [vmem:[#allocation6 + $0xef8] sm:$0xff] }
 0x3b2   :  { %v2557_v39 = vadd.f32 %v2556_v34, %v2045_v28  ;;  %v1548_v28 = vsub.f32 %v524_v21, %v1036_v22  ;;  %v2059_v34 = vmul.f32 %v1547_v23, %v1547_v23  ;;  %v537_v22 = vld [vmem:[#allocation3 + $0xf00] sm:$0xff] }
 0x3b3   :  { %v1049_v23 = vld [vmem:[#allocation6 + $0xf00] sm:$0xff] }
 0x3b4   :  { %v2558_v44 = vadd.f32 %v2557_v39, %v2046_v33  ;;  %v1549_v33 = vsub.f32 %v525_v26, %v1037_v27  ;;  %v2060_v39 = vmul.f32 %v1548_v28, %v1548_v28  ;;  %v538_v27 = vld [vmem:[#allocation3 + $0xf08] sm:$0xff] }
 0x3b5   :  { %v1050_v28 = vld [vmem:[#allocation6 + $0xf08] sm:$0xff] }
 0x3b6   :  { %v2559_v49 = vadd.f32 %v2558_v44, %v2047_v38  ;;  %v1550_v38 = vsub.f32 %v526_v31, %v1038_v32  ;;  %v2061_v44 = vmul.f32 %v1549_v33, %v1549_v33  ;;  %v539_v32 = vld [vmem:[#allocation3 + $0xf10] sm:$0xff] }
 0x3b7   :  { %v1051_v33 = vld [vmem:[#allocation6 + $0xf10] sm:$0xff] }
 0x3b8   :  { %v2560_v54 = vadd.f32 %v2559_v49, %v2048_v43  ;;  %v1551_v43 = vsub.f32 %v527_v36, %v1039_v37  ;;  %v2062_v49 = vmul.f32 %v1550_v38, %v1550_v38  ;;  %v540_v37 = vld [vmem:[#allocation3 + $0xf18] sm:$0xff] }
 0x3b9   :  { %v1052_v38 = vld [vmem:[#allocation6 + $0xf18] sm:$0xff] }
 0x3ba   :  { %v2561_v59 = vadd.f32 %v2560_v54, %v2049_v48  ;;  %v1552_v48 = vsub.f32 %v528_v41, %v1040_v42  ;;  %v2063_v54 = vmul.f32 %v1551_v43, %v1551_v43  ;;  %v541_v42 = vld [vmem:[#allocation3 + $0xf20] sm:$0xff] }
 0x3bb   :  { %v1053_v43 = vld [vmem:[#allocation6 + $0xf20] sm:$0xff] }
 0x3bc   :  { %v2562_v0 = vadd.f32 %v2561_v59, %v2050_v53  ;;  %v1553_v53 = vsub.f32 %v529_v46, %v1041_v47  ;;  %v2064_v59 = vmul.f32 %v1552_v48, %v1552_v48  ;;  %v542_v47 = vld [vmem:[#allocation3 + $0xf28] sm:$0xff] }
 0x3bd   :  { %v1054_v48 = vld [vmem:[#allocation6 + $0xf28] sm:$0xff] }
 0x3be   :  { %v2563_v5 = vadd.f32 %v2562_v0, %v2051_v58  ;;  %v1554_v58 = vsub.f32 %v530_v51, %v1042_v52  ;;  %v2065_v0 = vmul.f32 %v1553_v53, %v1553_v53  ;;  %v543_v52 = vld [vmem:[#allocation3 + $0xf30] sm:$0xff] }
 0x3bf   :  { %v1055_v53 = vld [vmem:[#allocation6 + $0xf30] sm:$0xff] }
 0x3c0   :  { %v2564_v10 = vadd.f32 %v2563_v5, %v2052_v63  ;;  %v1555_v63 = vsub.f32 %v531_v56, %v1043_v57  ;;  %v2066_v5 = vmul.f32 %v1554_v58, %v1554_v58  ;;  %v544_v57 = vld [vmem:[#allocation3 + $0xf38] sm:$0xff] }
 0x3c1   :  { %v1056_v58 = vld [vmem:[#allocation6 + $0xf38] sm:$0xff] }
 0x3c2   :  { %v2565_v15 = vadd.f32 %v2564_v10, %v2053_v4  ;;  %v1556_v4 = vsub.f32 %v532_v61, %v1044_v62  ;;  %v2067_v10 = vmul.f32 %v1555_v63, %v1555_v63  ;;  %v545_v62 = vld [vmem:[#allocation3 + $0xf40] sm:$0xff] }
 0x3c3   :  { %v1057_v63 = vld [vmem:[#allocation6 + $0xf40] sm:$0xff] }
 0x3c4   :  { %v2566_v20 = vadd.f32 %v2565_v15, %v2054_v9  ;;  %v1557_v9 = vsub.f32 %v533_v2, %v1045_v3  ;;  %v2068_v15 = vmul.f32 %v1556_v4, %v1556_v4  ;;  %v546_v3 = vld [vmem:[#allocation3 + $0xf48] sm:$0xff] }
 0x3c5   :  { %v1058_v4 = vld [vmem:[#allocation6 + $0xf48] sm:$0xff] }
 0x3c6   :  { %v2567_v25 = vadd.f32 %v2566_v20, %v2055_v14  ;;  %v1558_v14 = vsub.f32 %v534_v7, %v1046_v8  ;;  %v2069_v20 = vmul.f32 %v1557_v9, %v1557_v9  ;;  %v547_v8 = vld [vmem:[#allocation3 + $0xf50] sm:$0xff] }
 0x3c7   :  { %v1059_v9 = vld [vmem:[#allocation6 + $0xf50] sm:$0xff] }
 0x3c8   :  { %v2568_v30 = vadd.f32 %v2567_v25, %v2056_v19  ;;  %v1559_v19 = vsub.f32 %v535_v12, %v1047_v13  ;;  %v2070_v25 = vmul.f32 %v1558_v14, %v1558_v14  ;;  %v548_v13 = vld [vmem:[#allocation3 + $0xf58] sm:$0xff] }
 0x3c9   :  { %v1060_v14 = vld [vmem:[#allocation6 + $0xf58] sm:$0xff] }
 0x3ca   :  { %v2569_v35 = vadd.f32 %v2568_v30, %v2057_v24  ;;  %v1560_v24 = vsub.f32 %v536_v17, %v1048_v18  ;;  %v2071_v30 = vmul.f32 %v1559_v19, %v1559_v19  ;;  %v549_v18 = vld [vmem:[#allocation3 + $0xf60] sm:$0xff] }
 0x3cb   :  { %v1061_v19 = vld [vmem:[#allocation6 + $0xf60] sm:$0xff] }
 0x3cc   :  { %v2570_v40 = vadd.f32 %v2569_v35, %v2058_v29  ;;  %v1561_v29 = vsub.f32 %v537_v22, %v1049_v23  ;;  %v2072_v35 = vmul.f32 %v1560_v24, %v1560_v24  ;;  %v550_v23 = vld [vmem:[#allocation3 + $0xf68] sm:$0xff] }
 0x3cd   :  { %v1062_v24 = vld [vmem:[#allocation6 + $0xf68] sm:$0xff] }
 0x3ce   :  { %v2571_v45 = vadd.f32 %v2570_v40, %v2059_v34  ;;  %v1562_v34 = vsub.f32 %v538_v27, %v1050_v28  ;;  %v2073_v40 = vmul.f32 %v1561_v29, %v1561_v29  ;;  %v551_v28 = vld [vmem:[#allocation3 + $0xf70] sm:$0xff] }
 0x3cf   :  { %v1063_v29 = vld [vmem:[#allocation6 + $0xf70] sm:$0xff] }
 0x3d0   :  { %v2572_v50 = vadd.f32 %v2571_v45, %v2060_v39  ;;  %v1563_v39 = vsub.f32 %v539_v32, %v1051_v33  ;;  %v2074_v45 = vmul.f32 %v1562_v34, %v1562_v34  ;;  %v552_v33 = vld [vmem:[#allocation3 + $0xf78] sm:$0xff] }
 0x3d1   :  { %v1064_v34 = vld [vmem:[#allocation6 + $0xf78] sm:$0xff] }
 0x3d2   :  { %v2573_v55 = vadd.f32 %v2572_v50, %v2061_v44  ;;  %v1564_v44 = vsub.f32 %v540_v37, %v1052_v38  ;;  %v2075_v50 = vmul.f32 %v1563_v39, %v1563_v39  ;;  %v553_v38 = vld [vmem:[#allocation3 + $0xf80] sm:$0xff] }
 0x3d3   :  { %v1065_v39 = vld [vmem:[#allocation6 + $0xf80] sm:$0xff] }
 0x3d4   :  { %v2574_v60 = vadd.f32 %v2573_v55, %v2062_v49  ;;  %v1565_v49 = vsub.f32 %v541_v42, %v1053_v43  ;;  %v2076_v55 = vmul.f32 %v1564_v44, %v1564_v44  ;;  %v554_v43 = vld [vmem:[#allocation3 + $0xf88] sm:$0xff] }
 0x3d5   :  { %v1066_v44 = vld [vmem:[#allocation6 + $0xf88] sm:$0xff] }
 0x3d6   :  { %v2575_v1 = vadd.f32 %v2574_v60, %v2063_v54  ;;  %v1566_v54 = vsub.f32 %v542_v47, %v1054_v48  ;;  %v2077_v60 = vmul.f32 %v1565_v49, %v1565_v49  ;;  %v555_v48 = vld [vmem:[#allocation3 + $0xf90] sm:$0xff] }
 0x3d7   :  { %v1067_v49 = vld [vmem:[#allocation6 + $0xf90] sm:$0xff] }
 0x3d8   :  { %v2576_v6 = vadd.f32 %v2575_v1, %v2064_v59  ;;  %v1567_v59 = vsub.f32 %v543_v52, %v1055_v53  ;;  %v2078_v1 = vmul.f32 %v1566_v54, %v1566_v54  ;;  %v556_v53 = vld [vmem:[#allocation3 + $0xf98] sm:$0xff] }
 0x3d9   :  { %v1068_v54 = vld [vmem:[#allocation6 + $0xf98] sm:$0xff] }
 0x3da   :  { %v2577_v11 = vadd.f32 %v2576_v6, %v2065_v0  ;;  %v1568_v0 = vsub.f32 %v544_v57, %v1056_v58  ;;  %v2079_v6 = vmul.f32 %v1567_v59, %v1567_v59  ;;  %v557_v58 = vld [vmem:[#allocation3 + $0xfa0] sm:$0xff] }
 0x3db   :  { %v1069_v59 = vld [vmem:[#allocation6 + $0xfa0] sm:$0xff] }
 0x3dc   :  { %v2578_v16 = vadd.f32 %v2577_v11, %v2066_v5  ;;  %v1569_v5 = vsub.f32 %v545_v62, %v1057_v63  ;;  %v2080_v11 = vmul.f32 %v1568_v0, %v1568_v0  ;;  %v558_v63 = vld [vmem:[#allocation3 + $0xfa8] sm:$0xff] }
 0x3dd   :  { %v1070_v0 = vld [vmem:[#allocation6 + $0xfa8] sm:$0xff] }
 0x3de   :  { %v2579_v21 = vadd.f32 %v2578_v16, %v2067_v10  ;;  %v1570_v10 = vsub.f32 %v546_v3, %v1058_v4  ;;  %v2081_v16 = vmul.f32 %v1569_v5, %v1569_v5  ;;  %v559_v4 = vld [vmem:[#allocation3 + $0xfb0] sm:$0xff] }
 0x3df   :  { %v1071_v5 = vld [vmem:[#allocation6 + $0xfb0] sm:$0xff] }
 0x3e0   :  { %v2580_v26 = vadd.f32 %v2579_v21, %v2068_v15  ;;  %v1571_v15 = vsub.f32 %v547_v8, %v1059_v9  ;;  %v2082_v21 = vmul.f32 %v1570_v10, %v1570_v10  ;;  %v560_v9 = vld [vmem:[#allocation3 + $0xfb8] sm:$0xff] }
 0x3e1   :  { %v1072_v10 = vld [vmem:[#allocation6 + $0xfb8] sm:$0xff] }
 0x3e2   :  { %v2581_v31 = vadd.f32 %v2580_v26, %v2069_v20  ;;  %v1572_v20 = vsub.f32 %v548_v13, %v1060_v14  ;;  %v2083_v26 = vmul.f32 %v1571_v15, %v1571_v15  ;;  %v561_v14 = vld [vmem:[#allocation3 + $0xfc0] sm:$0xff] }
 0x3e3   :  { %v1073_v15 = vld [vmem:[#allocation6 + $0xfc0] sm:$0xff] }
 0x3e4   :  { %v2582_v36 = vadd.f32 %v2581_v31, %v2070_v25  ;;  %v1573_v25 = vsub.f32 %v549_v18, %v1061_v19  ;;  %v2084_v31 = vmul.f32 %v1572_v20, %v1572_v20  ;;  %v562_v19 = vld [vmem:[#allocation3 + $0xfc8] sm:$0xff] }
 0x3e5   :  { %v1074_v20 = vld [vmem:[#allocation6 + $0xfc8] sm:$0xff] }
 0x3e6   :  { %v2583_v41 = vadd.f32 %v2582_v36, %v2071_v30  ;;  %v1574_v30 = vsub.f32 %v550_v23, %v1062_v24  ;;  %v2085_v36 = vmul.f32 %v1573_v25, %v1573_v25  ;;  %v563_v24 = vld [vmem:[#allocation3 + $0xfd0] sm:$0xff] }
 0x3e7   :  { %v1075_v25 = vld [vmem:[#allocation6 + $0xfd0] sm:$0xff] }
 0x3e8   :  { %v2584_v46 = vadd.f32 %v2583_v41, %v2072_v35  ;;  %v1575_v35 = vsub.f32 %v551_v28, %v1063_v29  ;;  %v2086_v41 = vmul.f32 %v1574_v30, %v1574_v30  ;;  %v564_v29 = vld [vmem:[#allocation3 + $0xfd8] sm:$0xff] }
 0x3e9   :  { %v1076_v30 = vld [vmem:[#allocation6 + $0xfd8] sm:$0xff] }
 0x3ea   :  { %v2585_v51 = vadd.f32 %v2584_v46, %v2073_v40  ;;  %v1576_v40 = vsub.f32 %v552_v33, %v1064_v34  ;;  %v2087_v46 = vmul.f32 %v1575_v35, %v1575_v35  ;;  %v565_v34 = vld [vmem:[#allocation3 + $0xfe0] sm:$0xff] }
 0x3eb   :  { %v1077_v35 = vld [vmem:[#allocation6 + $0xfe0] sm:$0xff] }
 0x3ec   :  { %v2586_v56 = vadd.f32 %v2585_v51, %v2074_v45  ;;  %v1577_v45 = vsub.f32 %v553_v38, %v1065_v39  ;;  %v2088_v51 = vmul.f32 %v1576_v40, %v1576_v40  ;;  %v566_v39 = vld [vmem:[#allocation3 + $0xfe8] sm:$0xff] }
 0x3ed   :  { %v1078_v40 = vld [vmem:[#allocation6 + $0xfe8] sm:$0xff] }
 0x3ee   :  { %v2587_v61 = vadd.f32 %v2586_v56, %v2075_v50  ;;  %v1578_v50 = vsub.f32 %v554_v43, %v1066_v44  ;;  %v2089_v56 = vmul.f32 %v1577_v45, %v1577_v45  ;;  %v567_v44 = vld [vmem:[#allocation3 + $0xff0] sm:$0xff] }
 0x3ef   :  { %v1079_v45 = vld [vmem:[#allocation6 + $0xff0] sm:$0xff] }
 0x3f0   :  { %v2588_v2 = vadd.f32 %v2587_v61, %v2076_v55  ;;  %v1579_v55 = vsub.f32 %v555_v48, %v1067_v49  ;;  %v2090_v61 = vmul.f32 %v1578_v50, %v1578_v50  ;;  %v568_v49 = vld [vmem:[#allocation3 + $0xff8] sm:$0xff] }
 0x3f1   :  { %v1080_v50 = vld [vmem:[#allocation6 + $0xff8] sm:$0xff] }
 0x3f2   :  { %v2589_v7 = vadd.f32 %v2588_v2, %v2077_v60  ;;  %v1580_v60 = vsub.f32 %v556_v53, %v1068_v54  ;;  %v2091_v2 = vmul.f32 %v1579_v55, %v1579_v55  ;;  %v1592_v54 = vsub.f32 %v568_v49, %v1080_v50 }
 0x3f4   :  { %v2590_v12 = vadd.f32 %v2589_v7, %v2078_v1  ;;  %v1581_v1 = vsub.f32 %v557_v58, %v1069_v59  ;;  %v2092_v7 = vmul.f32 %v1580_v60, %v1580_v60  ;;  %v2104_v59 = vmul.f32 %v1592_v54, %v1592_v54 }
 0x3f6   :  { %v2591_v17 = vadd.f32 %v2590_v12, %v2079_v6  ;;  %v1582_v6 = vsub.f32 %v558_v63, %v1070_v0  ;;  %v2093_v12 = vmul.f32 %v1581_v1, %v1581_v1 }
 0x3f8   :  { %v2592_v22 = vadd.f32 %v2591_v17, %v2080_v11  ;;  %v1583_v11 = vsub.f32 %v559_v4, %v1071_v5  ;;  %v2094_v17 = vmul.f32 %v1582_v6, %v1582_v6 }
 0x3fa   :  { %v2593_v27 = vadd.f32 %v2592_v22, %v2081_v16  ;;  %v1584_v16 = vsub.f32 %v560_v9, %v1072_v10  ;;  %v2095_v22 = vmul.f32 %v1583_v11, %v1583_v11 }
 0x3fc   :  { %v2594_v32 = vadd.f32 %v2593_v27, %v2082_v21  ;;  %v1585_v21 = vsub.f32 %v561_v14, %v1073_v15  ;;  %v2096_v27 = vmul.f32 %v1584_v16, %v1584_v16 }
 0x3fe   :  { %v2595_v37 = vadd.f32 %v2594_v32, %v2083_v26  ;;  %v1586_v26 = vsub.f32 %v562_v19, %v1074_v20  ;;  %v2097_v32 = vmul.f32 %v1585_v21, %v1585_v21 }
 0x400   :  { %v2596_v42 = vadd.f32 %v2595_v37, %v2084_v31  ;;  %v1587_v31 = vsub.f32 %v563_v24, %v1075_v25  ;;  %v2098_v37 = vmul.f32 %v1586_v26, %v1586_v26 }
 0x402   :  { %v2597_v47 = vadd.f32 %v2596_v42, %v2085_v36  ;;  %v1588_v36 = vsub.f32 %v564_v29, %v1076_v30  ;;  %v2099_v42 = vmul.f32 %v1587_v31, %v1587_v31 }
 0x404   :  { %v2598_v52 = vadd.f32 %v2597_v47, %v2086_v41  ;;  %v1589_v41 = vsub.f32 %v565_v34, %v1077_v35  ;;  %v2100_v47 = vmul.f32 %v1588_v36, %v1588_v36 }
 0x406   :  { %v2599_v57 = vadd.f32 %v2598_v52, %v2087_v46  ;;  %v1590_v46 = vsub.f32 %v566_v39, %v1078_v40  ;;  %v2101_v52 = vmul.f32 %v1589_v41, %v1589_v41 }
 0x408   :  { %v2600_v62 = vadd.f32 %v2599_v57, %v2088_v51  ;;  %v1591_v51 = vsub.f32 %v567_v44, %v1079_v45  ;;  %v2102_v55 = vmul.f32 %v1590_v46, %v1590_v46 }
 0x40a   :  { %v2601_v3 = vadd.f32 %v2600_v62, %v2089_v56  ;;  %v2103_v57 = vmul.f32 %v1591_v51, %v1591_v51 }
 0x40c   :  { %v2602_v8 = vadd.f32 %v2601_v3, %v2090_v61 }
 0x40e   :  { %v2603_v13 = vadd.f32 %v2602_v8, %v2091_v2 }
 0x410   :  { %v2604_v18 = vadd.f32 %v2603_v13, %v2092_v7 }
 0x412   :  { %v2605_v23 = vadd.f32 %v2604_v18, %v2093_v12 }
 0x414   :  { %v2606_v28 = vadd.f32 %v2605_v23, %v2094_v17 }
 0x416   :  { %v2607_v33 = vadd.f32 %v2606_v28, %v2095_v22 }
 0x418   :  { %v2608_v38 = vadd.f32 %v2607_v33, %v2096_v27 }
 0x41a   :  { %v2609_v43 = vadd.f32 %v2608_v38, %v2097_v32 }
 0x41c   :  { %v2610_v48 = vadd.f32 %v2609_v43, %v2098_v37 }
 0x41e   :  { %v2611_v53 = vadd.f32 %v2610_v48, %v2099_v42 }
 0x420   :  { %v2612_v56 = vadd.f32 %v2611_v53, %v2100_v47 }
 0x422   :  { %v2613_v58 = vadd.f32 %v2612_v56, %v2101_v52 }
 0x424   :  { %v2614_v60 = vadd.f32 %v2613_v58, %v2102_v55 }
 0x426   :  { %v2615_v61 = vadd.f32 %v2614_v60, %v2103_v57 }
 0x428   :  { %v2616_v62 = vadd.f32 %v2615_v61, %v2104_v59 }
 0x42a   :  { %2623 = vst [vmem:[#allocation8] sm:$0xff] %v2616_v62 }
 0x42b   :  { %2700 = shalt.err (!%p2697_p6)
}
 0x42c   :  { %s2701_s10 = scalar_lea.hbm %s2775_s2, 128 }
 0x42d   :  { %p2702_p7 = scmp.ne.s32.totalorder %s2775_s2, %s2701_s10  ;;  %p2705_p8 = scmp.lt.u32.totalorder %s2701_s10, %s2775_s2 }
 0x42f   :  { %p2707_p9 = pnand %p2705_p8, %p2702_p7 }
 0x431   :  { %2710 = shalt.err (!%p2707_p9)
}
 0x432   :  { %2633 = dma.vmem_to_hbm [thread:$0]  %s2631_s6, 128, %s2775_s2, [#allocation5]  }
 0x433   :  { %2715 = dma.done.wait [#allocation5], 128  }
 0x434   :  { %2716 = vsyncadd [#allocation5], 4294967168 }
 0x435   :  { %2637 = vsyncpa [#allocation4], 1 }
 0x436   :  { %2638 = vsyncpa [#allocation7], 1 }
 0x437   :  { %2639 = vsyncpa [#allocation5], 1 }

</bundles_post_ra>
